<compile_context>
chip_gen: v6e
topology: v6e:2x2x1
jax: 0.10.0
libtpu: 0.0.40
codegen_flags: <defaults>
</compile_context>

<pallas_src>
import math
import functools

import jax
import jax.numpy as jnp
from jax.experimental import pallas as pl
from jax.experimental.pallas import tpu as pltpu


def _rup(x, m):
    return ((x + m - 1) // m) * m


# -----------------------------------------------------------------------------
# Pallas kernel 1: fused matmul + bias + (optional) ReLU.
#   - MXU is fed bf16 operands, f32 accumulation / epilogue / output
#   - K and N are full (unpadded) dims -> no redundant MACs, no pad HBM traffic
#   - single K block -> no k grid axis, no accumulator scratch, no pl.when
#   - M tiled with tm up to 512; >=2 M blocks when M is large (v7x megacore)
# -----------------------------------------------------------------------------
def _mm_bias_act_kernel(a_ref, b_ref, bias_ref, o_ref, *, relu):
    acc = jnp.dot(a_ref[...], b_ref[...], preferred_element_type=jnp.float32)
    acc = acc + bias_ref[...]              # f32 epilogue (v5e has no bf16 VPU)
    if relu:
        acc = jnp.maximum(acc, 0.0)
    o_ref[...] = acc


def _pick_tm(m):
    m8 = _rup(m, 8)
    if m8 <= 256:
        return m8                                   # single block
    return min(512, _rup((m8 + 1) // 2, 8))         # >=2 blocks, cap at 512


def pallas_matmul_bias_act(a, b, bias=None, relu=False):
    """a: [M, K], b: [K, N] -> f32 [M, N] = act(a @ b + bias)."""
    M, K = a.shape
    K2, N = b.shape
    assert K == K2
    tm = _pick_tm(M)
    Mp = _rup(M, tm)

    a_bf = a.astype(jnp.bfloat16)
    if Mp != M:
        a_bf = jnp.pad(a_bf, ((0, Mp - M), (0, 0)))
    b_bf = b.astype(jnp.bfloat16)
    if bias is None:
        bias = jnp.zeros((N,), jnp.float32)
    bias2 = bias.reshape(1, N).astype(jnp.float32)

    out = pl.pallas_call(
        functools.partial(_mm_bias_act_kernel, relu=relu),
        out_shape=jax.ShapeDtypeStruct((Mp, N), jnp.float32),
        grid=(Mp // tm,),
        in_specs=[pl.BlockSpec((tm, K), lambda i: (i, 0)),
                  pl.BlockSpec((K, N), lambda i: (0, 0)),
                  pl.BlockSpec((1, N), lambda i: (0, 0))],
        out_specs=pl.BlockSpec((tm, N), lambda i: (i, 0)),
        compiler_params=pltpu.CompilerParams(
            dimension_semantics=("parallel",)),
    )(a_bf, b_bf, bias2)
    return out[:M] if Mp != M else out


# -----------------------------------------------------------------------------
# Pallas kernel 2: fully-fused decoder + loss.
#   embedding lookup (one-hot matmul), Q projection, merged K||V projection,
#   dot-product attention + softmax, output projection, masked cross-entropy —
#   all in one pallas_call (everything is tiny and lives in VMEM).
# -----------------------------------------------------------------------------
def _decoder_kernel(labels_ref, mask_ref, mem_ref, emb_ref, wq_ref, wkv_ref,
                    wout_ref, bout_ref, logits_ref, loss_ref, *,
                    batch, seq, mem_len, hidden, inv_n):
    V = emb_ref.shape[0]
    Dh = hidden

    labels = labels_ref[...]                                   # [B*S, 1] i32
    col = jax.lax.broadcasted_iota(jnp.int32, (batch * seq, V), 1)
    onehot = (col == labels).astype(jnp.float32)               # [B*S, V]

    # token embedding + query projection
    emb_tok = jnp.dot(onehot, emb_ref[...],
                      preferred_element_type=jnp.float32)       # [B*S, Dh]
    q = jnp.dot(emb_tok, wq_ref[...],
                preferred_element_type=jnp.float32)             # [B*S, Dh]

    # merged key/value projection (Wk || Wv)
    kv = jnp.dot(mem_ref[...], wkv_ref[...],
                 preferred_element_type=jnp.float32)            # [B*L, 2*Dh]
    k = kv[:, :Dh]
    v = kv[:, Dh:]

    scale = 1.0 / math.sqrt(Dh)
    dec_rows = []
    for bi in range(batch):                                     # B static, small
        qb = q[bi * seq:(bi + 1) * seq, :]                      # [S, Dh]
        kb = k[bi * mem_len:(bi + 1) * mem_len, :]              # [L, Dh]
        vb = v[bi * mem_len:(bi + 1) * mem_len, :]
        sc = jax.lax.dot_general(qb, kb, (((1,), (1,)), ((), ())),
                                 preferred_element_type=jnp.float32) * scale
        m = jnp.max(sc, axis=-1, keepdims=True)
        e = jnp.exp(sc - m)
        attn = e / jnp.sum(e, axis=-1, keepdims=True)
        ctx = jnp.dot(attn, vb, preferred_element_type=jnp.float32)
        dec_rows.append(jnp.maximum(ctx + qb, 0.0))
    dec = jnp.concatenate(dec_rows, axis=0)                     # [B*S, Dh]

    logits = jnp.dot(dec, wout_ref[...],
                     preferred_element_type=jnp.float32) + bout_ref[...]
    logits_ref[...] = logits                                    # [B*S, V]

    # masked cross-entropy, summed, divided by N (= batch)
    m2 = jnp.max(logits, axis=-1, keepdims=True)
    lse = m2 + jnp.log(jnp.sum(jnp.exp(logits - m2), axis=-1, keepdims=True))
    lab_logit = jnp.sum(logits * onehot, axis=-1, keepdims=True)
    loss = (lse - lab_logit) * mask_ref[...]                    # [B*S, 1]
    loss_ref[...] = jnp.sum(loss, axis=0, keepdims=True) * inv_n


def pallas_decoder_with_loss(labels, mask, memory2d, emb, wq, wkv, wout, bout,
                             batch, seq, mem_len):
    V, Dh = emb.shape
    kern = functools.partial(_decoder_kernel, batch=batch, seq=seq,
                             mem_len=mem_len, hidden=Dh, inv_n=1.0 / batch)
    logits2d, loss = pl.pallas_call(
        kern,
        out_shape=(jax.ShapeDtypeStruct((batch * seq, V), jnp.float32),
                   jax.ShapeDtypeStruct((1, 1), jnp.float32)),
    )(labels.reshape(batch * seq, 1).astype(jnp.int32),
      mask.reshape(batch * seq, 1).astype(jnp.float32),
      memory2d.astype(jnp.float32),
      emb.astype(jnp.float32), wq.astype(jnp.float32),
      wkv.astype(jnp.float32), wout.astype(jnp.float32),
      bout.reshape(1, V).astype(jnp.float32))
    return logits2d.reshape(batch, seq, V), loss[0, 0]


# -----------------------------------------------------------------------------
# Plain-JAX glue: im2col conv (Pallas matmul is the hot path), upsample, ROI crop
# -----------------------------------------------------------------------------
def conv2d(x, w, b=None, stride=1, padding=0, relu=False):
    """x: [B,H,W,Cin] NHWC, w: [kh,kw,Cin,Cout]. Bias+ReLU fused in the kernel."""
    B, H, W, Cin = x.shape
    kh, kw, _, Cout = w.shape
    Ho = (H + 2 * padding - kh) // stride + 1
    Wo = (W + 2 * padding - kw) // stride + 1
    if kh == 1 and kw == 1 and stride == 1 and padding == 0:
        patches = x                                   # 1x1 conv: no im2col copy
    else:
        # TODO(synk): im2col patches still materialize in HBM (one small XLA
        # fusion per conv); an implicit-GEMM Pallas conv would remove this.
        xp = jnp.pad(x, ((0, 0), (padding, padding), (padding, padding), (0, 0)))
        cols = [xp[:, i:i + stride * Ho:stride, j:j + stride * Wo:stride, :]
                for i in range(kh) for j in range(kw)]
        patches = jnp.concatenate(cols, axis=-1)      # [B,Ho,Wo,kh*kw*Cin]
    out = pallas_matmul_bias_act(
        patches.reshape(B * Ho * Wo, kh * kw * Cin),
        w.reshape(kh * kw * Cin, Cout), bias=b, relu=relu)
    return out.reshape(B, Ho, Wo, Cout)


def upsample2(x):
    return jnp.repeat(jnp.repeat(x, 2, axis=1), 2, axis=2)


def roi_align_nearest(feat, boxes, step, roi_size):
    """feat: [B,Hf,Wf,C]; boxes: [B,NI,4] (x1,y1,x2,y2 in image coords)."""
    # TODO(synk): full bilinear ROIAlign + per-box FPN level assignment not
    # implemented; nearest-neighbour sampling on the finest level (P2) is used.
    B, Hf, Wf, C = feat.shape

    def one(feat_b, box):
        x1, y1, x2, y2 = box[0], box[1], box[2], box[3]
        grid = (jnp.arange(roi_size, dtype=jnp.float32) + 0.5) / roi_size
        xs = (x1 + grid * (x2 - x1)) / step
        ys = (y1 + grid * (y2 - y1)) / step
        xi = jnp.clip(jnp.floor(xs).astype(jnp.int32), 0, Wf - 1)
        yi = jnp.clip(jnp.floor(ys).astype(jnp.int32), 0, Hf - 1)
        return feat_b[yi[:, None], xi[None, :], :]    # [roi, roi, C]

    out = jax.vmap(lambda fb, bxs: jax.vmap(lambda bx: one(fb, bx))(bxs))(
        feat, boxes)                                  # [B, NI, roi, roi, C]
    out = jnp.transpose(out, (0, 2, 3, 1, 4))
    return out.reshape(B, roi_size, roi_size, boxes.shape[1] * C)


# -----------------------------------------------------------------------------
# Parameters (deterministic, in-script)
# -----------------------------------------------------------------------------
CFG = dict(feature_channels=[8, 16, 32, 64], fpn_out_channels=8,
           num_instances=2, roi_size=4, roi_feature_steps=[4, 8, 16, 32],
           encoder_channels=32, voc_len=16, max_seq_len=8, decoder_hidden=32)


def init_params(key, cfg):
    keys = iter(jax.random.split(key, 64))

    def w(shape):
        fan_in = 1
        for s in shape[:-1]:
            fan_in *= s
        return jax.random.normal(next(keys), shape, jnp.float32) / math.sqrt(fan_in)

    fc = cfg['feature_channels']
    fo = cfg['fpn_out_channels']
    ni = cfg['num_instances']
    ec = cfg['encoder_channels']
    dh = cfg['decoder_hidden']
    V = cfg['voc_len']
    p = {}
    # TODO(synk): synthetic small backbone stands in for pretrained ResNet50.
    p['bb1'] = w((3, 3, 3, fc[0]))
    p['bb2'] = w((3, 3, fc[0], fc[0]))
    p['bb3'] = w((3, 3, fc[0], fc[1]))
    p['bb4'] = w((3, 3, fc[1], fc[2]))
    p['bb5'] = w((3, 3, fc[2], fc[3]))
    for lvl, c in zip((2, 3, 4, 5), fc):
        p[f'lat{lvl}'] = w((1, 1, c, fo))
        p[f'lat{lvl}_b'] = jnp.zeros((fo,), jnp.float32)
        p[f'out{lvl}'] = w((3, 3, fo, fo))
        p[f'out{lvl}_b'] = jnp.zeros((fo,), jnp.float32)
    p['enc1'] = w((3, 3, fo * ni, ec))
    p['enc1_b'] = jnp.zeros((ec,), jnp.float32)
    p['enc2'] = w((3, 3, ec, ec))
    p['enc2_b'] = jnp.zeros((ec,), jnp.float32)
    p['emb'] = w((V, dh))
    p['Wq'] = w((dh, dh))
    p['Wkv'] = w((ec, 2 * dh))            # merged Wk || Wv
    p['Wout'] = w((dh, V))
    p['bout'] = jnp.zeros((V,), jnp.float32)
    return p


# -----------------------------------------------------------------------------
# Forward (mirrors MultiInstanceRecognition.forward: returns (loss, logits))
# -----------------------------------------------------------------------------
def forward(params, input_images, input_labels, input_boxes, input_masks,
            cfg=CFG):
    p = params
    # NCHW (PyTorch interface) -> NHWC (kernel layout)
    x = jnp.transpose(input_images, (0, 2, 3, 1)).astype(jnp.float32)

    # ---- backbone (feature_extract), ReLU fused into the conv matmuls ----
    c1 = conv2d(x, p['bb1'], stride=2, padding=1, relu=True)
    c2 = conv2d(c1, p['bb2'], stride=2, padding=1, relu=True)   # stride 4
    c3 = conv2d(c2, p['bb3'], stride=2, padding=1, relu=True)   # stride 8
    c4 = conv2d(c3, p['bb4'], stride=2, padding=1, relu=True)   # stride 16
    c5 = conv2d(c4, p['bb5'], stride=2, padding=1, relu=True)   # stride 32

    # ---- FPN neck ----
    l2 = conv2d(c2, p['lat2'], p['lat2_b'])
    l3 = conv2d(c3, p['lat3'], p['lat3_b'])
    l4 = conv2d(c4, p['lat4'], p['lat4_b'])
    l5 = conv2d(c5, p['lat5'], p['lat5_b'])
    t5 = l5
    t4 = l4 + upsample2(t5)
    t3 = l3 + upsample2(t4)
    t2 = l2 + upsample2(t3)
    p2 = conv2d(t2, p['out2'], p['out2_b'], stride=1, padding=1)
    # TODO(synk): P3..P6 FPN outputs + per-level ROI assignment omitted — the
    # simplified nearest-neighbour ROIAlign below samples only the finest level.

    # ---- MultiInstanceAlign ----
    rois = roi_align_nearest(p2, input_boxes,
                             step=cfg['roi_feature_steps'][0],
                             roi_size=cfg['roi_size'])          # [B,r,r,fo*NI]

    # ---- CnnEncoder ----
    e = conv2d(rois, p['enc1'], p['enc1_b'], stride=1, padding=1, relu=True)
    e = conv2d(e, p['enc2'], p['enc2_b'], stride=1, padding=1, relu=True)
    B, Hh, Ww, Ce = e.shape
    memory2d = e.reshape(B * Hh * Ww, Ce)                       # [B*Lm, Ce]

    # ---- Decoder + loss: single fused Pallas kernel ----
    # TODO(synk): exact Decoder architecture unspecified in the reference; a
    # single dot-product-attention decoder layer (teacher forcing) is used.
    S = input_labels.shape[1]
    decoder_logits, loss = pallas_decoder_with_loss(
        input_labels, input_masks, memory2d,
        p['emb'], p['Wq'], p['Wkv'], p['Wout'], p['bout'],
        batch=B, seq=S, mem_len=Hh * Ww)
    return loss, decoder_logits


if __name__ == "__main__":
    key = jax.random.PRNGKey(0)
    k_img, k_lab, k_par = jax.random.split(key, 3)

    B, H, W = 2, 64, 64
    S = CFG['max_seq_len']
    input_images = jax.random.normal(k_img, (B, 3, H, W), jnp.float32)
    input_labels = jax.random.randint(k_lab, (B, S), 0, CFG['voc_len'],
                                      dtype=jnp.int32)
    input_boxes = jnp.array([[[4., 4., 36., 36.], [20., 20., 60., 60.]],
                             [[8., 8., 40., 48.], [16., 4., 56., 44.]]],
                            jnp.float32)                        # [B, NI, 4]
    lengths = jnp.array([6, 8], jnp.int32)
    input_masks = (jnp.arange(S)[None, :] < lengths[:, None]).astype(jnp.float32)

    params = init_params(k_par, CFG)

    fwd = jax.jit(forward)
    loss, logits = fwd(params, input_images, input_labels, input_boxes,
                       input_masks)
    jax.block_until_ready((loss, logits))
    assert logits.shape == (B, S, CFG['voc_len'])
    assert jnp.isfinite(loss)
    print("KERNEL_OK")
</pallas_src>

<mosaic_0001>
module attributes {stable_mosaic.version = 11 : i64} {
  func.func @_mm_bias_act_kernel(%arg0: i32, %arg1: memref<512x27xbf16, #tpu.memory_space<vmem>>, %arg2: memref<27x8xbf16, #tpu.memory_space<vmem>>, %arg3: memref<1x8xf32, #tpu.memory_space<vmem>>, %arg4: memref<512x8xf32, #tpu.memory_space<vmem>>) attributes {dimension_semantics = [#tpu.dimension_semantics<parallel>], iteration_bounds = array<i64: 4>, scalar_prefetch = 0 : i64, scratch_operands = 0 : i64, tpu.core_type = #tpu.core_type<tc>, window_params = [{transform_indices = @transform_0, window_bounds = array<i64: 512, 27>}, {pipeline_mode = #tpu.pipeline_mode<synchronous>, transform_indices = @transform_1, window_bounds = array<i64: 27, 8>}, {pipeline_mode = #tpu.pipeline_mode<synchronous>, transform_indices = @transform_2, window_bounds = array<i64: 1, 8>}, {transform_indices = @transform_3, window_bounds = array<i64: 512, 8>}]} {
    %c0 = arith.constant 0 : index
    %c0_0 = arith.constant 0 : index
    %0 = vector.load %arg1[%c0, %c0_0] : memref<512x27xbf16, #tpu.memory_space<vmem>>, vector<512x27xbf16>
    %c0_1 = arith.constant 0 : index
    %c0_2 = arith.constant 0 : index
    %1 = vector.load %arg2[%c0_1, %c0_2] : memref<27x8xbf16, #tpu.memory_space<vmem>>, vector<27x8xbf16>
    %cst = arith.constant dense<0.000000e+00> : vector<512x8xf32>
    %2 = tpu.matmul %0, %1, %cst {dimension_numbers = #tpu.dot_dimension_numbers<[1], [0], [0], [1], [0, 0, 1, 1], [], []>} : vector<512x27xbf16>, vector<27x8xbf16>, vector<512x8xf32> -> vector<512x8xf32>
    %c0_3 = arith.constant 0 : index
    %c0_4 = arith.constant 0 : index
    %3 = vector.load %arg3[%c0_3, %c0_4] : memref<1x8xf32, #tpu.memory_space<vmem>>, vector<1x8xf32>
    %4 = vector.broadcast %3 : vector<1x8xf32> to vector<512x8xf32>
    %5 = arith.addf %2, %4 : vector<512x8xf32>
    %cst_5 = arith.constant 0.000000e+00 : f32
    %6 = vector.broadcast %cst_5 : f32 to vector<512x8xf32>
    %7 = arith.maximumf %5, %6 : vector<512x8xf32>
    %c0_6 = arith.constant 0 : index
    %c0_7 = arith.constant 0 : index
    %8 = vector.load %arg4[%c0_6, %c0_7] : memref<512x8xf32, #tpu.memory_space<vmem>>, vector<512x8xf32>
    tpu.vector_store %arg4[%c0_6, %c0_7], %7 {strides = array<i32>} : memref<512x8xf32, #tpu.memory_space<vmem>>, vector<512x8xf32>,
    return
  }
  func.func @transform_0(%arg0: i32) -> (i32, i32) {
    %c0_i32 = arith.constant 0 : i32
    %c0_i32_0 = arith.constant 0 : i32
    return %arg0, %c0_i32 : i32, i32
  }
  func.func @transform_1(%arg0: i32) -> (i32, i32) {
    %c0_i32 = arith.constant 0 : i32
    %c0_i32_0 = arith.constant 0 : i32
    %c0_i32_1 = arith.constant 0 : i32
    return %c0_i32, %c0_i32_0 : i32, i32
  }
  func.func @transform_2(%arg0: i32) -> (i32, i32) {
    %c0_i32 = arith.constant 0 : i32
    %c0_i32_0 = arith.constant 0 : i32
    %c0_i32_1 = arith.constant 0 : i32
    return %c0_i32, %c0_i32_0 : i32, i32
  }
  func.func @transform_3(%arg0: i32) -> (i32, i32) {
    %c0_i32 = arith.constant 0 : i32
    %c0_i32_0 = arith.constant 0 : i32
    return %arg0, %c0_i32 : i32, i32
  }
}

module attributes {stable_mosaic.version = 11 : i64} {
  func.func @_mm_bias_act_kernel(%arg0: i32, %arg1: memref<256x72xbf16, #tpu.memory_space<vmem>>, %arg2: memref<72x8xbf16, #tpu.memory_space<vmem>>, %arg3: memref<1x8xf32, #tpu.memory_space<vmem>>, %arg4: memref<256x8xf32, #tpu.memory_space<vmem>>) attributes {dimension_semantics = [#tpu.dimension_semantics<parallel>], iteration_bounds = array<i64: 2>, scalar_prefetch = 0 : i64, scratch_operands = 0 : i64, tpu.core_type = #tpu.core_type<tc>, window_params = [{transform_indices = @transform_0, window_bounds = array<i64: 256, 72>}, {pipeline_mode = #tpu.pipeline_mode<synchronous>, transform_indices = @transform_1, window_bounds = array<i64: 72, 8>}, {pipeline_mode = #tpu.pipeline_mode<synchronous>, transform_indices = @transform_2, window_bounds = array<i64: 1, 8>}, {transform_indices = @transform_3, window_bounds = array<i64: 256, 8>}]} {
    %c0 = arith.constant 0 : index
    %c0_0 = arith.constant 0 : index
    %0 = vector.load %arg1[%c0, %c0_0] : memref<256x72xbf16, #tpu.memory_space<vmem>>, vector<256x72xbf16>
    %c0_1 = arith.constant 0 : index
    %c0_2 = arith.constant 0 : index
    %1 = vector.load %arg2[%c0_1, %c0_2] : memref<72x8xbf16, #tpu.memory_space<vmem>>, vector<72x8xbf16>
    %cst = arith.constant dense<0.000000e+00> : vector<256x8xf32>
    %2 = tpu.matmul %0, %1, %cst {dimension_numbers = #tpu.dot_dimension_numbers<[1], [0], [0], [1], [0, 0, 1, 1], [], []>} : vector<256x72xbf16>, vector<72x8xbf16>, vector<256x8xf32> -> vector<256x8xf32>
    %c0_3 = arith.constant 0 : index
    %c0_4 = arith.constant 0 : index
    %3 = vector.load %arg3[%c0_3, %c0_4] : memref<1x8xf32, #tpu.memory_space<vmem>>, vector<1x8xf32>
    %4 = vector.broadcast %3 : vector<1x8xf32> to vector<256x8xf32>
    %5 = arith.addf %2, %4 : vector<256x8xf32>
    %cst_5 = arith.constant 0.000000e+00 : f32
    %6 = vector.broadcast %cst_5 : f32 to vector<256x8xf32>
    %7 = arith.maximumf %5, %6 : vector<256x8xf32>
    %c0_6 = arith.constant 0 : index
    %c0_7 = arith.constant 0 : index
    %8 = vector.load %arg4[%c0_6, %c0_7] : memref<256x8xf32, #tpu.memory_space<vmem>>, vector<256x8xf32>
    tpu.vector_store %arg4[%c0_6, %c0_7], %7 {strides = array<i32>} : memref<256x8xf32, #tpu.memory_space<vmem>>, vector<256x8xf32>,
    return
  }
  func.func @transform_0(%arg0: i32) -> (i32, i32) {
    %c0_i32 = arith.constant 0 : i32
    %c0_i32_0 = arith.constant 0 : i32
    return %arg0, %c0_i32 : i32, i32
  }
  func.func @transform_1(%arg0: i32) -> (i32, i32) {
    %c0_i32 = arith.constant 0 : i32
    %c0_i32_0 = arith.constant 0 : i32
    %c0_i32_1 = arith.constant 0 : i32
    return %c0_i32, %c0_i32_0 : i32, i32
  }
  func.func @transform_2(%arg0: i32) -> (i32, i32) {
    %c0_i32 = arith.constant 0 : i32
    %c0_i32_0 = arith.constant 0 : i32
    %c0_i32_1 = arith.constant 0 : i32
    return %c0_i32, %c0_i32_0 : i32, i32
  }
  func.func @transform_3(%arg0: i32) -> (i32, i32) {
    %c0_i32 = arith.constant 0 : i32
    %c0_i32_0 = arith.constant 0 : i32
    return %arg0, %c0_i32 : i32, i32
  }
}

module attributes {stable_mosaic.version = 11 : i64} {
  func.func @_mm_bias_act_kernel(%arg0: i32, %arg1: memref<128x72xbf16, #tpu.memory_space<vmem>>, %arg2: memref<72x16xbf16, #tpu.memory_space<vmem>>, %arg3: memref<1x16xf32, #tpu.memory_space<vmem>>, %arg4: memref<128x16xf32, #tpu.memory_space<vmem>>) attributes {dimension_semantics = [#tpu.dimension_semantics<parallel>], iteration_bounds = array<i64: 1>, scalar_prefetch = 0 : i64, scratch_operands = 0 : i64, tpu.core_type = #tpu.core_type<tc>, window_params = [{transform_indices = @transform_0, window_bounds = array<i64: 128, 72>}, {pipeline_mode = #tpu.pipeline_mode<synchronous>, transform_indices = @transform_1, window_bounds = array<i64: 72, 16>}, {pipeline_mode = #tpu.pipeline_mode<synchronous>, transform_indices = @transform_2, window_bounds = array<i64: 1, 16>}, {transform_indices = @transform_3, window_bounds = array<i64: 128, 16>}]} {
    %c0 = arith.constant 0 : index
    %c0_0 = arith.constant 0 : index
    %0 = vector.load %arg1[%c0, %c0_0] : memref<128x72xbf16, #tpu.memory_space<vmem>>, vector<128x72xbf16>
    %c0_1 = arith.constant 0 : index
    %c0_2 = arith.constant 0 : index
    %1 = vector.load %arg2[%c0_1, %c0_2] : memref<72x16xbf16, #tpu.memory_space<vmem>>, vector<72x16xbf16>
    %cst = arith.constant dense<0.000000e+00> : vector<128x16xf32>
    %2 = tpu.matmul %0, %1, %cst {dimension_numbers = #tpu.dot_dimension_numbers<[1], [0], [0], [1], [0, 0, 1, 1], [], []>} : vector<128x72xbf16>, vector<72x16xbf16>, vector<128x16xf32> -> vector<128x16xf32>
    %c0_3 = arith.constant 0 : index
    %c0_4 = arith.constant 0 : index
    %3 = vector.load %arg3[%c0_3, %c0_4] : memref<1x16xf32, #tpu.memory_space<vmem>>, vector<1x16xf32>
    %4 = vector.broadcast %3 : vector<1x16xf32> to vector<128x16xf32>
    %5 = arith.addf %2, %4 : vector<128x16xf32>
    %cst_5 = arith.constant 0.000000e+00 : f32
    %6 = vector.broadcast %cst_5 : f32 to vector<128x16xf32>
    %7 = arith.maximumf %5, %6 : vector<128x16xf32>
    %c0_6 = arith.constant 0 : index
    %c0_7 = arith.constant 0 : index
    %8 = vector.load %arg4[%c0_6, %c0_7] : memref<128x16xf32, #tpu.memory_space<vmem>>, vector<128x16xf32>
    tpu.vector_store %arg4[%c0_6, %c0_7], %7 {strides = array<i32>} : memref<128x16xf32, #tpu.memory_space<vmem>>, vector<128x16xf32>,
    return
  }
  func.func @transform_0(%arg0: i32) -> (i32, i32) {
    %c0_i32 = arith.constant 0 : i32
    %c0_i32_0 = arith.constant 0 : i32
    return %arg0, %c0_i32 : i32, i32
  }
  func.func @transform_1(%arg0: i32) -> (i32, i32) {
    %c0_i32 = arith.constant 0 : i32
    %c0_i32_0 = arith.constant 0 : i32
    %c0_i32_1 = arith.constant 0 : i32
    return %c0_i32, %c0_i32_0 : i32, i32
  }
  func.func @transform_2(%arg0: i32) -> (i32, i32) {
    %c0_i32 = arith.constant 0 : i32
    %c0_i32_0 = arith.constant 0 : i32
    %c0_i32_1 = arith.constant 0 : i32
    return %c0_i32, %c0_i32_0 : i32, i32
  }
  func.func @transform_3(%arg0: i32) -> (i32, i32) {
    %c0_i32 = arith.constant 0 : i32
    %c0_i32_0 = arith.constant 0 : i32
    return %arg0, %c0_i32 : i32, i32
  }
}

module attributes {stable_mosaic.version = 11 : i64} {
  func.func @_mm_bias_act_kernel(%arg0: i32, %arg1: memref<32x144xbf16, #tpu.memory_space<vmem>>, %arg2: memref<144x32xbf16, #tpu.memory_space<vmem>>, %arg3: memref<1x32xf32, #tpu.memory_space<vmem>>, %arg4: memref<32x32xf32, #tpu.memory_space<vmem>>) attributes {dimension_semantics = [#tpu.dimension_semantics<parallel>], iteration_bounds = array<i64: 1>, scalar_prefetch = 0 : i64, scratch_operands = 0 : i64, tpu.core_type = #tpu.core_type<tc>, window_params = [{transform_indices = @transform_0, window_bounds = array<i64: 32, 144>}, {pipeline_mode = #tpu.pipeline_mode<synchronous>, transform_indices = @transform_1, window_bounds = array<i64: 144, 32>}, {pipeline_mode = #tpu.pipeline_mode<synchronous>, transform_indices = @transform_2, window_bounds = array<i64: 1, 32>}, {transform_indices = @transform_3, window_bounds = array<i64: 32, 32>}]} {
    %c0 = arith.constant 0 : index
    %c0_0 = arith.constant 0 : index
    %0 = vector.load %arg1[%c0, %c0_0] : memref<32x144xbf16, #tpu.memory_space<vmem>>, vector<32x144xbf16>
    %c0_1 = arith.constant 0 : index
    %c0_2 = arith.constant 0 : index
    %1 = vector.load %arg2[%c0_1, %c0_2] : memref<144x32xbf16, #tpu.memory_space<vmem>>, vector<144x32xbf16>
    %cst = arith.constant dense<0.000000e+00> : vector<32x32xf32>
    %2 = tpu.matmul %0, %1, %cst {dimension_numbers = #tpu.dot_dimension_numbers<[1], [0], [0], [1], [0, 0, 1, 1], [], []>} : vector<32x144xbf16>, vector<144x32xbf16>, vector<32x32xf32> -> vector<32x32xf32>
    %c0_3 = arith.constant 0 : index
    %c0_4 = arith.constant 0 : index
    %3 = vector.load %arg3[%c0_3, %c0_4] : memref<1x32xf32, #tpu.memory_space<vmem>>, vector<1x32xf32>
    %4 = vector.broadcast %3 : vector<1x32xf32> to vector<32x32xf32>
    %5 = arith.addf %2, %4 : vector<32x32xf32>
    %cst_5 = arith.constant 0.000000e+00 : f32
    %6 = vector.broadcast %cst_5 : f32 to vector<32x32xf32>
    %7 = arith.maximumf %5, %6 : vector<32x32xf32>
    %c0_6 = arith.constant 0 : index
    %c0_7 = arith.constant 0 : index
    %8 = vector.load %arg4[%c0_6, %c0_7] : memref<32x32xf32, #tpu.memory_space<vmem>>, vector<32x32xf32>
    tpu.vector_store %arg4[%c0_6, %c0_7], %7 {strides = array<i32>} : memref<32x32xf32, #tpu.memory_space<vmem>>, vector<32x32xf32>,
    return
  }
  func.func @transform_0(%arg0: i32) -> (i32, i32) {
    %c0_i32 = arith.constant 0 : i32
    %c0_i32_0 = arith.constant 0 : i32
    return %arg0, %c0_i32 : i32, i32
  }
  func.func @transform_1(%arg0: i32) -> (i32, i32) {
    %c0_i32 = arith.constant 0 : i32
    %c0_i32_0 = arith.constant 0 : i32
    %c0_i32_1 = arith.constant 0 : i32
    return %c0_i32, %c0_i32_0 : i32, i32
  }
  func.func @transform_2(%arg0: i32) -> (i32, i32) {
    %c0_i32 = arith.constant 0 : i32
    %c0_i32_0 = arith.constant 0 : i32
    %c0_i32_1 = arith.constant 0 : i32
    return %c0_i32, %c0_i32_0 : i32, i32
  }
  func.func @transform_3(%arg0: i32) -> (i32, i32) {
    %c0_i32 = arith.constant 0 : i32
    %c0_i32_0 = arith.constant 0 : i32
    return %arg0, %c0_i32 : i32, i32
  }
}

module attributes {stable_mosaic.version = 11 : i64} {
  func.func @_mm_bias_act_kernel(%arg0: i32, %arg1: memref<8x288xbf16, #tpu.memory_space<vmem>>, %arg2: memref<288x64xbf16, #tpu.memory_space<vmem>>, %arg3: memref<1x64xf32, #tpu.memory_space<vmem>>, %arg4: memref<8x64xf32, #tpu.memory_space<vmem>>) attributes {dimension_semantics = [#tpu.dimension_semantics<parallel>], iteration_bounds = array<i64: 1>, scalar_prefetch = 0 : i64, scratch_operands = 0 : i64, tpu.core_type = #tpu.core_type<tc>, window_params = [{transform_indices = @transform_0, window_bounds = array<i64: 8, 288>}, {pipeline_mode = #tpu.pipeline_mode<synchronous>, transform_indices = @transform_1, window_bounds = array<i64: 288, 64>}, {pipeline_mode = #tpu.pipeline_mode<synchronous>, transform_indices = @transform_2, window_bounds = array<i64: 1, 64>}, {transform_indices = @transform_3, window_bounds = array<i64: 8, 64>}]} {
    %c0 = arith.constant 0 : index
    %c0_0 = arith.constant 0 : index
    %0 = vector.load %arg1[%c0, %c0_0] : memref<8x288xbf16, #tpu.memory_space<vmem>>, vector<8x288xbf16>
    %c0_1 = arith.constant 0 : index
    %c0_2 = arith.constant 0 : index
    %1 = vector.load %arg2[%c0_1, %c0_2] : memref<288x64xbf16, #tpu.memory_space<vmem>>, vector<288x64xbf16>
    %cst = arith.constant dense<0.000000e+00> : vector<8x64xf32>
    %2 = tpu.matmul %0, %1, %cst {dimension_numbers = #tpu.dot_dimension_numbers<[1], [0], [0], [1], [0, 0, 1, 1], [], []>} : vector<8x288xbf16>, vector<288x64xbf16>, vector<8x64xf32> -> vector<8x64xf32>
    %c0_3 = arith.constant 0 : index
    %c0_4 = arith.constant 0 : index
    %3 = vector.load %arg3[%c0_3, %c0_4] : memref<1x64xf32, #tpu.memory_space<vmem>>, vector<1x64xf32>
    %4 = vector.broadcast %3 : vector<1x64xf32> to vector<8x64xf32>
    %5 = arith.addf %2, %4 : vector<8x64xf32>
    %cst_5 = arith.constant 0.000000e+00 : f32
    %6 = vector.broadcast %cst_5 : f32 to vector<8x64xf32>
    %7 = arith.maximumf %5, %6 : vector<8x64xf32>
    %c0_6 = arith.constant 0 : index
    %c0_7 = arith.constant 0 : index
    %8 = vector.load %arg4[%c0_6, %c0_7] : memref<8x64xf32, #tpu.memory_space<vmem>>, vector<8x64xf32>
    tpu.vector_store %arg4[%c0_6, %c0_7], %7 {strides = array<i32>} : memref<8x64xf32, #tpu.memory_space<vmem>>, vector<8x64xf32>,
    return
  }
  func.func @transform_0(%arg0: i32) -> (i32, i32) {
    %c0_i32 = arith.constant 0 : i32
    %c0_i32_0 = arith.constant 0 : i32
    return %arg0, %c0_i32 : i32, i32
  }
  func.func @transform_1(%arg0: i32) -> (i32, i32) {
    %c0_i32 = arith.constant 0 : i32
    %c0_i32_0 = arith.constant 0 : i32
    %c0_i32_1 = arith.constant 0 : i32
    return %c0_i32, %c0_i32_0 : i32, i32
  }
  func.func @transform_2(%arg0: i32) -> (i32, i32) {
    %c0_i32 = arith.constant 0 : i32
    %c0_i32_0 = arith.constant 0 : i32
    %c0_i32_1 = arith.constant 0 : i32
    return %c0_i32, %c0_i32_0 : i32, i32
  }
  func.func @transform_3(%arg0: i32) -> (i32, i32) {
    %c0_i32 = arith.constant 0 : i32
    %c0_i32_0 = arith.constant 0 : i32
    return %arg0, %c0_i32 : i32, i32
  }
}

module attributes {stable_mosaic.version = 11 : i64} {
  func.func @_mm_bias_act_kernel(%arg0: i32, %arg1: memref<128x16xbf16, #tpu.memory_space<vmem>>, %arg2: memref<16x8xbf16, #tpu.memory_space<vmem>>, %arg3: memref<1x8xf32, #tpu.memory_space<vmem>>, %arg4: memref<128x8xf32, #tpu.memory_space<vmem>>) attributes {dimension_semantics = [#tpu.dimension_semantics<parallel>], iteration_bounds = array<i64: 1>, scalar_prefetch = 0 : i64, scratch_operands = 0 : i64, tpu.core_type = #tpu.core_type<tc>, window_params = [{transform_indices = @transform_0, window_bounds = array<i64: 128, 16>}, {pipeline_mode = #tpu.pipeline_mode<synchronous>, transform_indices = @transform_1, window_bounds = array<i64: 16, 8>}, {pipeline_mode = #tpu.pipeline_mode<synchronous>, transform_indices = @transform_2, window_bounds = array<i64: 1, 8>}, {transform_indices = @transform_3, window_bounds = array<i64: 128, 8>}]} {
    %c0 = arith.constant 0 : index
    %c0_0 = arith.constant 0 : index
    %0 = vector.load %arg1[%c0, %c0_0] : memref<128x16xbf16, #tpu.memory_space<vmem>>, vector<128x16xbf16>
    %c0_1 = arith.constant 0 : index
    %c0_2 = arith.constant 0 : index
    %1 = vector.load %arg2[%c0_1, %c0_2] : memref<16x8xbf16, #tpu.memory_space<vmem>>, vector<16x8xbf16>
    %cst = arith.constant dense<0.000000e+00> : vector<128x8xf32>
    %2 = tpu.matmul %0, %1, %cst {dimension_numbers = #tpu.dot_dimension_numbers<[1], [0], [0], [1], [0, 0, 1, 1], [], []>} : vector<128x16xbf16>, vector<16x8xbf16>, vector<128x8xf32> -> vector<128x8xf32>
    %c0_3 = arith.constant 0 : index
    %c0_4 = arith.constant 0 : index
    %3 = vector.load %arg3[%c0_3, %c0_4] : memref<1x8xf32, #tpu.memory_space<vmem>>, vector<1x8xf32>
    %4 = vector.broadcast %3 : vector<1x8xf32> to vector<128x8xf32>
    %5 = arith.addf %2, %4 : vector<128x8xf32>
    %c0_5 = arith.constant 0 : index
    %c0_6 = arith.constant 0 : index
    %6 = vector.load %arg4[%c0_5, %c0_6] : memref<128x8xf32, #tpu.memory_space<vmem>>, vector<128x8xf32>
    tpu.vector_store %arg4[%c0_5, %c0_6], %5 {strides = array<i32>} : memref<128x8xf32, #tpu.memory_space<vmem>>, vector<128x8xf32>,
    return
  }
  func.func @transform_0(%arg0: i32) -> (i32, i32) {
    %c0_i32 = arith.constant 0 : i32
    %c0_i32_0 = arith.constant 0 : i32
    return %arg0, %c0_i32 : i32, i32
  }
  func.func @transform_1(%arg0: i32) -> (i32, i32) {
    %c0_i32 = arith.constant 0 : i32
    %c0_i32_0 = arith.constant 0 : i32
    %c0_i32_1 = arith.constant 0 : i32
    return %c0_i32, %c0_i32_0 : i32, i32
  }
  func.func @transform_2(%arg0: i32) -> (i32, i32) {
    %c0_i32 = arith.constant 0 : i32
    %c0_i32_0 = arith.constant 0 : i32
    %c0_i32_1 = arith.constant 0 : i32
    return %c0_i32, %c0_i32_0 : i32, i32
  }
  func.func @transform_3(%arg0: i32) -> (i32, i32) {
    %c0_i32 = arith.constant 0 : i32
    %c0_i32_0 = arith.constant 0 : i32
    return %arg0, %c0_i32 : i32, i32
  }
}

module attributes {stable_mosaic.version = 11 : i64} {
  func.func @_mm_bias_act_kernel(%arg0: i32, %arg1: memref<32x32xbf16, #tpu.memory_space<vmem>>, %arg2: memref<32x8xbf16, #tpu.memory_space<vmem>>, %arg3: memref<1x8xf32, #tpu.memory_space<vmem>>, %arg4: memref<32x8xf32, #tpu.memory_space<vmem>>) attributes {dimension_semantics = [#tpu.dimension_semantics<parallel>], iteration_bounds = array<i64: 1>, scalar_prefetch = 0 : i64, scratch_operands = 0 : i64, tpu.core_type = #tpu.core_type<tc>, window_params = [{transform_indices = @transform_0, window_bounds = array<i64: 32, 32>}, {pipeline_mode = #tpu.pipeline_mode<synchronous>, transform_indices = @transform_1, window_bounds = array<i64: 32, 8>}, {pipeline_mode = #tpu.pipeline_mode<synchronous>, transform_indices = @transform_2, window_bounds = array<i64: 1, 8>}, {transform_indices = @transform_3, window_bounds = array<i64: 32, 8>}]} {
    %c0 = arith.constant 0 : index
    %c0_0 = arith.constant 0 : index
    %0 = vector.load %arg1[%c0, %c0_0] : memref<32x32xbf16, #tpu.memory_space<vmem>>, vector<32x32xbf16>
    %c0_1 = arith.constant 0 : index
    %c0_2 = arith.constant 0 : index
    %1 = vector.load %arg2[%c0_1, %c0_2] : memref<32x8xbf16, #tpu.memory_space<vmem>>, vector<32x8xbf16>
    %cst = arith.constant dense<0.000000e+00> : vector<32x8xf32>
    %2 = tpu.matmul %0, %1, %cst {dimension_numbers = #tpu.dot_dimension_numbers<[1], [0], [0], [1], [0, 0, 1, 1], [], []>} : vector<32x32xbf16>, vector<32x8xbf16>, vector<32x8xf32> -> vector<32x8xf32>
    %c0_3 = arith.constant 0 : index
    %c0_4 = arith.constant 0 : index
    %3 = vector.load %arg3[%c0_3, %c0_4] : memref<1x8xf32, #tpu.memory_space<vmem>>, vector<1x8xf32>
    %4 = vector.broadcast %3 : vector<1x8xf32> to vector<32x8xf32>
    %5 = arith.addf %2, %4 : vector<32x8xf32>
    %c0_5 = arith.constant 0 : index
    %c0_6 = arith.constant 0 : index
    %6 = vector.load %arg4[%c0_5, %c0_6] : memref<32x8xf32, #tpu.memory_space<vmem>>, vector<32x8xf32>
    tpu.vector_store %arg4[%c0_5, %c0_6], %5 {strides = array<i32>} : memref<32x8xf32, #tpu.memory_space<vmem>>, vector<32x8xf32>,
    return
  }
  func.func @transform_0(%arg0: i32) -> (i32, i32) {
    %c0_i32 = arith.constant 0 : i32
    %c0_i32_0 = arith.constant 0 : i32
    return %arg0, %c0_i32 : i32, i32
  }
  func.func @transform_1(%arg0: i32) -> (i32, i32) {
    %c0_i32 = arith.constant 0 : i32
    %c0_i32_0 = arith.constant 0 : i32
    %c0_i32_1 = arith.constant 0 : i32
    return %c0_i32, %c0_i32_0 : i32, i32
  }
  func.func @transform_2(%arg0: i32) -> (i32, i32) {
    %c0_i32 = arith.constant 0 : i32
    %c0_i32_0 = arith.constant 0 : i32
    %c0_i32_1 = arith.constant 0 : i32
    return %c0_i32, %c0_i32_0 : i32, i32
  }
  func.func @transform_3(%arg0: i32) -> (i32, i32) {
    %c0_i32 = arith.constant 0 : i32
    %c0_i32_0 = arith.constant 0 : i32
    return %arg0, %c0_i32 : i32, i32
  }
}

module attributes {stable_mosaic.version = 11 : i64} {
  func.func @_mm_bias_act_kernel(%arg0: i32, %arg1: memref<8x64xbf16, #tpu.memory_space<vmem>>, %arg2: memref<64x8xbf16, #tpu.memory_space<vmem>>, %arg3: memref<1x8xf32, #tpu.memory_space<vmem>>, %arg4: memref<8x8xf32, #tpu.memory_space<vmem>>) attributes {dimension_semantics = [#tpu.dimension_semantics<parallel>], iteration_bounds = array<i64: 1>, scalar_prefetch = 0 : i64, scratch_operands = 0 : i64, tpu.core_type = #tpu.core_type<tc>, window_params = [{transform_indices = @transform_0, window_bounds = array<i64: 8, 64>}, {pipeline_mode = #tpu.pipeline_mode<synchronous>, transform_indices = @transform_1, window_bounds = array<i64: 64, 8>}, {pipeline_mode = #tpu.pipeline_mode<synchronous>, transform_indices = @transform_2, window_bounds = array<i64: 1, 8>}, {transform_indices = @transform_3, window_bounds = array<i64: 8, 8>}]} {
    %c0 = arith.constant 0 : index
    %c0_0 = arith.constant 0 : index
    %0 = vector.load %arg1[%c0, %c0_0] : memref<8x64xbf16, #tpu.memory_space<vmem>>, vector<8x64xbf16>
    %c0_1 = arith.constant 0 : index
    %c0_2 = arith.constant 0 : index
    %1 = vector.load %arg2[%c0_1, %c0_2] : memref<64x8xbf16, #tpu.memory_space<vmem>>, vector<64x8xbf16>
    %cst = arith.constant dense<0.000000e+00> : vector<8x8xf32>
    %2 = tpu.matmul %0, %1, %cst {dimension_numbers = #tpu.dot_dimension_numbers<[1], [0], [0], [1], [0, 0, 1, 1], [], []>} : vector<8x64xbf16>, vector<64x8xbf16>, vector<8x8xf32> -> vector<8x8xf32>
    %c0_3 = arith.constant 0 : index
    %c0_4 = arith.constant 0 : index
    %3 = vector.load %arg3[%c0_3, %c0_4] : memref<1x8xf32, #tpu.memory_space<vmem>>, vector<1x8xf32>
    %4 = vector.broadcast %3 : vector<1x8xf32> to vector<8x8xf32>
    %5 = arith.addf %2, %4 : vector<8x8xf32>
    %c0_5 = arith.constant 0 : index
    %c0_6 = arith.constant 0 : index
    %6 = vector.load %arg4[%c0_5, %c0_6] : memref<8x8xf32, #tpu.memory_space<vmem>>, vector<8x8xf32>
    tpu.vector_store %arg4[%c0_5, %c0_6], %5 {strides = array<i32>} : memref<8x8xf32, #tpu.memory_space<vmem>>, vector<8x8xf32>,
    return
  }
  func.func @transform_0(%arg0: i32) -> (i32, i32) {
    %c0_i32 = arith.constant 0 : i32
    %c0_i32_0 = arith.constant 0 : i32
    return %arg0, %c0_i32 : i32, i32
  }
  func.func @transform_1(%arg0: i32) -> (i32, i32) {
    %c0_i32 = arith.constant 0 : i32
    %c0_i32_0 = arith.constant 0 : i32
    %c0_i32_1 = arith.constant 0 : i32
    return %c0_i32, %c0_i32_0 : i32, i32
  }
  func.func @transform_2(%arg0: i32) -> (i32, i32) {
    %c0_i32 = arith.constant 0 : i32
    %c0_i32_0 = arith.constant 0 : i32
    %c0_i32_1 = arith.constant 0 : i32
    return %c0_i32, %c0_i32_0 : i32, i32
  }
  func.func @transform_3(%arg0: i32) -> (i32, i32) {
    %c0_i32 = arith.constant 0 : i32
    %c0_i32_0 = arith.constant 0 : i32
    return %arg0, %c0_i32 : i32, i32
  }
}

module attributes {stable_mosaic.version = 11 : i64} {
  func.func @_mm_bias_act_kernel(%arg0: i32, %arg1: memref<256x8xbf16, #tpu.memory_space<vmem>>, %arg2: memref<8x8xbf16, #tpu.memory_space<vmem>>, %arg3: memref<1x8xf32, #tpu.memory_space<vmem>>, %arg4: memref<256x8xf32, #tpu.memory_space<vmem>>) attributes {dimension_semantics = [#tpu.dimension_semantics<parallel>], iteration_bounds = array<i64: 2>, scalar_prefetch = 0 : i64, scratch_operands = 0 : i64, tpu.core_type = #tpu.core_type<tc>, window_params = [{transform_indices = @transform_0, window_bounds = array<i64: 256, 8>}, {pipeline_mode = #tpu.pipeline_mode<synchronous>, transform_indices = @transform_1, window_bounds = array<i64: 8, 8>}, {pipeline_mode = #tpu.pipeline_mode<synchronous>, transform_indices = @transform_2, window_bounds = array<i64: 1, 8>}, {transform_indices = @transform_3, window_bounds = array<i64: 256, 8>}]} {
    %c0 = arith.constant 0 : index
    %c0_0 = arith.constant 0 : index
    %0 = vector.load %arg1[%c0, %c0_0] : memref<256x8xbf16, #tpu.memory_space<vmem>>, vector<256x8xbf16>
    %c0_1 = arith.constant 0 : index
    %c0_2 = arith.constant 0 : index
    %1 = vector.load %arg2[%c0_1, %c0_2] : memref<8x8xbf16, #tpu.memory_space<vmem>>, vector<8x8xbf16>
    %cst = arith.constant dense<0.000000e+00> : vector<256x8xf32>
    %2 = tpu.matmul %0, %1, %cst {dimension_numbers = #tpu.dot_dimension_numbers<[1], [0], [0], [1], [0, 0, 1, 1], [], []>} : vector<256x8xbf16>, vector<8x8xbf16>, vector<256x8xf32> -> vector<256x8xf32>
    %c0_3 = arith.constant 0 : index
    %c0_4 = arith.constant 0 : index
    %3 = vector.load %arg3[%c0_3, %c0_4] : memref<1x8xf32, #tpu.memory_space<vmem>>, vector<1x8xf32>
    %4 = vector.broadcast %3 : vector<1x8xf32> to vector<256x8xf32>
    %5 = arith.addf %2, %4 : vector<256x8xf32>
    %c0_5 = arith.constant 0 : index
    %c0_6 = arith.constant 0 : index
    %6 = vector.load %arg4[%c0_5, %c0_6] : memref<256x8xf32, #tpu.memory_space<vmem>>, vector<256x8xf32>
    tpu.vector_store %arg4[%c0_5, %c0_6], %5 {strides = array<i32>} : memref<256x8xf32, #tpu.memory_space<vmem>>, vector<256x8xf32>,
    return
  }
  func.func @transform_0(%arg0: i32) -> (i32, i32) {
    %c0_i32 = arith.constant 0 : i32
    %c0_i32_0 = arith.constant 0 : i32
    return %arg0, %c0_i32 : i32, i32
  }
  func.func @transform_1(%arg0: i32) -> (i32, i32) {
    %c0_i32 = arith.constant 0 : i32
    %c0_i32_0 = arith.constant 0 : i32
    %c0_i32_1 = arith.constant 0 : i32
    return %c0_i32, %c0_i32_0 : i32, i32
  }
  func.func @transform_2(%arg0: i32) -> (i32, i32) {
    %c0_i32 = arith.constant 0 : i32
    %c0_i32_0 = arith.constant 0 : i32
    %c0_i32_1 = arith.constant 0 : i32
    return %c0_i32, %c0_i32_0 : i32, i32
  }
  func.func @transform_3(%arg0: i32) -> (i32, i32) {
    %c0_i32 = arith.constant 0 : i32
    %c0_i32_0 = arith.constant 0 : i32
    return %arg0, %c0_i32 : i32, i32
  }
}

module attributes {stable_mosaic.version = 11 : i64} {
  func.func @_mm_bias_act_kernel(%arg0: i32, %arg1: memref<256x72xbf16, #tpu.memory_space<vmem>>, %arg2: memref<72x8xbf16, #tpu.memory_space<vmem>>, %arg3: memref<1x8xf32, #tpu.memory_space<vmem>>, %arg4: memref<256x8xf32, #tpu.memory_space<vmem>>) attributes {dimension_semantics = [#tpu.dimension_semantics<parallel>], iteration_bounds = array<i64: 2>, scalar_prefetch = 0 : i64, scratch_operands = 0 : i64, tpu.core_type = #tpu.core_type<tc>, window_params = [{transform_indices = @transform_0, window_bounds = array<i64: 256, 72>}, {pipeline_mode = #tpu.pipeline_mode<synchronous>, transform_indices = @transform_1, window_bounds = array<i64: 72, 8>}, {pipeline_mode = #tpu.pipeline_mode<synchronous>, transform_indices = @transform_2, window_bounds = array<i64: 1, 8>}, {transform_indices = @transform_3, window_bounds = array<i64: 256, 8>}]} {
    %c0 = arith.constant 0 : index
    %c0_0 = arith.constant 0 : index
    %0 = vector.load %arg1[%c0, %c0_0] : memref<256x72xbf16, #tpu.memory_space<vmem>>, vector<256x72xbf16>
    %c0_1 = arith.constant 0 : index
    %c0_2 = arith.constant 0 : index
    %1 = vector.load %arg2[%c0_1, %c0_2] : memref<72x8xbf16, #tpu.memory_space<vmem>>, vector<72x8xbf16>
    %cst = arith.constant dense<0.000000e+00> : vector<256x8xf32>
    %2 = tpu.matmul %0, %1, %cst {dimension_numbers = #tpu.dot_dimension_numbers<[1], [0], [0], [1], [0, 0, 1, 1], [], []>} : vector<256x72xbf16>, vector<72x8xbf16>, vector<256x8xf32> -> vector<256x8xf32>
    %c0_3 = arith.constant 0 : index
    %c0_4 = arith.constant 0 : index
    %3 = vector.load %arg3[%c0_3, %c0_4] : memref<1x8xf32, #tpu.memory_space<vmem>>, vector<1x8xf32>
    %4 = vector.broadcast %3 : vector<1x8xf32> to vector<256x8xf32>
    %5 = arith.addf %2, %4 : vector<256x8xf32>
    %c0_5 = arith.constant 0 : index
    %c0_6 = arith.constant 0 : index
    %6 = vector.load %arg4[%c0_5, %c0_6] : memref<256x8xf32, #tpu.memory_space<vmem>>, vector<256x8xf32>
    tpu.vector_store %arg4[%c0_5, %c0_6], %5 {strides = array<i32>} : memref<256x8xf32, #tpu.memory_space<vmem>>, vector<256x8xf32>,
    return
  }
  func.func @transform_0(%arg0: i32) -> (i32, i32) {
    %c0_i32 = arith.constant 0 : i32
    %c0_i32_0 = arith.constant 0 : i32
    return %arg0, %c0_i32 : i32, i32
  }
  func.func @transform_1(%arg0: i32) -> (i32, i32) {
    %c0_i32 = arith.constant 0 : i32
    %c0_i32_0 = arith.constant 0 : i32
    %c0_i32_1 = arith.constant 0 : i32
    return %c0_i32, %c0_i32_0 : i32, i32
  }
  func.func @transform_2(%arg0: i32) -> (i32, i32) {
    %c0_i32 = arith.constant 0 : i32
    %c0_i32_0 = arith.constant 0 : i32
    %c0_i32_1 = arith.constant 0 : i32
    return %c0_i32, %c0_i32_0 : i32, i32
  }
  func.func @transform_3(%arg0: i32) -> (i32, i32) {
    %c0_i32 = arith.constant 0 : i32
    %c0_i32_0 = arith.constant 0 : i32
    return %arg0, %c0_i32 : i32, i32
  }
}

module attributes {stable_mosaic.version = 11 : i64} {
  func.func @_mm_bias_act_kernel(%arg0: i32, %arg1: memref<32x288xbf16, #tpu.memory_space<vmem>>, %arg2: memref<288x32xbf16, #tpu.memory_space<vmem>>, %arg3: memref<1x32xf32, #tpu.memory_space<vmem>>, %arg4: memref<32x32xf32, #tpu.memory_space<vmem>>) attributes {dimension_semantics = [#tpu.dimension_semantics<parallel>], iteration_bounds = array<i64: 1>, scalar_prefetch = 0 : i64, scratch_operands = 0 : i64, tpu.core_type = #tpu.core_type<tc>, window_params = [{transform_indices = @transform_0, window_bounds = array<i64: 32, 288>}, {pipeline_mode = #tpu.pipeline_mode<synchronous>, transform_indices = @transform_1, window_bounds = array<i64: 288, 32>}, {pipeline_mode = #tpu.pipeline_mode<synchronous>, transform_indices = @transform_2, window_bounds = array<i64: 1, 32>}, {transform_indices = @transform_3, window_bounds = array<i64: 32, 32>}]} {
    %c0 = arith.constant 0 : index
    %c0_0 = arith.constant 0 : index
    %0 = vector.load %arg1[%c0, %c0_0] : memref<32x288xbf16, #tpu.memory_space<vmem>>, vector<32x288xbf16>
    %c0_1 = arith.constant 0 : index
    %c0_2 = arith.constant 0 : index
    %1 = vector.load %arg2[%c0_1, %c0_2] : memref<288x32xbf16, #tpu.memory_space<vmem>>, vector<288x32xbf16>
    %cst = arith.constant dense<0.000000e+00> : vector<32x32xf32>
    %2 = tpu.matmul %0, %1, %cst {dimension_numbers = #tpu.dot_dimension_numbers<[1], [0], [0], [1], [0, 0, 1, 1], [], []>} : vector<32x288xbf16>, vector<288x32xbf16>, vector<32x32xf32> -> vector<32x32xf32>
    %c0_3 = arith.constant 0 : index
    %c0_4 = arith.constant 0 : index
    %3 = vector.load %arg3[%c0_3, %c0_4] : memref<1x32xf32, #tpu.memory_space<vmem>>, vector<1x32xf32>
    %4 = vector.broadcast %3 : vector<1x32xf32> to vector<32x32xf32>
    %5 = arith.addf %2, %4 : vector<32x32xf32>
    %cst_5 = arith.constant 0.000000e+00 : f32
    %6 = vector.broadcast %cst_5 : f32 to vector<32x32xf32>
    %7 = arith.maximumf %5, %6 : vector<32x32xf32>
    %c0_6 = arith.constant 0 : index
    %c0_7 = arith.constant 0 : index
    %8 = vector.load %arg4[%c0_6, %c0_7] : memref<32x32xf32, #tpu.memory_space<vmem>>, vector<32x32xf32>
    tpu.vector_store %arg4[%c0_6, %c0_7], %7 {strides = array<i32>} : memref<32x32xf32, #tpu.memory_space<vmem>>, vector<32x32xf32>,
    return
  }
  func.func @transform_0(%arg0: i32) -> (i32, i32) {
    %c0_i32 = arith.constant 0 : i32
    %c0_i32_0 = arith.constant 0 : i32
    return %arg0, %c0_i32 : i32, i32
  }
  func.func @transform_1(%arg0: i32) -> (i32, i32) {
    %c0_i32 = arith.constant 0 : i32
    %c0_i32_0 = arith.constant 0 : i32
    %c0_i32_1 = arith.constant 0 : i32
    return %c0_i32, %c0_i32_0 : i32, i32
  }
  func.func @transform_2(%arg0: i32) -> (i32, i32) {
    %c0_i32 = arith.constant 0 : i32
    %c0_i32_0 = arith.constant 0 : i32
    %c0_i32_1 = arith.constant 0 : i32
    return %c0_i32, %c0_i32_0 : i32, i32
  }
  func.func @transform_3(%arg0: i32) -> (i32, i32) {
    %c0_i32 = arith.constant 0 : i32
    %c0_i32_0 = arith.constant 0 : i32
    return %arg0, %c0_i32 : i32, i32
  }
}

module attributes {stable_mosaic.version = 11 : i64} {
  func.func @_decoder_kernel(%arg0: memref<16x1xi32, #tpu.memory_space<vmem>>, %arg1: memref<16x1xf32, #tpu.memory_space<vmem>>, %arg2: memref<32x32xf32, #tpu.memory_space<vmem>>, %arg3: memref<16x32xf32, #tpu.memory_space<vmem>>, %arg4: memref<32x32xf32, #tpu.memory_space<vmem>>, %arg5: memref<32x64xf32, #tpu.memory_space<vmem>>, %arg6: memref<32x16xf32, #tpu.memory_space<vmem>>, %arg7: memref<1x16xf32, #tpu.memory_space<vmem>>, %arg8: memref<16x16xf32, #tpu.memory_space<vmem>>, %arg9: memref<1x1xf32, #tpu.memory_space<vmem>>) attributes {dimension_semantics = [], scalar_prefetch = 0 : i64, scratch_operands = 0 : i64, tpu.core_type = #tpu.core_type<tc>} {
    %c0 = arith.constant 0 : index
    %c0_0 = arith.constant 0 : index
    %0 = vector.load %arg0[%c0, %c0_0] : memref<16x1xi32, #tpu.memory_space<vmem>>, vector<16x1xi32>
    %1 = tpu.iota {dimensions = array<i32: 1>} : vector<16x16xi32>
    %2 = vector.broadcast %0 : vector<16x1xi32> to vector<16x16xi32>
    %3 = arith.cmpi eq, %1, %2 : vector<16x16xi32>
    %4 = arith.extui %3 : vector<16x16xi1> to vector<16x16xi32>
    %5 = arith.sitofp %4 : vector<16x16xi32> to vector<16x16xf32>
    %c0_1 = arith.constant 0 : index
    %c0_2 = arith.constant 0 : index
    %6 = vector.load %arg3[%c0_1, %c0_2] : memref<16x32xf32, #tpu.memory_space<vmem>>, vector<16x32xf32>
    %cst = arith.constant dense<0.000000e+00> : vector<16x32xf32>
    %7 = tpu.matmul %5, %6, %cst {dimension_numbers = #tpu.dot_dimension_numbers<[1], [0], [0], [1], [0, 0, 1, 1], [], []>} : vector<16x16xf32>, vector<16x32xf32>, vector<16x32xf32> -> vector<16x32xf32>
    %c0_3 = arith.constant 0 : index
    %c0_4 = arith.constant 0 : index
    %8 = vector.load %arg4[%c0_3, %c0_4] : memref<32x32xf32, #tpu.memory_space<vmem>>, vector<32x32xf32>
    %cst_5 = arith.constant dense<0.000000e+00> : vector<16x32xf32>
    %9 = tpu.matmul %7, %8, %cst_5 {dimension_numbers = #tpu.dot_dimension_numbers<[1], [0], [0], [1], [0, 0, 1, 1], [], []>} : vector<16x32xf32>, vector<32x32xf32>, vector<16x32xf32> -> vector<16x32xf32>
    %c0_6 = arith.constant 0 : index
    %c0_7 = arith.constant 0 : index
    %10 = vector.load %arg2[%c0_6, %c0_7] : memref<32x32xf32, #tpu.memory_space<vmem>>, vector<32x32xf32>
    %c0_8 = arith.constant 0 : index
    %c0_9 = arith.constant 0 : index
    %11 = vector.load %arg5[%c0_8, %c0_9] : memref<32x64xf32, #tpu.memory_space<vmem>>, vector<32x64xf32>
    %cst_10 = arith.constant dense<0.000000e+00> : vector<32x64xf32>
    %12 = tpu.matmul %10, %11, %cst_10 {dimension_numbers = #tpu.dot_dimension_numbers<[1], [0], [0], [1], [0, 0, 1, 1], [], []>} : vector<32x32xf32>, vector<32x64xf32>, vector<32x64xf32> -> vector<32x64xf32>
    %13 = vector.extract_strided_slice %12 {offsets = [0, 0], sizes = [32, 32], strides = [1, 1]} : vector<32x64xf32> to vector<32x32xf32>
    %14 = vector.extract_strided_slice %12 {offsets = [0, 32], sizes = [32, 32], strides = [1, 1]} : vector<32x64xf32> to vector<32x32xf32>
    %15 = vector.extract_strided_slice %9 {offsets = [0, 0], sizes = [8, 32], strides = [1, 1]} : vector<16x32xf32> to vector<8x32xf32>
    %16 = vector.extract_strided_slice %13 {offsets = [0, 0], sizes = [16, 32], strides = [1, 1]} : vector<32x32xf32> to vector<16x32xf32>
    %17 = vector.extract_strided_slice %14 {offsets = [0, 0], sizes = [16, 32], strides = [1, 1]} : vector<32x32xf32> to vector<16x32xf32>
    %cst_11 = arith.constant dense<0.000000e+00> : vector<8x16xf32>
    %18 = tpu.matmul %15, %16, %cst_11 {dimension_numbers = #tpu.dot_dimension_numbers<[1], [1], [0], [0], [0, 0, 1, 0], [], []>} : vector<8x32xf32>, vector<16x32xf32>, vector<8x16xf32> -> vector<8x16xf32>
    %cst_12 = arith.constant 0.176776692 : f32
    %19 = vector.broadcast %cst_12 : f32 to vector<8x16xf32>
    %20 = arith.mulf %18, %19 : vector<8x16xf32>
    %cst_13 = arith.constant dense<0xFF800000> : vector<8xf32>
    %21 = vector.multi_reduction <maximumf>, %20, %cst_13 [1] : vector<8x16xf32> to vector<8xf32>
    %22 = vector.shape_cast %21 : vector<8xf32> to vector<8x1xf32>
    %23 = vector.broadcast %22 : vector<8x1xf32> to vector<8x16xf32>
    %24 = arith.subf %20, %23 : vector<8x16xf32>
    %25 = math.exp %24 : vector<8x16xf32>
    %cst_14 = arith.constant dense<0.000000e+00> : vector<8xf32>
    %26 = vector.multi_reduction <add>, %25, %cst_14 [1] : vector<8x16xf32> to vector<8xf32>
    %27 = vector.shape_cast %26 : vector<8xf32> to vector<8x1xf32>
    %28 = vector.broadcast %27 : vector<8x1xf32> to vector<8x16xf32>
    %29 = arith.divf %25, %28 : vector<8x16xf32>
    %cst_15 = arith.constant dense<0.000000e+00> : vector<8x32xf32>
    %30 = tpu.matmul %29, %17, %cst_15 {dimension_numbers = #tpu.dot_dimension_numbers<[1], [0], [0], [1], [0, 0, 1, 1], [], []>} : vector<8x16xf32>, vector<16x32xf32>, vector<8x32xf32> -> vector<8x32xf32>
    %31 = arith.addf %30, %15 : vector<8x32xf32>
    %cst_16 = arith.constant 0.000000e+00 : f32
    %32 = vector.broadcast %cst_16 : f32 to vector<8x32xf32>
    %33 = arith.maximumf %31, %32 : vector<8x32xf32>
    %34 = vector.extract_strided_slice %9 {offsets = [8, 0], sizes = [8, 32], strides = [1, 1]} : vector<16x32xf32> to vector<8x32xf32>
    %35 = vector.extract_strided_slice %13 {offsets = [16, 0], sizes = [16, 32], strides = [1, 1]} : vector<32x32xf32> to vector<16x32xf32>
    %36 = vector.extract_strided_slice %14 {offsets = [16, 0], sizes = [16, 32], strides = [1, 1]} : vector<32x32xf32> to vector<16x32xf32>
    %cst_17 = arith.constant dense<0.000000e+00> : vector<8x16xf32>
    %37 = tpu.matmul %34, %35, %cst_17 {dimension_numbers = #tpu.dot_dimension_numbers<[1], [1], [0], [0], [0, 0, 1, 0], [], []>} : vector<8x32xf32>, vector<16x32xf32>, vector<8x16xf32> -> vector<8x16xf32>
    %cst_18 = arith.constant 0.176776692 : f32
    %38 = vector.broadcast %cst_18 : f32 to vector<8x16xf32>
    %39 = arith.mulf %37, %38 : vector<8x16xf32>
    %cst_19 = arith.constant dense<0xFF800000> : vector<8xf32>
    %40 = vector.multi_reduction <maximumf>, %39, %cst_19 [1] : vector<8x16xf32> to vector<8xf32>
    %41 = vector.shape_cast %40 : vector<8xf32> to vector<8x1xf32>
    %42 = vector.broadcast %41 : vector<8x1xf32> to vector<8x16xf32>
    %43 = arith.subf %39, %42 : vector<8x16xf32>
    %44 = math.exp %43 : vector<8x16xf32>
    %cst_20 = arith.constant dense<0.000000e+00> : vector<8xf32>
    %45 = vector.multi_reduction <add>, %44, %cst_20 [1] : vector<8x16xf32> to vector<8xf32>
    %46 = vector.shape_cast %45 : vector<8xf32> to vector<8x1xf32>
    %47 = vector.broadcast %46 : vector<8x1xf32> to vector<8x16xf32>
    %48 = arith.divf %44, %47 : vector<8x16xf32>
    %cst_21 = arith.constant dense<0.000000e+00> : vector<8x32xf32>
    %49 = tpu.matmul %48, %36, %cst_21 {dimension_numbers = #tpu.dot_dimension_numbers<[1], [0], [0], [1], [0, 0, 1, 1], [], []>} : vector<8x16xf32>, vector<16x32xf32>, vector<8x32xf32> -> vector<8x32xf32>
    %50 = arith.addf %49, %34 : vector<8x32xf32>
    %cst_22 = arith.constant 0.000000e+00 : f32
    %51 = vector.broadcast %cst_22 : f32 to vector<8x32xf32>
    %52 = arith.maximumf %50, %51 : vector<8x32xf32>
    %53 = tpu.concatenate %33, %52 in 0 : vector<8x32xf32>, vector<8x32xf32> -> vector<16x32xf32>
    %c0_23 = arith.constant 0 : index
    %c0_24 = arith.constant 0 : index
    %54 = vector.load %arg6[%c0_23, %c0_24] : memref<32x16xf32, #tpu.memory_space<vmem>>, vector<32x16xf32>
    %cst_25 = arith.constant dense<0.000000e+00> : vector<16x16xf32>
    %55 = tpu.matmul %53, %54, %cst_25 {dimension_numbers = #tpu.dot_dimension_numbers<[1], [0], [0], [1], [0, 0, 1, 1], [], []>} : vector<16x32xf32>, vector<32x16xf32>, vector<16x16xf32> -> vector<16x16xf32>
    %c0_26 = arith.constant 0 : index
    %c0_27 = arith.constant 0 : index
    %56 = vector.load %arg7[%c0_26, %c0_27] : memref<1x16xf32, #tpu.memory_space<vmem>>, vector<1x16xf32>
    %57 = vector.broadcast %56 : vector<1x16xf32> to vector<16x16xf32>
    %58 = arith.addf %55, %57 : vector<16x16xf32>
    %c0_28 = arith.constant 0 : index
    %c0_29 = arith.constant 0 : index
    %59 = vector.load %arg8[%c0_28, %c0_29] : memref<16x16xf32, #tpu.memory_space<vmem>>, vector<16x16xf32>
    tpu.vector_store %arg8[%c0_28, %c0_29], %58 {strides = array<i32>} : memref<16x16xf32, #tpu.memory_space<vmem>>, vector<16x16xf32>,
    %cst_30 = arith.constant dense<0xFF800000> : vector<16xf32>
    %60 = vector.multi_reduction <maximumf>, %58, %cst_30 [1] : vector<16x16xf32> to vector<16xf32>
    %61 = vector.shape_cast %60 : vector<16xf32> to vector<16x1xf32>
    %62 = vector.broadcast %61 : vector<16x1xf32> to vector<16x16xf32>
    %63 = arith.subf %58, %62 : vector<16x16xf32>
    %64 = math.exp %63 : vector<16x16xf32>
    %cst_31 = arith.constant dense<0.000000e+00> : vector<16xf32>
    %65 = vector.multi_reduction <add>, %64, %cst_31 [1] : vector<16x16xf32> to vector<16xf32>
    %66 = vector.shape_cast %65 : vector<16xf32> to vector<16x1xf32>
    %67 = math.log %66 : vector<16x1xf32>
    %68 = arith.addf %61, %67 : vector<16x1xf32>
    %69 = arith.mulf %58, %5 : vector<16x16xf32>
    %cst_32 = arith.constant dense<0.000000e+00> : vector<16xf32>
    %70 = vector.multi_reduction <add>, %69, %cst_32 [1] : vector<16x16xf32> to vector<16xf32>
    %71 = vector.shape_cast %70 : vector<16xf32> to vector<16x1xf32>
    %72 = arith.subf %68, %71 : vector<16x1xf32>
    %c0_33 = arith.constant 0 : index
    %c0_34 = arith.constant 0 : index
    %73 = vector.load %arg1[%c0_33, %c0_34] : memref<16x1xf32, #tpu.memory_space<vmem>>, vector<16x1xf32>
    %74 = arith.mulf %72, %73 : vector<16x1xf32>
    %cst_35 = arith.constant dense<0.000000e+00> : vector<1xf32>
    %75 = vector.multi_reduction <add>, %74, %cst_35 [0] : vector<16x1xf32> to vector<1xf32>
    %76 = vector.shape_cast %75 : vector<1xf32> to vector<1x1xf32>
    %cst_36 = arith.constant 5.000000e-01 : f32
    %77 = vector.broadcast %cst_36 : f32 to vector<1x1xf32>
    %78 = arith.mulf %76, %77 : vector<1x1xf32>
    %c0_37 = arith.constant 0 : index
    %c0_38 = arith.constant 0 : index
    %79 = vector.load %arg9[%c0_37, %c0_38] : memref<1x1xf32, #tpu.memory_space<vmem>>, vector<1x1xf32>
    tpu.vector_store %arg9[%c0_37, %c0_38], %78 {strides = array<i32>} : memref<1x1xf32, #tpu.memory_space<vmem>>, vector<1x1xf32>,
    return
  }
}

</mosaic_0001>

<bundles_post_ra>
// kernel: forward.13
= control target key start
LH: loop header
LB: loop body
LE: loop exit
PB: predicated region body
PF: predicated region fallthrough
CT: control target
= control target key end

     0   :  { %s1255_s12 = smov 0   ;;  %s1547_s0 = inlined_call_operand.vmem [shape: bf16[2048,27], index: 0, kind: input, shape index: {}]   ;;  %s1548_s1 = inlined_call_operand.vmem [shape: bf16[27,8], index: 1, kind: input, shape index: {}]   ;;  %s1549_s2 = inlined_call_operand.vmem [shape: f32[1,8], index: 2, kind: input, shape index: {}]   ;;  %s1550_s3 = inlined_call_operand.vmem [shape: f32[2048,8], index: 3, kind: output, shape index: {}]  }
   0x1 LB: > { %s999_s13 = sadd.s32 4294967295, %s1232_s12   ;;  %p1003_p0 = scmp.ge.s32.totalorder %s1232_s12, 1  ;;  %s1232_s12 = sphi %s1255_s12, %s13_s12  }
   0x2   : > { %p138_p1 = scmp.lt.s32.totalorder %s1232_s12, 5 }
   0x4   : > { %p139_p2 = pnand %p1003_p0, %p138_p1 }
   0x5   : > { %s1004_s16 = sshll.u32 (!%p139_p2), %s999_s13, 6 }
   0x6   : > { %142 = sbr.rel (%p139_p2) target bundleno = 284 (0x11c), region = 32  ;;  %p163_p3 = scmp.lt.s32.totalorder (!%p139_p2), %s1004_s16, 255 }
   0xb   : > { %v1192_v0 = vld [vmem:[%s1548_s1 + $0x8] sm:$0x3f]   ;;  %vm518_vm0 = vcmask 1044480   ;;  %vm519_vm1 = vcmask 1045504   ;;  %v1234_v1 = vmov 65535   ;;  %v1193_v5 = vld [vmem:[%s1548_s1] sm:$0xff]  }
   0xc   : > { %v520_v2 = vsel %vm518_vm0, 4294967295, %v1234_v1  ;;  %s1552_s16 = smov (!%p163_p3, %s1004_s16), 255  ;;  %vm421_vm2 = vcmask 220160   ;;  %v1344_v38 = vld [vmem:[%s1549_s2] ss:$0 sm:$0xff]  ;;  %vm878_vm3 = vcmask 64512  }
   0xd   : > { %v521_v3 = vsel %vm519_vm1, %v520_v2, 0  ;;  %s1005_s19 = sshll.u32 %s1552_s16, 2  ;;  %s1007_s25 = sshll.u32 %s1552_s16, 3 }
   0xe   : > { %v523_v4 = vand.u32 %v1192_v0, %v521_v3  ;;  %s1275_s22 = scalar_lea.vmem %s1547_s0, %s1005_s19  ;;  %s1352_s28 = scalar_lea.vmem %s1550_s3, %s1007_s25 }
   0xf   : > { %v1194_v6 = vld [vmem:[%s1275_s22] sm:$0xff]   ;;  %v1196_v8 = vld [vmem:[%s1275_s22 + $0x8] sm:$0xff]   ;;  %v1198_v10 = vld [vmem:[%s1275_s22 + $0x10] sm:$0xff]  }
  0x10   : > { %1111 = vmatprep.subr.bf16.mxu0 %v523_v4  ;;  %1179 = vmatprep.subr.bf16.mxu1 %v523_v4  ;;  %v1195_v7 = vld [vmem:[%s1275_s22 + $0x80] sm:$0xff]   ;;  %v1197_v9 = vld [vmem:[%s1275_s22 + $0x88] sm:$0xff]   ;;  %v1199_v11 = vld [vmem:[%s1275_s22 + $0x90] sm:$0xff]  }
  0x11   : > { %1112 = vmatpush3.bf16.msra.mxu0 %v523_v4  ;;  %1181 = vmatpush3.bf16.msra.mxu1 %v523_v4  ;;  %v1200_v12 = vld [vmem:[%s1275_s22 + $0x18] sm:$0xff]   ;;  %v1202_v14 = vld [vmem:[%s1275_s22 + $0x20] sm:$0xff]   ;;  %v1204_v16 = vld [vmem:[%s1275_s22 + $0x28] sm:$0xff]  }
  0x12   : > { %1113 = vmatprep.subr.bf16.mxu0 %v1193_v5  ;;  %1180 = vmatprep.subr.bf16.mxu1 %v1193_v5  ;;  %v1201_v13 = vld [vmem:[%s1275_s22 + $0x98] sm:$0xff]   ;;  %v1203_v15 = vld [vmem:[%s1275_s22 + $0xa0] sm:$0xff]   ;;  %v1205_v17 = vld [vmem:[%s1275_s22 + $0xa8] sm:$0xff]  }
  0x13   : > { %1115 = vmatprep.mubr.msk.bf16.mxu0 %vm421_vm2, %v1194_v6  ;;  %1147 = vmatprep.mubr.msk.bf16.mxu1 %vm421_vm2, %v1195_v7  ;;  %v1206_v18 = vld [vmem:[%s1275_s22 + $0x30] sm:$0xff]   ;;  %v1208_v20 = vld [vmem:[%s1275_s22 + $0x38] sm:$0xff]   ;;  %v1210_v22 = vld [vmem:[%s1275_s22 + $0x40] sm:$0xff]  }
  0x14   : > { %v1207_v19 = vld [vmem:[%s1275_s22 + $0xb0] sm:$0xff]   ;;  %v1209_v21 = vld [vmem:[%s1275_s22 + $0xb8] sm:$0xff]   ;;  %v1211_v23 = vld [vmem:[%s1275_s22 + $0xc0] sm:$0xff]  }
  0x15   : > { %1114 = vmatpush3.bf16.msra.mxu0 %v1193_v5  ;;  %1182 = vmatpush3.bf16.msra.mxu1 %v1193_v5  ;;  %v1212_v24 = vld [vmem:[%s1275_s22 + $0x48] sm:$0xff]   ;;  %v1214_v26 = vld [vmem:[%s1275_s22 + $0x50] sm:$0xff]   ;;  %v1216_v28 = vld [vmem:[%s1275_s22 + $0x58] sm:$0xff]  }
  0x16   : > { %v1213_v25 = vld [vmem:[%s1275_s22 + $0xc8] sm:$0xff]   ;;  %v1215_v27 = vld [vmem:[%s1275_s22 + $0xd0] sm:$0xff]   ;;  %v1217_v29 = vld [vmem:[%s1275_s22 + $0xd8] sm:$0xff]  }
  0x17   : > { %v1218_v30 = vld [vmem:[%s1275_s22 + $0x60] sm:$0xff]   ;;  %v1220_v32 = vld [vmem:[%s1275_s22 + $0x68] sm:$0xff]   ;;  %v1222_v34 = vld [vmem:[%s1275_s22 + $0x70] sm:$0xff]  }
  0x18   : > { %1116 = vmatmul.mubr.msk.bf16.vlgmr.msra.gmra.mxu0 %vm421_vm2, %v1196_v8  ;;  %1148 = vmatmul.mubr.msk.bf16.vlgmr.msra.gmra.mxu1 %vm421_vm2, %v1197_v9  ;;  %v1219_v31 = vld [vmem:[%s1275_s22 + $0xe0] sm:$0xff]   ;;  %v1221_v33 = vld [vmem:[%s1275_s22 + $0xe8] sm:$0xff]   ;;  %v1223_v35 = vld [vmem:[%s1275_s22 + $0xf0] sm:$0xff]  }
  0x19   : > { %1119 = vmatprep.mubr.msk.bf16.mxu0 %vm421_vm2, %v1198_v10  ;;  %1151 = vmatprep.mubr.msk.bf16.mxu1 %vm421_vm2, %v1199_v11  ;;  %v1224_v36 = vld [vmem:[%s1275_s22 + $0x78] sm:$0xff]  }
  0x1a   : > { %v1225_v37 = vld [vmem:[%s1275_s22 + $0xf8] sm:$0xff]  }
  0x20   : > { %1120 = vmatmul.mubr.msk.bf16.gmra.mxu0 %vm421_vm2, %v1200_v12  ;;  %1152 = vmatmul.mubr.msk.bf16.gmra.mxu1 %vm421_vm2, %v1201_v13 }
  0x21   : > { %1123 = vmatprep.mubr.msk.bf16.mxu0 %vm421_vm2, %v1202_v14  ;;  %1155 = vmatprep.mubr.msk.bf16.mxu1 %vm421_vm2, %v1203_v15 }
  0x28   : > { %1124 = vmatmul.mubr.msk.bf16.gmra.mxu0 %vm421_vm2, %v1204_v16  ;;  %1156 = vmatmul.mubr.msk.bf16.gmra.mxu1 %vm421_vm2, %v1205_v17 }
  0x29   : > { %1127 = vmatprep.mubr.msk.bf16.mxu0 %vm421_vm2, %v1206_v18  ;;  %1159 = vmatprep.mubr.msk.bf16.mxu1 %vm421_vm2, %v1207_v19 }
  0x30   : > { %1128 = vmatmul.mubr.msk.bf16.gmra.mxu0 %vm421_vm2, %v1208_v20  ;;  %1160 = vmatmul.mubr.msk.bf16.gmra.mxu1 %vm421_vm2, %v1209_v21 }
  0x31   : > { %1131 = vmatprep.mubr.msk.bf16.mxu0 %vm421_vm2, %v1210_v22  ;;  %1163 = vmatprep.mubr.msk.bf16.mxu1 %vm421_vm2, %v1211_v23 }
  0x38   : > { %1132 = vmatmul.mubr.msk.bf16.gmra.mxu0 %vm421_vm2, %v1212_v24  ;;  %1164 = vmatmul.mubr.msk.bf16.gmra.mxu1 %vm421_vm2, %v1213_v25 }
  0x39   : > { %1135 = vmatprep.mubr.msk.bf16.mxu0 %vm421_vm2, %v1214_v26  ;;  %1167 = vmatprep.mubr.msk.bf16.mxu1 %vm421_vm2, %v1215_v27 }
  0x40   : > { %1136 = vmatmul.mubr.msk.bf16.gmra.mxu0 %vm421_vm2, %v1216_v28  ;;  %1168 = vmatmul.mubr.msk.bf16.gmra.mxu1 %vm421_vm2, %v1217_v29 }
  0x41   : > { %1139 = vmatprep.mubr.msk.bf16.mxu0 %vm421_vm2, %v1218_v30  ;;  %1171 = vmatprep.mubr.msk.bf16.mxu1 %vm421_vm2, %v1219_v31 }
  0x48   : > { %1140 = vmatmul.mubr.msk.bf16.gmra.mxu0 %vm421_vm2, %v1220_v32  ;;  %1172 = vmatmul.mubr.msk.bf16.gmra.mxu1 %vm421_vm2, %v1221_v33 }
  0x49   : > { %1143 = vmatprep.mubr.msk.bf16.mxu0 %vm421_vm2, %v1222_v34  ;;  %1175 = vmatprep.mubr.msk.bf16.mxu1 %vm421_vm2, %v1223_v35 }
  0x50   : > { %1144 = vmatmul.mubr.msk.bf16.gmra.mxu0 %vm421_vm2, %v1224_v36  ;;  %1176 = vmatmul.mubr.msk.bf16.gmra.mxu1 %vm421_vm2, %v1225_v37 }
  0xd8   : > { %v1117_v39 = vpop.f32.mrf.mxu0  ;;  %v1149_v40 = vpop.f32.mrf.mxu1 }
  0xd9   : > { %v568_v41 = vadd.f32 %v1117_v39, %v1344_v38  ;;  %v696_v42 = vadd.f32 %v1149_v40, %v1344_v38 }
  0xda   : > { %v559_v43 = vpop.f32.mrf.mxu0  ;;  %v687_v44 = vpop.f32.mrf.mxu1 }
  0xdb   : > { %v816_v45 = vmax.f32 %v568_v41, 0.0  ;;  %v848_v46 = vmax.f32 %v696_v42, 0.0  ;;  %v560_v47 = vadd.f32 %v1344_v38, %v559_v43  ;;  %v688_v48 = vadd.f32 %v1344_v38, %v687_v44 }
  0xdc   : > { %v1118_v49 = vpop.f32.mrf.mxu0  ;;  %v1150_v50 = vpop.f32.mrf.mxu1 }
  0xdd   : > { %881 = vst.msk [vmem:[%s1352_s28 + $0x10] sm:$0xff] %vm878_vm3, %v816_v45  ;;  %913 = vst.msk [vmem:[%s1352_s28 + $0x110] sm:$0xff] %vm878_vm3, %v848_v46  ;;  %v814_v51 = vmax.f32 %v560_v47, 0.0  ;;  %v846_v52 = vmax.f32 %v688_v48, 0.0  ;;  %v571_v53 = vadd.f32 %v1118_v49, %v1344_v38  ;;  %v699_v54 = vadd.f32 %v1150_v50, %v1344_v38 }
  0xde   : > { %v562_v55 = vpop.f32.mrf.mxu0  ;;  %v690_v56 = vpop.f32.mrf.mxu1 }
  0xdf   : > { %879 = vst.msk [vmem:[%s1352_s28] sm:$0xff] %vm878_vm3, %v814_v51  ;;  %911 = vst.msk [vmem:[%s1352_s28 + $0x100] sm:$0xff] %vm878_vm3, %v846_v52  ;;  %v817_v57 = vmax.f32 %v571_v53, 0.0  ;;  %v849_v58 = vmax.f32 %v699_v54, 0.0  ;;  %v563_v59 = vadd.f32 %v1344_v38, %v562_v55  ;;  %v691_v60 = vadd.f32 %v1344_v38, %v690_v56 }
  0xe0   : > { %v1121_v61 = vpop.f32.mrf.mxu0  ;;  %v1153_v62 = vpop.f32.mrf.mxu1 }
  0xe1   : > { %882 = vst.msk [vmem:[%s1352_s28 + $0x18] sm:$0xff] %vm878_vm3, %v817_v57  ;;  %914 = vst.msk [vmem:[%s1352_s28 + $0x118] sm:$0xff] %vm878_vm3, %v849_v58  ;;  %v815_v63 = vmax.f32 %v563_v59, 0.0  ;;  %v847_v0 = vmax.f32 %v691_v60, 0.0  ;;  %v584_v1 = vadd.f32 %v1121_v61, %v1344_v38  ;;  %v712_v2 = vadd.f32 %v1153_v62, %v1344_v38 }
  0xe2   : > { %v575_v3 = vpop.f32.mrf.mxu0  ;;  %v703_v4 = vpop.f32.mrf.mxu1 }
  0xe3   : > { %880 = vst.msk [vmem:[%s1352_s28 + $0x8] sm:$0xff] %vm878_vm3, %v815_v63  ;;  %912 = vst.msk [vmem:[%s1352_s28 + $0x108] sm:$0xff] %vm878_vm3, %v847_v0  ;;  %v820_v5 = vmax.f32 %v584_v1, 0.0  ;;  %v852_v6 = vmax.f32 %v712_v2, 0.0  ;;  %v576_v7 = vadd.f32 %v1344_v38, %v575_v3  ;;  %v704_v8 = vadd.f32 %v1344_v38, %v703_v4 }
  0xe4   : > { %v1122_v9 = vpop.f32.mrf.mxu0  ;;  %v1154_v10 = vpop.f32.mrf.mxu1 }
  0xe5   : > { %885 = vst.msk [vmem:[%s1352_s28 + $0x30] sm:$0xff] %vm878_vm3, %v820_v5  ;;  %917 = vst.msk [vmem:[%s1352_s28 + $0x130] sm:$0xff] %vm878_vm3, %v852_v6  ;;  %v818_v11 = vmax.f32 %v576_v7, 0.0  ;;  %v850_v12 = vmax.f32 %v704_v8, 0.0  ;;  %v587_v13 = vadd.f32 %v1122_v9, %v1344_v38  ;;  %v715_v14 = vadd.f32 %v1154_v10, %v1344_v38 }
  0xe6   : > { %v578_v15 = vpop.f32.mrf.mxu0  ;;  %v706_v16 = vpop.f32.mrf.mxu1 }
  0xe7   : > { %883 = vst.msk [vmem:[%s1352_s28 + $0x20] sm:$0xff] %vm878_vm3, %v818_v11  ;;  %915 = vst.msk [vmem:[%s1352_s28 + $0x120] sm:$0xff] %vm878_vm3, %v850_v12  ;;  %v821_v17 = vmax.f32 %v587_v13, 0.0  ;;  %v853_v18 = vmax.f32 %v715_v14, 0.0  ;;  %v579_v19 = vadd.f32 %v1344_v38, %v578_v15  ;;  %v707_v20 = vadd.f32 %v1344_v38, %v706_v16 }
  0xe8   : > { %v1125_v21 = vpop.f32.mrf.mxu0  ;;  %v1157_v22 = vpop.f32.mrf.mxu1 }
  0xe9   : > { %886 = vst.msk [vmem:[%s1352_s28 + $0x38] sm:$0xff] %vm878_vm3, %v821_v17  ;;  %918 = vst.msk [vmem:[%s1352_s28 + $0x138] sm:$0xff] %vm878_vm3, %v853_v18  ;;  %v819_v23 = vmax.f32 %v579_v19, 0.0  ;;  %v851_v24 = vmax.f32 %v707_v20, 0.0  ;;  %v600_v25 = vadd.f32 %v1125_v21, %v1344_v38  ;;  %v728_v26 = vadd.f32 %v1157_v22, %v1344_v38 }
  0xea   : > { %v591_v27 = vpop.f32.mrf.mxu0  ;;  %v719_v28 = vpop.f32.mrf.mxu1 }
  0xeb   : > { %884 = vst.msk [vmem:[%s1352_s28 + $0x28] sm:$0xff] %vm878_vm3, %v819_v23  ;;  %916 = vst.msk [vmem:[%s1352_s28 + $0x128] sm:$0xff] %vm878_vm3, %v851_v24  ;;  %v824_v29 = vmax.f32 %v600_v25, 0.0  ;;  %v856_v30 = vmax.f32 %v728_v26, 0.0  ;;  %v592_v31 = vadd.f32 %v1344_v38, %v591_v27  ;;  %v720_v32 = vadd.f32 %v1344_v38, %v719_v28 }
  0xec   : > { %v1126_v33 = vpop.f32.mrf.mxu0  ;;  %v1158_v34 = vpop.f32.mrf.mxu1 }
  0xed   : > { %889 = vst.msk [vmem:[%s1352_s28 + $0x50] sm:$0xff] %vm878_vm3, %v824_v29  ;;  %921 = vst.msk [vmem:[%s1352_s28 + $0x150] sm:$0xff] %vm878_vm3, %v856_v30  ;;  %v822_v35 = vmax.f32 %v592_v31, 0.0  ;;  %v854_v36 = vmax.f32 %v720_v32, 0.0  ;;  %v603_v37 = vadd.f32 %v1126_v33, %v1344_v38  ;;  %v731_v39 = vadd.f32 %v1158_v34, %v1344_v38 }
  0xee   : > { %v594_v40 = vpop.f32.mrf.mxu0  ;;  %v722_v41 = vpop.f32.mrf.mxu1 }
  0xef   : > { %887 = vst.msk [vmem:[%s1352_s28 + $0x40] sm:$0xff] %vm878_vm3, %v822_v35  ;;  %919 = vst.msk [vmem:[%s1352_s28 + $0x140] sm:$0xff] %vm878_vm3, %v854_v36  ;;  %v825_v42 = vmax.f32 %v603_v37, 0.0  ;;  %v857_v43 = vmax.f32 %v731_v39, 0.0  ;;  %v595_v44 = vadd.f32 %v1344_v38, %v594_v40  ;;  %v723_v45 = vadd.f32 %v1344_v38, %v722_v41 }
  0xf0   : > { %v1129_v46 = vpop.f32.mrf.mxu0  ;;  %v1161_v47 = vpop.f32.mrf.mxu1 }
  0xf1   : > { %890 = vst.msk [vmem:[%s1352_s28 + $0x58] sm:$0xff] %vm878_vm3, %v825_v42  ;;  %922 = vst.msk [vmem:[%s1352_s28 + $0x158] sm:$0xff] %vm878_vm3, %v857_v43  ;;  %v823_v48 = vmax.f32 %v595_v44, 0.0  ;;  %v855_v49 = vmax.f32 %v723_v45, 0.0  ;;  %v616_v50 = vadd.f32 %v1129_v46, %v1344_v38  ;;  %v744_v51 = vadd.f32 %v1161_v47, %v1344_v38 }
  0xf2   : > { %v607_v52 = vpop.f32.mrf.mxu0  ;;  %v735_v53 = vpop.f32.mrf.mxu1 }
  0xf3   : > { %888 = vst.msk [vmem:[%s1352_s28 + $0x48] sm:$0xff] %vm878_vm3, %v823_v48  ;;  %920 = vst.msk [vmem:[%s1352_s28 + $0x148] sm:$0xff] %vm878_vm3, %v855_v49  ;;  %v828_v54 = vmax.f32 %v616_v50, 0.0  ;;  %v860_v55 = vmax.f32 %v744_v51, 0.0  ;;  %v608_v56 = vadd.f32 %v1344_v38, %v607_v52  ;;  %v736_v57 = vadd.f32 %v1344_v38, %v735_v53 }
  0xf4   : > { %v1130_v58 = vpop.f32.mrf.mxu0  ;;  %v1162_v59 = vpop.f32.mrf.mxu1 }
  0xf5   : > { %893 = vst.msk [vmem:[%s1352_s28 + $0x70] sm:$0xff] %vm878_vm3, %v828_v54  ;;  %925 = vst.msk [vmem:[%s1352_s28 + $0x170] sm:$0xff] %vm878_vm3, %v860_v55  ;;  %v826_v60 = vmax.f32 %v608_v56, 0.0  ;;  %v858_v61 = vmax.f32 %v736_v57, 0.0  ;;  %v619_v62 = vadd.f32 %v1130_v58, %v1344_v38  ;;  %v747_v63 = vadd.f32 %v1162_v59, %v1344_v38 }
  0xf6   : > { %v610_v0 = vpop.f32.mrf.mxu0  ;;  %v738_v1 = vpop.f32.mrf.mxu1 }
  0xf7   : > { %891 = vst.msk [vmem:[%s1352_s28 + $0x60] sm:$0xff] %vm878_vm3, %v826_v60  ;;  %923 = vst.msk [vmem:[%s1352_s28 + $0x160] sm:$0xff] %vm878_vm3, %v858_v61  ;;  %v829_v2 = vmax.f32 %v619_v62, 0.0  ;;  %v861_v3 = vmax.f32 %v747_v63, 0.0  ;;  %v611_v4 = vadd.f32 %v1344_v38, %v610_v0  ;;  %v739_v5 = vadd.f32 %v1344_v38, %v738_v1 }
  0xf8   : > { %v1133_v6 = vpop.f32.mrf.mxu0  ;;  %v1165_v7 = vpop.f32.mrf.mxu1 }
  0xf9   : > { %894 = vst.msk [vmem:[%s1352_s28 + $0x78] sm:$0xff] %vm878_vm3, %v829_v2  ;;  %926 = vst.msk [vmem:[%s1352_s28 + $0x178] sm:$0xff] %vm878_vm3, %v861_v3  ;;  %v827_v8 = vmax.f32 %v611_v4, 0.0  ;;  %v859_v9 = vmax.f32 %v739_v5, 0.0  ;;  %v632_v10 = vadd.f32 %v1133_v6, %v1344_v38  ;;  %v760_v11 = vadd.f32 %v1165_v7, %v1344_v38 }
  0xfa   : > { %v623_v12 = vpop.f32.mrf.mxu0  ;;  %v751_v13 = vpop.f32.mrf.mxu1 }
  0xfb   : > { %892 = vst.msk [vmem:[%s1352_s28 + $0x68] sm:$0xff] %vm878_vm3, %v827_v8  ;;  %924 = vst.msk [vmem:[%s1352_s28 + $0x168] sm:$0xff] %vm878_vm3, %v859_v9  ;;  %v832_v14 = vmax.f32 %v632_v10, 0.0  ;;  %v864_v15 = vmax.f32 %v760_v11, 0.0  ;;  %v624_v16 = vadd.f32 %v1344_v38, %v623_v12  ;;  %v752_v17 = vadd.f32 %v1344_v38, %v751_v13 }
  0xfc   : > { %v1134_v18 = vpop.f32.mrf.mxu0  ;;  %v1166_v19 = vpop.f32.mrf.mxu1 }
  0xfd   : > { %897 = vst.msk [vmem:[%s1352_s28 + $0x90] sm:$0xff] %vm878_vm3, %v832_v14  ;;  %929 = vst.msk [vmem:[%s1352_s28 + $0x190] sm:$0xff] %vm878_vm3, %v864_v15  ;;  %v830_v20 = vmax.f32 %v624_v16, 0.0  ;;  %v862_v21 = vmax.f32 %v752_v17, 0.0  ;;  %v635_v22 = vadd.f32 %v1134_v18, %v1344_v38  ;;  %v763_v23 = vadd.f32 %v1166_v19, %v1344_v38 }
  0xfe   : > { %v626_v24 = vpop.f32.mrf.mxu0  ;;  %v754_v25 = vpop.f32.mrf.mxu1 }
  0xff   : > { %895 = vst.msk [vmem:[%s1352_s28 + $0x80] sm:$0xff] %vm878_vm3, %v830_v20  ;;  %927 = vst.msk [vmem:[%s1352_s28 + $0x180] sm:$0xff] %vm878_vm3, %v862_v21  ;;  %v833_v26 = vmax.f32 %v635_v22, 0.0  ;;  %v865_v27 = vmax.f32 %v763_v23, 0.0  ;;  %v627_v28 = vadd.f32 %v1344_v38, %v626_v24  ;;  %v755_v29 = vadd.f32 %v1344_v38, %v754_v25 }
 0x100   : > { %v1137_v30 = vpop.f32.mrf.mxu0  ;;  %v1169_v31 = vpop.f32.mrf.mxu1 }
 0x101   : > { %898 = vst.msk [vmem:[%s1352_s28 + $0x98] sm:$0xff] %vm878_vm3, %v833_v26  ;;  %930 = vst.msk [vmem:[%s1352_s28 + $0x198] sm:$0xff] %vm878_vm3, %v865_v27  ;;  %v831_v32 = vmax.f32 %v627_v28, 0.0  ;;  %v863_v33 = vmax.f32 %v755_v29, 0.0  ;;  %v648_v34 = vadd.f32 %v1137_v30, %v1344_v38  ;;  %v776_v35 = vadd.f32 %v1169_v31, %v1344_v38 }
 0x102   : > { %v639_v36 = vpop.f32.mrf.mxu0  ;;  %v767_v37 = vpop.f32.mrf.mxu1 }
 0x103   : > { %896 = vst.msk [vmem:[%s1352_s28 + $0x88] sm:$0xff] %vm878_vm3, %v831_v32  ;;  %928 = vst.msk [vmem:[%s1352_s28 + $0x188] sm:$0xff] %vm878_vm3, %v863_v33  ;;  %v836_v39 = vmax.f32 %v648_v34, 0.0  ;;  %v868_v40 = vmax.f32 %v776_v35, 0.0  ;;  %v640_v41 = vadd.f32 %v1344_v38, %v639_v36  ;;  %v768_v42 = vadd.f32 %v1344_v38, %v767_v37 }
 0x104   : > { %v1138_v43 = vpop.f32.mrf.mxu0  ;;  %v1170_v44 = vpop.f32.mrf.mxu1 }
 0x105   : > { %901 = vst.msk [vmem:[%s1352_s28 + $0xb0] sm:$0xff] %vm878_vm3, %v836_v39  ;;  %933 = vst.msk [vmem:[%s1352_s28 + $0x1b0] sm:$0xff] %vm878_vm3, %v868_v40  ;;  %v834_v45 = vmax.f32 %v640_v41, 0.0  ;;  %v866_v46 = vmax.f32 %v768_v42, 0.0  ;;  %v651_v47 = vadd.f32 %v1138_v43, %v1344_v38  ;;  %v779_v48 = vadd.f32 %v1170_v44, %v1344_v38 }
 0x106   : > { %v642_v49 = vpop.f32.mrf.mxu0  ;;  %v770_v50 = vpop.f32.mrf.mxu1 }
 0x107   : > { %899 = vst.msk [vmem:[%s1352_s28 + $0xa0] sm:$0xff] %vm878_vm3, %v834_v45  ;;  %931 = vst.msk [vmem:[%s1352_s28 + $0x1a0] sm:$0xff] %vm878_vm3, %v866_v46  ;;  %v837_v51 = vmax.f32 %v651_v47, 0.0  ;;  %v869_v52 = vmax.f32 %v779_v48, 0.0  ;;  %v643_v53 = vadd.f32 %v1344_v38, %v642_v49  ;;  %v771_v54 = vadd.f32 %v1344_v38, %v770_v50 }
 0x108   : > { %v1141_v55 = vpop.f32.mrf.mxu0  ;;  %v1173_v56 = vpop.f32.mrf.mxu1 }
 0x109   : > { %902 = vst.msk [vmem:[%s1352_s28 + $0xb8] sm:$0xff] %vm878_vm3, %v837_v51  ;;  %934 = vst.msk [vmem:[%s1352_s28 + $0x1b8] sm:$0xff] %vm878_vm3, %v869_v52  ;;  %v835_v57 = vmax.f32 %v643_v53, 0.0  ;;  %v867_v58 = vmax.f32 %v771_v54, 0.0  ;;  %v664_v59 = vadd.f32 %v1141_v55, %v1344_v38  ;;  %v792_v60 = vadd.f32 %v1173_v56, %v1344_v38 }
 0x10a   : > { %v655_v61 = vpop.f32.mrf.mxu0  ;;  %v783_v62 = vpop.f32.mrf.mxu1 }
 0x10b   : > { %900 = vst.msk [vmem:[%s1352_s28 + $0xa8] sm:$0xff] %vm878_vm3, %v835_v57  ;;  %932 = vst.msk [vmem:[%s1352_s28 + $0x1a8] sm:$0xff] %vm878_vm3, %v867_v58  ;;  %v840_v63 = vmax.f32 %v664_v59, 0.0  ;;  %v872_v0 = vmax.f32 %v792_v60, 0.0  ;;  %v656_v1 = vadd.f32 %v1344_v38, %v655_v61  ;;  %v784_v2 = vadd.f32 %v1344_v38, %v783_v62 }
 0x10c   : > { %v1142_v3 = vpop.f32.mrf.mxu0  ;;  %v1174_v4 = vpop.f32.mrf.mxu1 }
 0x10d   : > { %905 = vst.msk [vmem:[%s1352_s28 + $0xd0] sm:$0xff] %vm878_vm3, %v840_v63  ;;  %937 = vst.msk [vmem:[%s1352_s28 + $0x1d0] sm:$0xff] %vm878_vm3, %v872_v0  ;;  %v838_v5 = vmax.f32 %v656_v1, 0.0  ;;  %v870_v6 = vmax.f32 %v784_v2, 0.0  ;;  %v667_v7 = vadd.f32 %v1142_v3, %v1344_v38  ;;  %v795_v8 = vadd.f32 %v1174_v4, %v1344_v38 }
 0x10e   : > { %v658_v9 = vpop.f32.mrf.mxu0  ;;  %v786_v10 = vpop.f32.mrf.mxu1 }
 0x10f   : > { %903 = vst.msk [vmem:[%s1352_s28 + $0xc0] sm:$0xff] %vm878_vm3, %v838_v5  ;;  %935 = vst.msk [vmem:[%s1352_s28 + $0x1c0] sm:$0xff] %vm878_vm3, %v870_v6  ;;  %v841_v11 = vmax.f32 %v667_v7, 0.0  ;;  %v873_v12 = vmax.f32 %v795_v8, 0.0  ;;  %v659_v13 = vadd.f32 %v1344_v38, %v658_v9  ;;  %v787_v14 = vadd.f32 %v1344_v38, %v786_v10 }
 0x110   : > { %v1145_v15 = vpop.f32.mrf.mxu0  ;;  %v1177_v16 = vpop.f32.mrf.mxu1 }
 0x111   : > { %906 = vst.msk [vmem:[%s1352_s28 + $0xd8] sm:$0xff] %vm878_vm3, %v841_v11  ;;  %938 = vst.msk [vmem:[%s1352_s28 + $0x1d8] sm:$0xff] %vm878_vm3, %v873_v12  ;;  %v839_v17 = vmax.f32 %v659_v13, 0.0  ;;  %v871_v18 = vmax.f32 %v787_v14, 0.0  ;;  %v680_v19 = vadd.f32 %v1145_v15, %v1344_v38  ;;  %v808_v20 = vadd.f32 %v1177_v16, %v1344_v38 }
 0x112   : > { %v671_v21 = vpop.f32.mrf.mxu0  ;;  %v799_v22 = vpop.f32.mrf.mxu1 }
 0x113   : > { %904 = vst.msk [vmem:[%s1352_s28 + $0xc8] sm:$0xff] %vm878_vm3, %v839_v17  ;;  %936 = vst.msk [vmem:[%s1352_s28 + $0x1c8] sm:$0xff] %vm878_vm3, %v871_v18  ;;  %v844_v23 = vmax.f32 %v680_v19, 0.0  ;;  %v876_v24 = vmax.f32 %v808_v20, 0.0  ;;  %v672_v25 = vadd.f32 %v1344_v38, %v671_v21  ;;  %v800_v26 = vadd.f32 %v1344_v38, %v799_v22 }
 0x114   : > { %v1146_v27 = vpop.f32.mrf.mxu0  ;;  %v1178_v28 = vpop.f32.mrf.mxu1 }
 0x115   : > { %909 = vst.msk [vmem:[%s1352_s28 + $0xf0] sm:$0xff] %vm878_vm3, %v844_v23  ;;  %941 = vst.msk [vmem:[%s1352_s28 + $0x1f0] sm:$0xff] %vm878_vm3, %v876_v24  ;;  %v842_v29 = vmax.f32 %v672_v25, 0.0  ;;  %v874_v30 = vmax.f32 %v800_v26, 0.0  ;;  %v683_v31 = vadd.f32 %v1146_v27, %v1344_v38  ;;  %v811_v32 = vadd.f32 %v1178_v28, %v1344_v38 }
 0x116   : > { %v674_v33 = vpop.f32.mrf.mxu0  ;;  %v802_v34 = vpop.f32.mrf.mxu1 }
 0x117   : > { %907 = vst.msk [vmem:[%s1352_s28 + $0xe0] sm:$0xff] %vm878_vm3, %v842_v29  ;;  %939 = vst.msk [vmem:[%s1352_s28 + $0x1e0] sm:$0xff] %vm878_vm3, %v874_v30  ;;  %v845_v35 = vmax.f32 %v683_v31, 0.0  ;;  %v877_v36 = vmax.f32 %v811_v32, 0.0  ;;  %v675_v37 = vadd.f32 %v1344_v38, %v674_v33  ;;  %v803_v39 = vadd.f32 %v1344_v38, %v802_v34 }
 0x119   : > { %910 = vst.msk [vmem:[%s1352_s28 + $0xf8] sm:$0xff] %vm878_vm3, %v845_v35  ;;  %942 = vst.msk [vmem:[%s1352_s28 + $0x1f8] sm:$0xff] %vm878_vm3, %v877_v36  ;;  %v843_v40 = vmax.f32 %v675_v37, 0.0  ;;  %v875_v41 = vmax.f32 %v803_v39, 0.0 }
 0x11b   : > { %908 = vst.msk [vmem:[%s1352_s28 + $0xe8] sm:$0xff] %vm878_vm3, %v843_v40  ;;  %940 = vst.msk [vmem:[%s1352_s28 + $0x1e8] sm:$0xff] %vm878_vm3, %v875_v41 }
 0x11c PF: > { %s13_s12 = sadd.s32 1, %s1232_s12  }
 0x11d   : > { %p10_p4 = scmp.ge.s32.totalorder %s13_s12, 6  }
 0x11f   :  { %12 = sbr.rel (!%p10_p4) target bundleno = 1 (0x1), region = 62 }

// kernel: forward.14
= control target key start
LH: loop header
LB: loop body
LE: loop exit
PB: predicated region body
PF: predicated region fallthrough
CT: control target
= control target key end

     0   :  { %s846_s12 = smov 0   ;;  %s1019_s0 = inlined_call_operand.vmem [shape: bf16[512,72], index: 0, kind: input, shape index: {}]   ;;  %s1020_s1 = inlined_call_operand.vmem [shape: bf16[72,8], index: 1, kind: input, shape index: {}]   ;;  %s1021_s2 = inlined_call_operand.vmem [shape: f32[1,8], index: 2, kind: input, shape index: {}]   ;;  %s1022_s3 = inlined_call_operand.vmem [shape: f32[512,8], index: 3, kind: output, shape index: {}]  }
   0x1 LB: > { %s665_s13 = sadd.s32 4294967295, %s824_s12   ;;  %p669_p0 = scmp.ge.s32.totalorder %s824_s12, 1  ;;  %s824_s12 = sphi %s846_s12, %s13_s12  }
   0x2   : > { %p138_p1 = scmp.lt.s32.totalorder %s824_s12, 3 }
   0x4   : > { %p139_p2 = pnand %p669_p0, %p138_p1 }
   0x5   : > { %s670_s18 = sshll.u32 (!%p139_p2), %s665_s13, 5 }
   0x6   : > { %142 = sbr.rel (%p139_p2) target bundleno = 260 (0x104), region = 32  ;;  %p163_p3 = scmp.lt.s32.totalorder (!%p139_p2), %s670_s18, 63 }
   0xb   : > { %v797_v0 = vld [vmem:[%s1020_s1 + $0x20] ss:$0 sps:$4 sm:$0xff]   ;;  %vm379_vm0 = vcmask 1043456   ;;  %v798_v1 = vld [vmem:[%s1020_s1 + $0x18] sm:$0xff]   ;;  %v799_v3 = vld [vmem:[%s1020_s1 + $0x10] sm:$0xff]   ;;  %s1024_s18 = smov (!%p163_p3, %s670_s18), 63 }
   0xc   : > { %787 = vmatprep.subr.msk.bf16.mxu0 %vm379_vm0, %v797_v0  ;;  %788 = vmatprep.subr.msk.bf16.mxu1 %vm379_vm0, %v797_v0  ;;  %v381_v2 = vsel %vm379_vm0, %v797_v0, 0  ;;  %v800_v4 = vld [vmem:[%s1020_s1 + $0x8] sm:$0xff]   ;;  %s671_s23 = sshll.u32 %s1024_s18, 2  ;;  %vm330_vm1 = vcmask 588800   ;;  %v801_v7 = vld [vmem:[%s1020_s1] sm:$0xff]   ;;  %s673_s4 = sshll.u32 %s1024_s18, 3 }
   0xd   : > { %736 = vmatpush3.bf16.msra.mxu0 %v381_v2  ;;  %782 = vmatpush3.bf16.msra.mxu1 %v381_v2  ;;  %s872_s26 = scalar_lea.vmem %s1019_s0, %s671_s23  ;;  %v912_v22 = vld [vmem:[%s1021_s2] ss:$0 sm:$0xff]  ;;  %s920_s7 = scalar_lea.vmem %s1022_s3, %s673_s4  ;;  %vm576_vm2 = vcmask 64512  }
   0xe   : > { %737 = vmatprep.subr.bf16.mxu0 %v798_v1  ;;  %778 = vmatprep.subr.bf16.mxu1 %v798_v1  ;;  %v802_v5 = vld [vmem:[%s872_s26] sm:$0xff]   ;;  %v804_v8 = vld [vmem:[%s872_s26 + $0x8] sm:$0xff]   ;;  %v806_v10 = vld [vmem:[%s872_s26 + $0x10] sm:$0xff]  }
   0xf   : > { %v803_v6 = vld [vmem:[%s872_s26 + $0x40] sm:$0xff]   ;;  %745 = vmatprep.mubr.msk.bf16.mxu0 %vm330_vm1, %v802_v5  ;;  %v805_v9 = vld [vmem:[%s872_s26 + $0x48] sm:$0xff]   ;;  %v807_v11 = vld [vmem:[%s872_s26 + $0x50] sm:$0xff]  }
  0x10   : > { %761 = vmatprep.mubr.msk.bf16.mxu1 %vm330_vm1, %v803_v6  ;;  %v808_v12 = vld [vmem:[%s872_s26 + $0x18] sm:$0xff]   ;;  %v810_v14 = vld [vmem:[%s872_s26 + $0x20] sm:$0xff]   ;;  %v812_v16 = vld [vmem:[%s872_s26 + $0x28] sm:$0xff]  }
  0x11   : > { %738 = vmatpush3.bf16.msra.mxu0 %v798_v1  ;;  %783 = vmatpush3.bf16.msra.mxu1 %v798_v1  ;;  %v809_v13 = vld [vmem:[%s872_s26 + $0x58] sm:$0xff]   ;;  %v811_v15 = vld [vmem:[%s872_s26 + $0x60] sm:$0xff]   ;;  %v813_v17 = vld [vmem:[%s872_s26 + $0x68] sm:$0xff]  }
  0x12   : > { %739 = vmatprep.subr.bf16.mxu0 %v799_v3  ;;  %779 = vmatprep.subr.bf16.mxu1 %v799_v3  ;;  %v814_v18 = vld [vmem:[%s872_s26 + $0x30] sm:$0xff]   ;;  %v816_v20 = vld [vmem:[%s872_s26 + $0x38] sm:$0xff]  }
  0x13   : > { %v815_v19 = vld [vmem:[%s872_s26 + $0x70] sm:$0xff]   ;;  %v817_v21 = vld [vmem:[%s872_s26 + $0x78] sm:$0xff]  }
  0x15   : > { %740 = vmatpush3.bf16.msra.mxu0 %v799_v3  ;;  %784 = vmatpush3.bf16.msra.mxu1 %v799_v3 }
  0x16   : > { %741 = vmatprep.subr.bf16.mxu0 %v800_v4  ;;  %780 = vmatprep.subr.bf16.mxu1 %v800_v4 }
  0x19   : > { %742 = vmatpush3.bf16.msra.mxu0 %v800_v4  ;;  %785 = vmatpush3.bf16.msra.mxu1 %v800_v4 }
  0x1a   : > { %743 = vmatprep.subr.bf16.mxu0 %v801_v7  ;;  %781 = vmatprep.subr.bf16.mxu1 %v801_v7 }
  0x1d   : > { %744 = vmatpush3.bf16.msra.mxu0 %v801_v7  ;;  %786 = vmatpush3.bf16.msra.mxu1 %v801_v7 }
  0x20   : > { %746 = vmatmul.mubr.msk.bf16.vlgmr.msra.gmra.mxu0 %vm330_vm1, %v804_v8  ;;  %762 = vmatmul.mubr.msk.bf16.vlgmr.msra.gmra.mxu1 %vm330_vm1, %v805_v9 }
  0x21   : > { %749 = vmatprep.mubr.msk.bf16.mxu0 %vm330_vm1, %v806_v10  ;;  %765 = vmatprep.mubr.msk.bf16.mxu1 %vm330_vm1, %v807_v11 }
  0x28   : > { %750 = vmatmul.mubr.msk.bf16.gmra.mxu0 %vm330_vm1, %v808_v12  ;;  %766 = vmatmul.mubr.msk.bf16.gmra.mxu1 %vm330_vm1, %v809_v13 }
  0x29   : > { %753 = vmatprep.mubr.msk.bf16.mxu0 %vm330_vm1, %v810_v14  ;;  %769 = vmatprep.mubr.msk.bf16.mxu1 %vm330_vm1, %v811_v15 }
  0x30   : > { %754 = vmatmul.mubr.msk.bf16.gmra.mxu0 %vm330_vm1, %v812_v16  ;;  %770 = vmatmul.mubr.msk.bf16.gmra.mxu1 %vm330_vm1, %v813_v17 }
  0x31   : > { %757 = vmatprep.mubr.msk.bf16.mxu0 %vm330_vm1, %v814_v18  ;;  %773 = vmatprep.mubr.msk.bf16.mxu1 %vm330_vm1, %v815_v19 }
  0x38   : > { %758 = vmatmul.mubr.msk.bf16.gmra.mxu0 %vm330_vm1, %v816_v20  ;;  %774 = vmatmul.mubr.msk.bf16.gmra.mxu1 %vm330_vm1, %v817_v21 }
  0xe0   : > { %v747_v23 = vpop.f32.mrf.mxu0  ;;  %v763_v24 = vpop.f32.mrf.mxu1 }
  0xe1   : > { %v426_v25 = vadd.f32 %v747_v23, %v912_v22  ;;  %v490_v26 = vadd.f32 %v763_v24, %v912_v22 }
  0xe2   : > { %v417_v27 = vpop.f32.mrf.mxu0  ;;  %v481_v28 = vpop.f32.mrf.mxu1 }
  0xe3   : > { %v546_v29 = vmax.f32 %v426_v25, 0.0  ;;  %v562_v30 = vmax.f32 %v490_v26, 0.0  ;;  %v418_v31 = vadd.f32 %v912_v22, %v417_v27  ;;  %v482_v32 = vadd.f32 %v912_v22, %v481_v28 }
  0xe4   : > { %v748_v33 = vpop.f32.mrf.mxu0  ;;  %v764_v34 = vpop.f32.mrf.mxu1 }
  0xe5   : > { %579 = vst.msk [vmem:[%s920_s7 + $0x10] sm:$0xff] %vm576_vm2, %v546_v29  ;;  %595 = vst.msk [vmem:[%s920_s7 + $0x90] sm:$0xff] %vm576_vm2, %v562_v30  ;;  %v544_v35 = vmax.f32 %v418_v31, 0.0  ;;  %v560_v36 = vmax.f32 %v482_v32, 0.0  ;;  %v429_v37 = vadd.f32 %v748_v33, %v912_v22  ;;  %v493_v38 = vadd.f32 %v764_v34, %v912_v22 }
  0xe6   : > { %v420_v39 = vpop.f32.mrf.mxu0  ;;  %v484_v40 = vpop.f32.mrf.mxu1 }
  0xe7   : > { %577 = vst.msk [vmem:[%s920_s7] sm:$0xff] %vm576_vm2, %v544_v35  ;;  %593 = vst.msk [vmem:[%s920_s7 + $0x80] sm:$0xff] %vm576_vm2, %v560_v36  ;;  %v547_v41 = vmax.f32 %v429_v37, 0.0  ;;  %v563_v42 = vmax.f32 %v493_v38, 0.0  ;;  %v421_v43 = vadd.f32 %v912_v22, %v420_v39  ;;  %v485_v44 = vadd.f32 %v912_v22, %v484_v40 }
  0xe8   : > { %v751_v45 = vpop.f32.mrf.mxu0  ;;  %v767_v46 = vpop.f32.mrf.mxu1 }
  0xe9   : > { %580 = vst.msk [vmem:[%s920_s7 + $0x18] sm:$0xff] %vm576_vm2, %v547_v41  ;;  %596 = vst.msk [vmem:[%s920_s7 + $0x98] sm:$0xff] %vm576_vm2, %v563_v42  ;;  %v545_v47 = vmax.f32 %v421_v43, 0.0  ;;  %v561_v48 = vmax.f32 %v485_v44, 0.0  ;;  %v442_v49 = vadd.f32 %v751_v45, %v912_v22  ;;  %v506_v50 = vadd.f32 %v767_v46, %v912_v22 }
  0xea   : > { %v433_v51 = vpop.f32.mrf.mxu0  ;;  %v497_v52 = vpop.f32.mrf.mxu1 }
  0xeb   : > { %578 = vst.msk [vmem:[%s920_s7 + $0x8] sm:$0xff] %vm576_vm2, %v545_v47  ;;  %594 = vst.msk [vmem:[%s920_s7 + $0x88] sm:$0xff] %vm576_vm2, %v561_v48  ;;  %v550_v53 = vmax.f32 %v442_v49, 0.0  ;;  %v566_v54 = vmax.f32 %v506_v50, 0.0  ;;  %v434_v55 = vadd.f32 %v912_v22, %v433_v51  ;;  %v498_v56 = vadd.f32 %v912_v22, %v497_v52 }
  0xec   : > { %v752_v57 = vpop.f32.mrf.mxu0  ;;  %v768_v58 = vpop.f32.mrf.mxu1 }
  0xed   : > { %583 = vst.msk [vmem:[%s920_s7 + $0x30] sm:$0xff] %vm576_vm2, %v550_v53  ;;  %599 = vst.msk [vmem:[%s920_s7 + $0xb0] sm:$0xff] %vm576_vm2, %v566_v54  ;;  %v548_v59 = vmax.f32 %v434_v55, 0.0  ;;  %v564_v60 = vmax.f32 %v498_v56, 0.0  ;;  %v445_v61 = vadd.f32 %v752_v57, %v912_v22  ;;  %v509_v62 = vadd.f32 %v768_v58, %v912_v22 }
  0xee   : > { %v436_v63 = vpop.f32.mrf.mxu0  ;;  %v500_v0 = vpop.f32.mrf.mxu1 }
  0xef   : > { %581 = vst.msk [vmem:[%s920_s7 + $0x20] sm:$0xff] %vm576_vm2, %v548_v59  ;;  %597 = vst.msk [vmem:[%s920_s7 + $0xa0] sm:$0xff] %vm576_vm2, %v564_v60  ;;  %v551_v1 = vmax.f32 %v445_v61, 0.0  ;;  %v567_v2 = vmax.f32 %v509_v62, 0.0  ;;  %v437_v3 = vadd.f32 %v912_v22, %v436_v63  ;;  %v501_v4 = vadd.f32 %v912_v22, %v500_v0 }
  0xf0   : > { %v755_v5 = vpop.f32.mrf.mxu0  ;;  %v771_v6 = vpop.f32.mrf.mxu1 }
  0xf1   : > { %584 = vst.msk [vmem:[%s920_s7 + $0x38] sm:$0xff] %vm576_vm2, %v551_v1  ;;  %600 = vst.msk [vmem:[%s920_s7 + $0xb8] sm:$0xff] %vm576_vm2, %v567_v2  ;;  %v549_v7 = vmax.f32 %v437_v3, 0.0  ;;  %v565_v8 = vmax.f32 %v501_v4, 0.0  ;;  %v458_v9 = vadd.f32 %v755_v5, %v912_v22  ;;  %v522_v10 = vadd.f32 %v771_v6, %v912_v22 }
  0xf2   : > { %v449_v11 = vpop.f32.mrf.mxu0  ;;  %v513_v12 = vpop.f32.mrf.mxu1 }
  0xf3   : > { %582 = vst.msk [vmem:[%s920_s7 + $0x28] sm:$0xff] %vm576_vm2, %v549_v7  ;;  %598 = vst.msk [vmem:[%s920_s7 + $0xa8] sm:$0xff] %vm576_vm2, %v565_v8  ;;  %v554_v13 = vmax.f32 %v458_v9, 0.0  ;;  %v570_v14 = vmax.f32 %v522_v10, 0.0  ;;  %v450_v15 = vadd.f32 %v912_v22, %v449_v11  ;;  %v514_v16 = vadd.f32 %v912_v22, %v513_v12 }
  0xf4   : > { %v756_v17 = vpop.f32.mrf.mxu0  ;;  %v772_v18 = vpop.f32.mrf.mxu1 }
  0xf5   : > { %587 = vst.msk [vmem:[%s920_s7 + $0x50] sm:$0xff] %vm576_vm2, %v554_v13  ;;  %603 = vst.msk [vmem:[%s920_s7 + $0xd0] sm:$0xff] %vm576_vm2, %v570_v14  ;;  %v552_v19 = vmax.f32 %v450_v15, 0.0  ;;  %v568_v20 = vmax.f32 %v514_v16, 0.0  ;;  %v461_v21 = vadd.f32 %v756_v17, %v912_v22  ;;  %v525_v23 = vadd.f32 %v772_v18, %v912_v22 }
  0xf6   : > { %v452_v24 = vpop.f32.mrf.mxu0  ;;  %v516_v25 = vpop.f32.mrf.mxu1 }
  0xf7   : > { %585 = vst.msk [vmem:[%s920_s7 + $0x40] sm:$0xff] %vm576_vm2, %v552_v19  ;;  %601 = vst.msk [vmem:[%s920_s7 + $0xc0] sm:$0xff] %vm576_vm2, %v568_v20  ;;  %v555_v26 = vmax.f32 %v461_v21, 0.0  ;;  %v571_v27 = vmax.f32 %v525_v23, 0.0  ;;  %v453_v28 = vadd.f32 %v912_v22, %v452_v24  ;;  %v517_v29 = vadd.f32 %v912_v22, %v516_v25 }
  0xf8   : > { %v759_v30 = vpop.f32.mrf.mxu0  ;;  %v775_v31 = vpop.f32.mrf.mxu1 }
  0xf9   : > { %588 = vst.msk [vmem:[%s920_s7 + $0x58] sm:$0xff] %vm576_vm2, %v555_v26  ;;  %604 = vst.msk [vmem:[%s920_s7 + $0xd8] sm:$0xff] %vm576_vm2, %v571_v27  ;;  %v553_v32 = vmax.f32 %v453_v28, 0.0  ;;  %v569_v33 = vmax.f32 %v517_v29, 0.0  ;;  %v474_v34 = vadd.f32 %v759_v30, %v912_v22  ;;  %v538_v35 = vadd.f32 %v775_v31, %v912_v22 }
  0xfa   : > { %v465_v36 = vpop.f32.mrf.mxu0  ;;  %v529_v37 = vpop.f32.mrf.mxu1 }
  0xfb   : > { %586 = vst.msk [vmem:[%s920_s7 + $0x48] sm:$0xff] %vm576_vm2, %v553_v32  ;;  %602 = vst.msk [vmem:[%s920_s7 + $0xc8] sm:$0xff] %vm576_vm2, %v569_v33  ;;  %v558_v38 = vmax.f32 %v474_v34, 0.0  ;;  %v574_v39 = vmax.f32 %v538_v35, 0.0  ;;  %v466_v40 = vadd.f32 %v912_v22, %v465_v36  ;;  %v530_v41 = vadd.f32 %v912_v22, %v529_v37 }
  0xfc   : > { %v760_v42 = vpop.f32.mrf.mxu0  ;;  %v776_v43 = vpop.f32.mrf.mxu1 }
  0xfd   : > { %591 = vst.msk [vmem:[%s920_s7 + $0x70] sm:$0xff] %vm576_vm2, %v558_v38  ;;  %607 = vst.msk [vmem:[%s920_s7 + $0xf0] sm:$0xff] %vm576_vm2, %v574_v39  ;;  %v556_v44 = vmax.f32 %v466_v40, 0.0  ;;  %v572_v45 = vmax.f32 %v530_v41, 0.0  ;;  %v477_v46 = vadd.f32 %v760_v42, %v912_v22  ;;  %v541_v47 = vadd.f32 %v776_v43, %v912_v22 }
  0xfe   : > { %v468_v48 = vpop.f32.mrf.mxu0  ;;  %v532_v49 = vpop.f32.mrf.mxu1 }
  0xff   : > { %589 = vst.msk [vmem:[%s920_s7 + $0x60] sm:$0xff] %vm576_vm2, %v556_v44  ;;  %605 = vst.msk [vmem:[%s920_s7 + $0xe0] sm:$0xff] %vm576_vm2, %v572_v45  ;;  %v559_v50 = vmax.f32 %v477_v46, 0.0  ;;  %v575_v51 = vmax.f32 %v541_v47, 0.0  ;;  %v469_v52 = vadd.f32 %v912_v22, %v468_v48  ;;  %v533_v53 = vadd.f32 %v912_v22, %v532_v49 }
 0x101   : > { %592 = vst.msk [vmem:[%s920_s7 + $0x78] sm:$0xff] %vm576_vm2, %v559_v50  ;;  %608 = vst.msk [vmem:[%s920_s7 + $0xf8] sm:$0xff] %vm576_vm2, %v575_v51  ;;  %v557_v54 = vmax.f32 %v469_v52, 0.0  ;;  %v573_v55 = vmax.f32 %v533_v53, 0.0 }
 0x103   : > { %590 = vst.msk [vmem:[%s920_s7 + $0x68] sm:$0xff] %vm576_vm2, %v557_v54  ;;  %606 = vst.msk [vmem:[%s920_s7 + $0xe8] sm:$0xff] %vm576_vm2, %v573_v55 }
 0x104 PF: > { %s13_s12 = sadd.s32 1, %s824_s12  }
 0x105   : > { %p10_p4 = scmp.ge.s32.totalorder %s13_s12, 4  }
 0x107   :  { %12 = sbr.rel (!%p10_p4) target bundleno = 1 (0x1), region = 62 }

// kernel: forward.15
= control target key start
LH: loop header
LB: loop body
LE: loop exit
PB: predicated region body
PF: predicated region fallthrough
CT: control target
= control target key end

     0   :  { %vm139_vm0 = vcmask 1043456   ;;  %vm114_vm1 = vcmask 588800   ;;  %vm256_vm2 = vcmask 130048   ;;  %s497_s1 = inlined_call_operand.vmem [shape: bf16[72,16], index: 1, kind: input, shape index: {}]   ;;  %s498_s0 = inlined_call_operand.vmem [shape: bf16[128,72], index: 0, kind: input, shape index: {}]   ;;  %s499_s2 = inlined_call_operand.vmem [shape: f32[1,16], index: 2, kind: input, shape index: {}]   ;;  %s500_s3 = inlined_call_operand.vmem [shape: f32[128,16], index: 3, kind: output, shape index: {}]  }
   0x1   :  { %v350_v0 = vld [vmem:[%s497_s1 + $0x20] ss:$0 sps:$4 sm:$0xff]   ;;  %v351_v1 = vld [vmem:[%s497_s1 + $0x18] sm:$0xff]   ;;  %v352_v3 = vld [vmem:[%s497_s1 + $0x10] sm:$0xff]  }
   0x2   :  { %348 = vmatprep.subr.msk.bf16.mxu0 %vm139_vm0, %v350_v0  ;;  %349 = vmatprep.subr.msk.bf16.mxu1 %vm139_vm0, %v350_v0  ;;  %v141_v2 = vsel %vm139_vm0, %v350_v0, 0  ;;  %v355_v4 = vld [vmem:[%s498_s0] sm:$0xff]   ;;  %v353_v6 = vld [vmem:[%s497_s1 + $0x8] sm:$0xff]   ;;  %v359_v10 = vld [vmem:[%s498_s0 + $0x10] sm:$0xff]  }
   0x3   :  { %313 = vmatpush3.bf16.msra.mxu0 %v141_v2  ;;  %343 = vmatpush3.bf16.msra.mxu1 %v141_v2  ;;  %v356_v5 = vld [vmem:[%s498_s0 + $0x20] sm:$0xff]   ;;  %v357_v8 = vld [vmem:[%s498_s0 + $0x8] sm:$0xff]   ;;  %v360_v11 = vld [vmem:[%s498_s0 + $0x30] sm:$0xff]  }
   0x4   :  { %314 = vmatprep.subr.bf16.mxu0 %v351_v1  ;;  %339 = vmatprep.subr.bf16.mxu1 %v351_v1  ;;  %v354_v7 = vld [vmem:[%s497_s1] sm:$0xff]   ;;  %v358_v9 = vld [vmem:[%s498_s0 + $0x28] sm:$0xff]   ;;  %v361_v12 = vld [vmem:[%s498_s0 + $0x18] sm:$0xff]  }
   0x5   :  { %322 = vmatprep.mubr.msk.bf16.mxu0 %vm114_vm1, %v355_v4  ;;  %330 = vmatprep.mubr.msk.bf16.mxu1 %vm114_vm1, %v356_v5  ;;  %v362_v13 = vld [vmem:[%s498_s0 + $0x38] sm:$0xff]   ;;  %v277_v14 = vld [vmem:[%s499_s2] ss:$0 sm:$0xff] }
   0x7   :  { %315 = vmatpush3.bf16.msra.mxu0 %v351_v1  ;;  %344 = vmatpush3.bf16.msra.mxu1 %v351_v1 }
   0x8   :  { %316 = vmatprep.subr.bf16.mxu0 %v352_v3  ;;  %340 = vmatprep.subr.bf16.mxu1 %v352_v3 }
   0xb   :  { %317 = vmatpush3.bf16.msra.mxu0 %v352_v3  ;;  %345 = vmatpush3.bf16.msra.mxu1 %v352_v3 }
   0xc   :  { %318 = vmatprep.subr.bf16.mxu0 %v353_v6  ;;  %341 = vmatprep.subr.bf16.mxu1 %v353_v6 }
   0xf   :  { %319 = vmatpush3.bf16.msra.mxu0 %v353_v6  ;;  %346 = vmatpush3.bf16.msra.mxu1 %v353_v6 }
  0x10   :  { %320 = vmatprep.subr.bf16.mxu0 %v354_v7  ;;  %342 = vmatprep.subr.bf16.mxu1 %v354_v7 }
  0x13   :  { %321 = vmatpush3.bf16.msra.mxu0 %v354_v7  ;;  %347 = vmatpush3.bf16.msra.mxu1 %v354_v7 }
  0x16   :  { %323 = vmatmul.mubr.msk.bf16.vlgmr.msra.gmra.mxu0 %vm114_vm1, %v357_v8  ;;  %331 = vmatmul.mubr.msk.bf16.vlgmr.msra.gmra.mxu1 %vm114_vm1, %v358_v9 }
  0x17   :  { %326 = vmatprep.mubr.msk.bf16.mxu0 %vm114_vm1, %v359_v10  ;;  %334 = vmatprep.mubr.msk.bf16.mxu1 %vm114_vm1, %v360_v11 }
  0x1e   :  { %327 = vmatmul.mubr.msk.bf16.gmra.mxu0 %vm114_vm1, %v361_v12  ;;  %335 = vmatmul.mubr.msk.bf16.gmra.mxu1 %vm114_vm1, %v362_v13 }
  0xd6   :  { %v324_v15 = vpop.f32.mrf.mxu0  ;;  %v332_v16 = vpop.f32.mrf.mxu1 }
  0xd7   :  { %v186_v17 = vadd.f32 %v324_v15, %v277_v14  ;;  %v218_v18 = vadd.f32 %v332_v16, %v277_v14 }
  0xd8   :  { %v177_v19 = vpop.f32.mrf.mxu0  ;;  %v209_v20 = vpop.f32.mrf.mxu1 }
  0xd9   :  { %v242_v21 = vmax.f32 %v186_v17, 0.0  ;;  %v250_v22 = vmax.f32 %v218_v18, 0.0  ;;  %v178_v23 = vadd.f32 %v277_v14, %v177_v19  ;;  %v210_v24 = vadd.f32 %v277_v14, %v209_v20 }
  0xda   :  { %v325_v25 = vpop.f32.mrf.mxu0  ;;  %v333_v26 = vpop.f32.mrf.mxu1 }
  0xdb   :  { %259 = vst.msk [vmem:[%s500_s3 + $0x10] sm:$0xff] %vm256_vm2, %v242_v21  ;;  %267 = vst.msk [vmem:[%s500_s3 + $0x50] sm:$0xff] %vm256_vm2, %v250_v22  ;;  %v240_v27 = vmax.f32 %v178_v23, 0.0  ;;  %v248_v28 = vmax.f32 %v210_v24, 0.0  ;;  %v189_v29 = vadd.f32 %v325_v25, %v277_v14  ;;  %v221_v30 = vadd.f32 %v333_v26, %v277_v14 }
  0xdc   :  { %v180_v31 = vpop.f32.mrf.mxu0  ;;  %v212_v32 = vpop.f32.mrf.mxu1 }
  0xdd   :  { %257 = vst.msk [vmem:[%s500_s3] sm:$0xff] %vm256_vm2, %v240_v27  ;;  %265 = vst.msk [vmem:[%s500_s3 + $0x40] sm:$0xff] %vm256_vm2, %v248_v28  ;;  %v243_v33 = vmax.f32 %v189_v29, 0.0  ;;  %v251_v34 = vmax.f32 %v221_v30, 0.0  ;;  %v181_v35 = vadd.f32 %v277_v14, %v180_v31  ;;  %v213_v36 = vadd.f32 %v277_v14, %v212_v32 }
  0xde   :  { %v328_v37 = vpop.f32.mrf.mxu0  ;;  %v336_v38 = vpop.f32.mrf.mxu1 }
  0xdf   :  { %260 = vst.msk [vmem:[%s500_s3 + $0x18] sm:$0xff] %vm256_vm2, %v243_v33  ;;  %268 = vst.msk [vmem:[%s500_s3 + $0x58] sm:$0xff] %vm256_vm2, %v251_v34  ;;  %v241_v39 = vmax.f32 %v181_v35, 0.0  ;;  %v249_v40 = vmax.f32 %v213_v36, 0.0  ;;  %v202_v41 = vadd.f32 %v328_v37, %v277_v14  ;;  %v234_v42 = vadd.f32 %v336_v38, %v277_v14 }
  0xe0   :  { %v193_v43 = vpop.f32.mrf.mxu0  ;;  %v225_v44 = vpop.f32.mrf.mxu1 }
  0xe1   :  { %258 = vst.msk [vmem:[%s500_s3 + $0x8] sm:$0xff] %vm256_vm2, %v241_v39  ;;  %266 = vst.msk [vmem:[%s500_s3 + $0x48] sm:$0xff] %vm256_vm2, %v249_v40  ;;  %v246_v45 = vmax.f32 %v202_v41, 0.0  ;;  %v254_v46 = vmax.f32 %v234_v42, 0.0  ;;  %v194_v47 = vadd.f32 %v277_v14, %v193_v43  ;;  %v226_v48 = vadd.f32 %v277_v14, %v225_v44 }
  0xe2   :  { %v329_v49 = vpop.f32.mrf.mxu0  ;;  %v337_v50 = vpop.f32.mrf.mxu1 }
  0xe3   :  { %263 = vst.msk [vmem:[%s500_s3 + $0x30] sm:$0xff] %vm256_vm2, %v246_v45  ;;  %271 = vst.msk [vmem:[%s500_s3 + $0x70] sm:$0xff] %vm256_vm2, %v254_v46  ;;  %v244_v51 = vmax.f32 %v194_v47, 0.0  ;;  %v252_v52 = vmax.f32 %v226_v48, 0.0  ;;  %v205_v53 = vadd.f32 %v329_v49, %v277_v14  ;;  %v237_v54 = vadd.f32 %v337_v50, %v277_v14 }
  0xe4   :  { %v196_v55 = vpop.f32.mrf.mxu0  ;;  %v228_v56 = vpop.f32.mrf.mxu1 }
  0xe5   :  { %261 = vst.msk [vmem:[%s500_s3 + $0x20] sm:$0xff] %vm256_vm2, %v244_v51  ;;  %269 = vst.msk [vmem:[%s500_s3 + $0x60] sm:$0xff] %vm256_vm2, %v252_v52  ;;  %v247_v57 = vmax.f32 %v205_v53, 0.0  ;;  %v255_v58 = vmax.f32 %v237_v54, 0.0  ;;  %v197_v59 = vadd.f32 %v277_v14, %v196_v55  ;;  %v229_v60 = vadd.f32 %v277_v14, %v228_v56 }
  0xe7   :  { %264 = vst.msk [vmem:[%s500_s3 + $0x38] sm:$0xff] %vm256_vm2, %v247_v57  ;;  %272 = vst.msk [vmem:[%s500_s3 + $0x78] sm:$0xff] %vm256_vm2, %v255_v58  ;;  %v245_v61 = vmax.f32 %v197_v59, 0.0  ;;  %v253_v62 = vmax.f32 %v229_v60, 0.0 }
  0xe9   :  { %262 = vst.msk [vmem:[%s500_s3 + $0x28] sm:$0xff] %vm256_vm2, %v245_v61  ;;  %270 = vst.msk [vmem:[%s500_s3 + $0x68] sm:$0xff] %vm256_vm2, %v253_v62 }

// kernel: forward.16
= control target key start
LH: loop header
LB: loop body
LE: loop exit
PB: predicated region body
PF: predicated region fallthrough
CT: control target
= control target key end

     0   :  { %v235_v0 = vmov 0   ;;  %vm116_vm0 = vcmask 130048   ;;  %vm176_vm1 = vcmask 261120   ;;  %s314_s1 = inlined_call_operand.vmem [shape: bf16[144,32], index: 1, kind: input, shape index: {}]   ;;  %s315_s0 = inlined_call_operand.vmem [shape: bf16[32,144], index: 0, kind: input, shape index: {}]   ;;  %s316_s2 = inlined_call_operand.vmem [shape: f32[1,32], index: 2, kind: input, shape index: {}]   ;;  %s317_s3 = inlined_call_operand.vmem [shape: f32[32,32], index: 3, kind: output, shape index: {}]  }
   0x1   :  { %123 = vmatprep.subr.bf16.mxu0 %v235_v0  ;;  %201 = vmatprep.subr.bf16.mxu1 %v235_v0  ;;  %v220_v1 = vld [vmem:[%s314_s1 + $0x38] sm:$0xff]   ;;  %v221_v2 = vld [vmem:[%s314_s1 + $0x30] sm:$0xff]   ;;  %v222_v3 = vld [vmem:[%s314_s1 + $0x28] sm:$0xff]  }
   0x2   :  { %124 = vmatpush1.bf16.msra.mxu0 %v220_v1  ;;  %210 = vmatpush1.bf16.msra.mxu1 %v220_v1  ;;  %v223_v4 = vld [vmem:[%s314_s1 + $0x20] sm:$0xff]   ;;  %v234_v6 = vld [vmem:[%s315_s0 + $0x14] ss:$8 sps:$4 sm:$0xff]   ;;  %v226_v9 = vld [vmem:[%s314_s1 + $0x8] sm:$0xff]  }
   0x3   :  { %125 = vmatprep.subr.bf16.mxu0 %v235_v0  ;;  %202 = vmatprep.subr.bf16.mxu1 %v235_v0  ;;  %v231_v5 = vld [vmem:[%s315_s0 + $0x4] ss:$8 sps:$4 sm:$0xff]   ;;  %v224_v7 = vld [vmem:[%s314_s1 + $0x18] sm:$0xff]   ;;  %v225_v8 = vld [vmem:[%s314_s1 + $0x10] sm:$0xff]  }
   0x4   :  { %199 = vmatprep.mubr.msk.bf16.mxu0 %vm116_vm0, %v231_v5  ;;  %200 = vmatprep.mubr.msk.bf16.mxu1 %vm116_vm0, %v234_v6  ;;  %v227_v10 = vld [vmem:[%s314_s1] sm:$0xff]   ;;  %v232_v13 = vld [vmem:[%s315_s0 + $0x10] ss:$8 sps:$4 sm:$0xff]  }
   0x5   :  { %v228_v11 = vld [vmem:[%s314_s1 + $0x40] sm:$0xff]  }
   0x6   :  { %126 = vmatpush1.bf16.msra.mxu0 %v221_v2  ;;  %211 = vmatpush1.bf16.msra.mxu1 %v221_v2  ;;  %v229_v12 = vld [vmem:[%s315_s0] ss:$8 sps:$4 sm:$0xff]  }
   0x7   :  { %127 = vmatprep.subr.bf16.mxu0 %v235_v0  ;;  %203 = vmatprep.subr.bf16.mxu1 %v235_v0  ;;  %v185_v14 = vld [vmem:[%s316_s2] ss:$0 sm:$0xff] }
   0xa   :  { %128 = vmatpush1.bf16.msra.mxu0 %v222_v3  ;;  %212 = vmatpush1.bf16.msra.mxu1 %v222_v3 }
   0xb   :  { %129 = vmatprep.subr.bf16.mxu0 %v235_v0  ;;  %204 = vmatprep.subr.bf16.mxu1 %v235_v0 }
   0xe   :  { %130 = vmatpush1.bf16.msra.mxu0 %v223_v4  ;;  %213 = vmatpush1.bf16.msra.mxu1 %v223_v4 }
   0xf   :  { %131 = vmatprep.subr.bf16.mxu0 %v235_v0  ;;  %205 = vmatprep.subr.bf16.mxu1 %v235_v0 }
  0x12   :  { %132 = vmatpush1.bf16.msra.mxu0 %v224_v7  ;;  %214 = vmatpush1.bf16.msra.mxu1 %v224_v7 }
  0x13   :  { %133 = vmatprep.subr.bf16.mxu0 %v235_v0  ;;  %206 = vmatprep.subr.bf16.mxu1 %v235_v0 }
  0x16   :  { %134 = vmatpush1.bf16.msra.mxu0 %v225_v8  ;;  %215 = vmatpush1.bf16.msra.mxu1 %v225_v8 }
  0x17   :  { %135 = vmatprep.subr.bf16.mxu0 %v235_v0  ;;  %207 = vmatprep.subr.bf16.mxu1 %v235_v0 }
  0x1a   :  { %136 = vmatpush1.bf16.msra.mxu0 %v226_v9  ;;  %216 = vmatpush1.bf16.msra.mxu1 %v226_v9 }
  0x1b   :  { %137 = vmatprep.subr.bf16.mxu0 %v235_v0  ;;  %208 = vmatprep.subr.bf16.mxu1 %v235_v0 }
  0x1e   :  { %138 = vmatpush1.bf16.msra.mxu0 %v227_v10  ;;  %217 = vmatpush1.bf16.msra.mxu1 %v227_v10 }
  0x1f   :  { %153 = vmatprep.subr.bf16.mxu0 %v235_v0  ;;  %209 = vmatprep.subr.bf16.mxu1 %v235_v0 }
  0x22   :  { %154 = vmatpush2.bf16.msra.mxu0 %v228_v11  ;;  %218 = vmatpush2.bf16.msra.mxu1 %v228_v11 }
  0x25   :  { %156 = vmatmul.mubr.bf16.vlgmr.msra.gmra.mxu0 %v229_v12  ;;  %164 = vmatmul.mubr.bf16.vlgmr.msra.gmra.mxu1 %v232_v13 }
  0xe5   :  { %v157_v15 = vpop.f32.mrf.mxu0  ;;  %v165_v16 = vpop.f32.mrf.mxu1 }
  0xe6   :  { %v158_v17 = vadd.f32 %v185_v14, %v157_v15  ;;  %v166_v18 = vadd.f32 %v185_v14, %v165_v16 }
  0xe7   :  { %v159_v19 = vpop.f32.mrf.mxu0  ;;  %v167_v20 = vpop.f32.mrf.mxu1 }
  0xe8   :  { %v172_v21 = vmax.f32 %v158_v17, 0.0  ;;  %v174_v22 = vmax.f32 %v166_v18, 0.0 }
  0xe9   :  { %v160_v23 = vpop.f32.mrf.mxu0  ;;  %v168_v24 = vpop.f32.mrf.mxu1 }
  0xea   :  { %177 = vst.msk [vmem:[%s317_s3] sm:$0xff] %vm176_vm1, %v172_v21  ;;  %179 = vst.msk [vmem:[%s317_s3 + $0x10] sm:$0xff] %vm176_vm1, %v174_v22  ;;  %v161_v25 = vadd.f32 %v185_v14, %v160_v23  ;;  %v169_v26 = vadd.f32 %v185_v14, %v168_v24 }
  0xeb   :  { %v162_v27 = vpop.f32.mrf.mxu0  ;;  %v170_v28 = vpop.f32.mrf.mxu1 }
  0xec   :  { %v173_v29 = vmax.f32 %v161_v25, 0.0  ;;  %v175_v30 = vmax.f32 %v169_v26, 0.0 }
  0xee   :  { %178 = vst.msk [vmem:[%s317_s3 + $0x8] sm:$0xff] %vm176_vm1, %v173_v29  ;;  %180 = vst.msk [vmem:[%s317_s3 + $0x18] sm:$0xff] %vm176_vm1, %v175_v30 }

// kernel: forward.17
= control target key start
LH: loop header
LB: loop body
LE: loop exit
PB: predicated region body
PF: predicated region fallthrough
CT: control target
= control target key end

     0   :  { %v348_v1 = vmov 0.0   ;;  %vm349_vm0 = vmmov 0   ;;  %vm178_vm1 = vcmask 261120   ;;  %vm263_vm2 = vcmask 523264   ;;  %s436_s1 = inlined_call_operand.vmem [shape: bf16[288,64], index: 1, kind: input, shape index: {}]   ;;  %s437_s0 = inlined_call_operand.vmem [shape: bf16[8,288], index: 0, kind: input, shape index: {}]   ;;  %s438_s2 = inlined_call_operand.vmem [shape: f32[1,64], index: 2, kind: input, shape index: {}]   ;;  %s439_s3 = inlined_call_operand.vmem [shape: f32[8,64], index: 3, kind: output, shape index: {}]  }
   0x1   :  { %v327_v0 = vld [vmem:[%s436_s1 + $0x78] sm:$0xff]   ;;  %317 = vmatprep.subr.bf16.mxu1 %v348_v1  ;;  %321 = vmatprep.mubr.msk.bf16.mxu1 %vm349_vm0, %v348_v1  ;;  %v329_v3 = vld [vmem:[%s436_s1 + $0x70] sm:$0xff]   ;;  %v331_v5 = vld [vmem:[%s436_s1 + $0x68] sm:$0xff]  }
   0x2   :  { %v328_v2 = vld [vmem:[%s436_s1 + $0x38] sm:$0xff]   ;;  %292 = vmatprep.subr.bf16.mxu0 %v327_v0  ;;  %v330_v4 = vld [vmem:[%s436_s1 + $0x30] sm:$0xff]   ;;  %v332_v6 = vld [vmem:[%s436_s1 + $0x28] sm:$0xff]  }
   0x3   :  { %293 = vmatpush3.bf16.msra.mxu0 %v328_v2  ;;  %v333_v7 = vld [vmem:[%s436_s1 + $0x60] sm:$0xff]   ;;  %v335_v9 = vld [vmem:[%s436_s1 + $0x58] sm:$0xff]   ;;  %v340_v10 = vld [vmem:[%s436_s1 + $0x88] sm:$0xff]  }
   0x4   :  { %294 = vmatprep.subr.bf16.mxu0 %v329_v3  ;;  %v334_v8 = vld [vmem:[%s436_s1 + $0x20] sm:$0xff]   ;;  %v336_v11 = vld [vmem:[%s436_s1 + $0x18] sm:$0xff]   ;;  %v337_v12 = vld [vmem:[%s436_s1 + $0x50] sm:$0xff]   ;;  %318 = vmatpush3.bf16.msra.mxu1 %v340_v10 }
   0x5   :  { %319 = vmatprep.subr.bf16.mxu1 %v348_v1  ;;  %v343_v13 = vld [vmem:[%s436_s1 + $0x80] sm:$0xff]   ;;  %v347_v15 = vld [vmem:[%s437_s0 + $0x8] ss:$0 sps:$4 sm:$0xff]   ;;  %v338_v16 = vld [vmem:[%s436_s1 + $0x10] sm:$0xff]  }
   0x6   :  { %v15_v14 = vld [vmem:[%s437_s0] sm:$0xff]  ;;  %v339_v18 = vld [vmem:[%s436_s1 + $0x48] sm:$0xff]  }
   0x7   :  { %295 = vmatpush3.bf16.msra.mxu0 %v330_v4  ;;  %v271_v17 = vcombine.high %v15_v14, %v15_v14  ;;  %v341_v19 = vld [vmem:[%s436_s1 + $0x8] sm:$0xff]   ;;  %v342_v20 = vld [vmem:[%s436_s1 + $0x40] sm:$0xff]   ;;  %v270_v22 = vcombine.low %v15_v14, %v15_v14 }
   0x8   :  { %296 = vmatprep.subr.bf16.mxu0 %v331_v5  ;;  %320 = vmatpush3.bf16.msra.mxu1 %v343_v13  ;;  %v344_v21 = vld [vmem:[%s436_s1] sm:$0xff]  }
   0x9   :  { %214 = vmatprep.mubr.bf16.mxu0 %v271_v17  ;;  %v269_v28 = vld [vmem:[%s438_s2] ss:$0 sm:$0xff] }
   0xb   :  { %297 = vmatpush3.bf16.msra.mxu0 %v332_v6  ;;  %322 = vmatmul.mubr.msk.bf16.vlgmr.msra.gmra.mxu1 %vm178_vm1, %v347_v15 }
   0xc   :  { %298 = vmatprep.subr.bf16.mxu0 %v333_v7 }
   0xf   :  { %299 = vmatpush3.bf16.msra.mxu0 %v334_v8 }
  0x10   :  { %300 = vmatprep.subr.bf16.mxu0 %v335_v9 }
  0x13   :  { %301 = vmatpush3.bf16.msra.mxu0 %v336_v11 }
  0x14   :  { %302 = vmatprep.subr.bf16.mxu0 %v337_v12 }
  0x17   :  { %303 = vmatpush3.bf16.msra.mxu0 %v338_v16 }
  0x18   :  { %304 = vmatprep.subr.bf16.mxu0 %v339_v18 }
  0x1b   :  { %305 = vmatpush3.bf16.msra.mxu0 %v341_v19 }
  0x1c   :  { %306 = vmatprep.subr.bf16.mxu0 %v342_v20 }
  0x1f   :  { %307 = vmatpush3.bf16.msra.mxu0 %v344_v21 }
  0x22   :  { %215 = vmatmul.mubr.bf16.vlgmr.msra.gmra.mxu0 %v270_v22 }
  0xcb   :  { %v256_v23 = vpop.f32.mrf.mxu1 }
  0xcd   :  { %v323_v24 = vpop.f32.mrf.mxu1 }
  0xcf   :  { %v259_v25 = vpop.f32.mrf.mxu1 }
  0xd1   :  { %v324_v26 = vpop.f32.mrf.mxu1 }
  0xe2   :  { %v308_v27 = vpop.f32.mrf.mxu0 }
  0xe4   :  { %v309_v29 = vpop.f32.mrf.mxu0 }
  0xe5   :  { %v310_v30 = vadd.f32 %v309_v29, %v308_v27 }
  0xe6   :  { %v311_v31 = vpop.f32.mrf.mxu0 }
  0xe7   :  { %v217_v32 = vadd.f32 %v310_v30, %v269_v28 }
  0xe8   :  { %v312_v33 = vpop.f32.mrf.mxu0 }
  0xe9   :  { %v257_v34 = vadd.f32 %v256_v23, %v217_v32 }
  0xeb   :  { %v262_v35 = vmax.f32 %v257_v34, 0.0 }
  0xed   :  { %264 = vst.msk [vmem:[%s439_s3] sm:$0xff] %vm263_vm2, %v262_v35 }

// kernel: forward.19
= control target key start
LH: loop header
LB: loop body
LE: loop exit
PB: predicated region body
PF: predicated region fallthrough
CT: control target
= control target key end

     0   :  { %vm86_vm0 = vcmask 130048   ;;  %vm208_vm1 = vcmask 64512   ;;  %s407_s1 = inlined_call_operand.vmem [shape: bf16[16,8], index: 1, kind: input, shape index: {}]   ;;  %s408_s0 = inlined_call_operand.vmem [shape: bf16[128,16], index: 0, kind: input, shape index: {}]   ;;  %s409_s2 = inlined_call_operand.vmem [shape: f32[1,8], index: 2, kind: input, shape index: {}]   ;;  %s410_s3 = inlined_call_operand.vmem [shape: f32[128,8], index: 3, kind: output, shape index: {}]  }
   0x1   :  { %v276_v0 = vld [vmem:[%s407_s1] sm:$0xff]   ;;  %v279_v3 = vld [vmem:[%s408_s0 + $0x8] sm:$0xff]   ;;  %v281_v5 = vld [vmem:[%s408_s0 + $0x10] sm:$0xff]  }
   0x2   :  { %v277_v1 = vld [vmem:[%s408_s0] sm:$0xff]   ;;  %256 = vmatprep.subr.bf16.mxu0 %v276_v0  ;;  %274 = vmatprep.subr.bf16.mxu1 %v276_v0  ;;  %v280_v4 = vld [vmem:[%s408_s0 + $0x28] sm:$0xff]   ;;  %v282_v6 = vld [vmem:[%s408_s0 + $0x30] sm:$0xff]  }
   0x3   :  { %v278_v2 = vld [vmem:[%s408_s0 + $0x20] sm:$0xff]   ;;  %257 = vmatpush3.bf16.msra.mxu0 %v276_v0  ;;  %275 = vmatpush3.bf16.msra.mxu1 %v276_v0  ;;  %v283_v7 = vld [vmem:[%s408_s0 + $0x18] sm:$0xff]  }
   0x4   :  { %258 = vmatprep.mubr.msk.bf16.mxu0 %vm86_vm0, %v277_v1  ;;  %266 = vmatprep.mubr.msk.bf16.mxu1 %vm86_vm0, %v278_v2  ;;  %v284_v8 = vld [vmem:[%s408_s0 + $0x38] sm:$0xff]   ;;  %v229_v9 = vld [vmem:[%s409_s2] ss:$0 sm:$0xff] }
   0x6   :  { %259 = vmatmul.mubr.msk.bf16.vlgmr.msra.gmra.mxu0 %vm86_vm0, %v279_v3  ;;  %267 = vmatmul.mubr.msk.bf16.vlgmr.msra.gmra.mxu1 %vm86_vm0, %v280_v4 }
   0x7   :  { %262 = vmatprep.mubr.msk.bf16.mxu0 %vm86_vm0, %v281_v5  ;;  %270 = vmatprep.mubr.msk.bf16.mxu1 %vm86_vm0, %v282_v6 }
   0xe   :  { %263 = vmatmul.mubr.msk.bf16.gmra.mxu0 %vm86_vm0, %v283_v7  ;;  %271 = vmatmul.mubr.msk.bf16.gmra.mxu1 %vm86_vm0, %v284_v8 }
  0xc6   :  { %v260_v10 = vpop.f32.mrf.mxu0  ;;  %v268_v11 = vpop.f32.mrf.mxu1 }
  0xc7   :  { %v154_v12 = vadd.f32 %v260_v10, %v229_v9  ;;  %v186_v13 = vadd.f32 %v268_v11, %v229_v9 }
  0xc8   :  { %v145_v14 = vpop.f32.mrf.mxu0  ;;  %v177_v15 = vpop.f32.mrf.mxu1 }
  0xc9   :  { %211 = vst.msk [vmem:[%s410_s3 + $0x10] sm:$0xff] %vm208_vm1, %v154_v12  ;;  %219 = vst.msk [vmem:[%s410_s3 + $0x50] sm:$0xff] %vm208_vm1, %v186_v13  ;;  %v146_v16 = vadd.f32 %v229_v9, %v145_v14  ;;  %v178_v17 = vadd.f32 %v229_v9, %v177_v15 }
  0xca   :  { %v261_v18 = vpop.f32.mrf.mxu0  ;;  %v269_v19 = vpop.f32.mrf.mxu1 }
  0xcb   :  { %209 = vst.msk [vmem:[%s410_s3] sm:$0xff] %vm208_vm1, %v146_v16  ;;  %217 = vst.msk [vmem:[%s410_s3 + $0x40] sm:$0xff] %vm208_vm1, %v178_v17  ;;  %v157_v20 = vadd.f32 %v261_v18, %v229_v9  ;;  %v189_v21 = vadd.f32 %v269_v19, %v229_v9 }
  0xcc   :  { %v148_v22 = vpop.f32.mrf.mxu0  ;;  %v180_v23 = vpop.f32.mrf.mxu1 }
  0xcd   :  { %212 = vst.msk [vmem:[%s410_s3 + $0x18] sm:$0xff] %vm208_vm1, %v157_v20  ;;  %220 = vst.msk [vmem:[%s410_s3 + $0x58] sm:$0xff] %vm208_vm1, %v189_v21  ;;  %v149_v24 = vadd.f32 %v229_v9, %v148_v22  ;;  %v181_v25 = vadd.f32 %v229_v9, %v180_v23 }
  0xce   :  { %v264_v26 = vpop.f32.mrf.mxu0  ;;  %v272_v27 = vpop.f32.mrf.mxu1 }
  0xcf   :  { %210 = vst.msk [vmem:[%s410_s3 + $0x8] sm:$0xff] %vm208_vm1, %v149_v24  ;;  %218 = vst.msk [vmem:[%s410_s3 + $0x48] sm:$0xff] %vm208_vm1, %v181_v25  ;;  %v170_v28 = vadd.f32 %v264_v26, %v229_v9  ;;  %v202_v29 = vadd.f32 %v272_v27, %v229_v9 }
  0xd0   :  { %v161_v30 = vpop.f32.mrf.mxu0  ;;  %v193_v31 = vpop.f32.mrf.mxu1 }
  0xd1   :  { %215 = vst.msk [vmem:[%s410_s3 + $0x30] sm:$0xff] %vm208_vm1, %v170_v28  ;;  %223 = vst.msk [vmem:[%s410_s3 + $0x70] sm:$0xff] %vm208_vm1, %v202_v29  ;;  %v162_v32 = vadd.f32 %v229_v9, %v161_v30  ;;  %v194_v33 = vadd.f32 %v229_v9, %v193_v31 }
  0xd2   :  { %v265_v34 = vpop.f32.mrf.mxu0  ;;  %v273_v35 = vpop.f32.mrf.mxu1 }
  0xd3   :  { %213 = vst.msk [vmem:[%s410_s3 + $0x20] sm:$0xff] %vm208_vm1, %v162_v32  ;;  %221 = vst.msk [vmem:[%s410_s3 + $0x60] sm:$0xff] %vm208_vm1, %v194_v33  ;;  %v173_v36 = vadd.f32 %v265_v34, %v229_v9  ;;  %v205_v37 = vadd.f32 %v273_v35, %v229_v9 }
  0xd4   :  { %v164_v38 = vpop.f32.mrf.mxu0  ;;  %v196_v39 = vpop.f32.mrf.mxu1 }
  0xd5   :  { %216 = vst.msk [vmem:[%s410_s3 + $0x38] sm:$0xff] %vm208_vm1, %v173_v36  ;;  %224 = vst.msk [vmem:[%s410_s3 + $0x78] sm:$0xff] %vm208_vm1, %v205_v37  ;;  %v165_v40 = vadd.f32 %v229_v9, %v164_v38  ;;  %v197_v41 = vadd.f32 %v229_v9, %v196_v39 }
  0xd7   :  { %214 = vst.msk [vmem:[%s410_s3 + $0x28] sm:$0xff] %vm208_vm1, %v165_v40  ;;  %222 = vst.msk [vmem:[%s410_s3 + $0x68] sm:$0xff] %vm208_vm1, %v197_v41 }

// kernel: forward.20
= control target key start
LH: loop header
LB: loop body
LE: loop exit
PB: predicated region body
PF: predicated region fallthrough
CT: control target
= control target key end

     0   :  { %vm52_vm0 = vcmask 261120   ;;  %vm108_vm1 = vcmask 64512   ;;  %s187_s1 = inlined_call_operand.vmem [shape: bf16[32,8], index: 1, kind: input, shape index: {}]   ;;  %s188_s0 = inlined_call_operand.vmem [shape: bf16[32,32], index: 0, kind: input, shape index: {}]   ;;  %s189_s2 = inlined_call_operand.vmem [shape: f32[1,8], index: 2, kind: input, shape index: {}]   ;;  %s190_s3 = inlined_call_operand.vmem [shape: f32[32,8], index: 3, kind: output, shape index: {}]  }
   0x1   :  { %v136_v0 = vld [vmem:[%s187_s1 + $0x8] sm:$0xff]   ;;  %v137_v1 = vld [vmem:[%s187_s1] sm:$0xff]  }
   0x2   :  { %128 = vmatprep.subr.bf16.mxu0 %v136_v0  ;;  %v138_v2 = vld [vmem:[%s188_s0] sm:$0xff]   ;;  %v139_v3 = vld [vmem:[%s188_s0 + $0x8] sm:$0xff]  }
   0x3   :  { %129 = vmatpush3.bf16.msra.mxu0 %v136_v0  ;;  %132 = vmatprep.mubr.msk.bf16.mxu0 %vm52_vm0, %v138_v2  ;;  %v117_v4 = vld [vmem:[%s189_s2] ss:$0 sm:$0xff] }
   0x4   :  { %130 = vmatprep.subr.bf16.mxu0 %v137_v1 }
   0x7   :  { %131 = vmatpush3.bf16.msra.mxu0 %v137_v1 }
   0xa   :  { %133 = vmatmul.mubr.msk.bf16.vlgmr.msra.gmra.mxu0 %vm52_vm0, %v139_v3 }
  0xca   :  { %v134_v5 = vpop.f32.mrf.mxu0 }
  0xcb   :  { %v102_v6 = vadd.f32 %v134_v5, %v117_v4 }
  0xcc   :  { %v93_v7 = vpop.f32.mrf.mxu0 }
  0xcd   :  { %111 = vst.msk [vmem:[%s190_s3 + $0x10] sm:$0xff] %vm108_vm1, %v102_v6  ;;  %v94_v8 = vadd.f32 %v117_v4, %v93_v7 }
  0xce   :  { %v135_v9 = vpop.f32.mrf.mxu0 }
  0xcf   :  { %109 = vst.msk [vmem:[%s190_s3] sm:$0xff] %vm108_vm1, %v94_v8  ;;  %v105_v10 = vadd.f32 %v135_v9, %v117_v4 }
  0xd0   :  { %v96_v11 = vpop.f32.mrf.mxu0 }
  0xd1   :  { %112 = vst.msk [vmem:[%s190_s3 + $0x18] sm:$0xff] %vm108_vm1, %v105_v10  ;;  %v97_v12 = vadd.f32 %v117_v4, %v96_v11 }
  0xd3   :  { %110 = vst.msk [vmem:[%s190_s3 + $0x8] sm:$0xff] %vm108_vm1, %v97_v12 }

// kernel: forward.21
= control target key start
LH: loop header
LB: loop body
LE: loop exit
PB: predicated region body
PF: predicated region fallthrough
CT: control target
= control target key end

     0   :  { %v134_v0 = vmov 0.0   ;;  %vm135_vm0 = vmmov 0   ;;  %vm55_vm1 = vcmask 523264   ;;  %vm99_vm2 = vcmask 64512   ;;  %s177_s1 = inlined_call_operand.vmem [shape: bf16[64,8], index: 1, kind: input, shape index: {}]   ;;  %s178_s0 = inlined_call_operand.vmem [shape: bf16[8,64], index: 0, kind: input, shape index: {}]   ;;  %s179_s2 = inlined_call_operand.vmem [shape: f32[1,8], index: 2, kind: input, shape index: {}]   ;;  %s180_s3 = inlined_call_operand.vmem [shape: f32[8,8], index: 3, kind: output, shape index: {}]  }
   0x1   :  { %116 = vmatprep.subr.bf16.mxu0 %v134_v0  ;;  %v130_v1 = vld [vmem:[%s177_s1 + $0x18] sm:$0xff]   ;;  %124 = vmatprep.mubr.msk.bf16.mxu0 %vm135_vm0, %v134_v0  ;;  %v131_v2 = vld [vmem:[%s177_s1 + $0x10] sm:$0xff]   ;;  %v132_v3 = vld [vmem:[%s177_s1 + $0x8] sm:$0xff]  }
   0x2   :  { %117 = vmatpush3.bf16.msra.mxu0 %v130_v1  ;;  %v133_v4 = vld [vmem:[%s177_s1] sm:$0xff]  }
   0x3   :  { %118 = vmatprep.subr.bf16.mxu0 %v134_v0  ;;  %v15_v5 = vld [vmem:[%s178_s0] sm:$0xf] }
   0x4   :  { %v105_v6 = vld [vmem:[%s179_s2] ss:$0 sm:$0xff] }
   0x6   :  { %119 = vmatpush3.bf16.msra.mxu0 %v131_v2 }
   0x7   :  { %120 = vmatprep.subr.bf16.mxu0 %v134_v0 }
   0xa   :  { %121 = vmatpush3.bf16.msra.mxu0 %v132_v3 }
   0xb   :  { %122 = vmatprep.subr.bf16.mxu0 %v134_v0 }
   0xe   :  { %123 = vmatpush3.bf16.msra.mxu0 %v133_v4 }
  0x11   :  { %125 = vmatmul.mubr.msk.bf16.vlgmr.msra.gmra.mxu0 %vm55_vm1, %v15_v5 }
  0xd1   :  { %v93_v7 = vpop.f32.mrf.mxu0 }
  0xd2   :  { %v94_v8 = vadd.f32 %v105_v6, %v93_v7 }
  0xd3   :  { %v126_v9 = vpop.f32.mrf.mxu0 }
  0xd4   :  { %100 = vst.msk [vmem:[%s180_s3] sm:$0xff] %vm99_vm2, %v94_v8 }
  0xd5   :  { %v96_v10 = vpop.f32.mrf.mxu0 }
  0xd7   :  { %v127_v11 = vpop.f32.mrf.mxu0 }

// kernel: forward.18
= control target key start
LH: loop header
LB: loop body
LE: loop exit
PB: predicated region body
PF: predicated region fallthrough
CT: control target
= control target key end

     0   :  { %s748_s12 = smov 0   ;;  %s909_s0 = inlined_call_operand.vmem [shape: bf16[512,8], index: 0, kind: input, shape index: {}]   ;;  %s910_s1 = inlined_call_operand.vmem [shape: bf16[8,8], index: 1, kind: input, shape index: {}]   ;;  %s911_s2 = inlined_call_operand.vmem [shape: f32[1,8], index: 2, kind: input, shape index: {}]   ;;  %s912_s3 = inlined_call_operand.vmem [shape: f32[512,8], index: 3, kind: output, shape index: {}]  }
   0x1 LB: > { %s597_s13 = sadd.s32 4294967295, %s726_s12   ;;  %p601_p0 = scmp.ge.s32.totalorder %s726_s12, 1  ;;  %s726_s12 = sphi %s748_s12, %s13_s12  }
   0x2   : > { %p138_p1 = scmp.lt.s32.totalorder %s726_s12, 3 }
   0x4   : > { %p139_p2 = pnand %p601_p0, %p138_p1 }
   0x5   : > { %s602_s16 = sshll.u32 (!%p139_p2), %s597_s13, 5 }
   0x6   : > { %142 = sbr.rel (%p139_p2) target bundleno = 243 (0xf3), region = 32  ;;  %p163_p3 = scmp.lt.s32.totalorder (!%p139_p2), %s602_s16, 63 }
   0xb   : > { %v207_v0 = vld [vmem:[%s910_s1] sm:$0xf]  ;;  %vm344_vm0 = vcmask 1043456   ;;  %s914_s16 = smov (!%p163_p3, %s602_s16), 63  ;;  %vm295_vm1 = vcmask 64512  }
   0xc   : > { %694 = vmatprep.subr.msk.bf16.mxu0 %vm344_vm0, %v207_v0  ;;  %695 = vmatprep.subr.msk.bf16.mxu1 %vm344_vm0, %v207_v0  ;;  %v346_v1 = vsel %vm344_vm0, %v207_v0, 0  ;;  %s603_s17 = sshll.u32 %s914_s16, 2  ;;  %s605_s21 = sshll.u32 %s914_s16, 3  ;;  %v803_v18 = vld [vmem:[%s911_s2] ss:$0 sm:$0xff] }
   0xd   : > { %659 = vmatpush3.bf16.msra.mxu0 %v346_v1  ;;  %693 = vmatpush3.bf16.msra.mxu1 %v346_v1  ;;  %s765_s20 = scalar_lea.vmem %s909_s0, %s603_s17  ;;  %s808_s26 = scalar_lea.vmem %s912_s3, %s605_s21 }
   0xe   : > { %v704_v2 = vld [vmem:[%s765_s20] sm:$0xff]   ;;  %v706_v4 = vld [vmem:[%s765_s20 + $0x8] sm:$0xff]   ;;  %v708_v6 = vld [vmem:[%s765_s20 + $0x10] sm:$0xff]  }
   0xf   : > { %v705_v3 = vld [vmem:[%s765_s20 + $0x40] sm:$0xff]   ;;  %660 = vmatprep.mubr.msk.bf16.mxu0 %vm295_vm1, %v704_v2  ;;  %v707_v5 = vld [vmem:[%s765_s20 + $0x48] sm:$0xff]   ;;  %v709_v7 = vld [vmem:[%s765_s20 + $0x50] sm:$0xff]  }
  0x10   : > { %676 = vmatprep.mubr.msk.bf16.mxu1 %vm295_vm1, %v705_v3  ;;  %661 = vmatmul.mubr.msk.bf16.vlgmr.msra.gmra.mxu0 %vm295_vm1, %v706_v4  ;;  %v710_v8 = vld [vmem:[%s765_s20 + $0x18] sm:$0xff]   ;;  %v712_v10 = vld [vmem:[%s765_s20 + $0x20] sm:$0xff]   ;;  %v714_v12 = vld [vmem:[%s765_s20 + $0x28] sm:$0xff]  }
  0x11   : > { %677 = vmatmul.mubr.msk.bf16.vlgmr.msra.gmra.mxu1 %vm295_vm1, %v707_v5  ;;  %664 = vmatprep.mubr.msk.bf16.mxu0 %vm295_vm1, %v708_v6  ;;  %v711_v9 = vld [vmem:[%s765_s20 + $0x58] sm:$0xff]   ;;  %v713_v11 = vld [vmem:[%s765_s20 + $0x60] sm:$0xff]   ;;  %v715_v13 = vld [vmem:[%s765_s20 + $0x68] sm:$0xff]  }
  0x12   : > { %680 = vmatprep.mubr.msk.bf16.mxu1 %vm295_vm1, %v709_v7  ;;  %v716_v14 = vld [vmem:[%s765_s20 + $0x30] sm:$0xff]   ;;  %v718_v16 = vld [vmem:[%s765_s20 + $0x38] sm:$0xff]  }
  0x13   : > { %v717_v15 = vld [vmem:[%s765_s20 + $0x70] sm:$0xff]   ;;  %v719_v17 = vld [vmem:[%s765_s20 + $0x78] sm:$0xff]  }
  0x18   : > { %665 = vmatmul.mubr.msk.bf16.gmra.mxu0 %vm295_vm1, %v710_v8 }
  0x19   : > { %681 = vmatmul.mubr.msk.bf16.gmra.mxu1 %vm295_vm1, %v711_v9  ;;  %668 = vmatprep.mubr.msk.bf16.mxu0 %vm295_vm1, %v712_v10 }
  0x1a   : > { %684 = vmatprep.mubr.msk.bf16.mxu1 %vm295_vm1, %v713_v11 }
  0x20   : > { %669 = vmatmul.mubr.msk.bf16.gmra.mxu0 %vm295_vm1, %v714_v12 }
  0x21   : > { %685 = vmatmul.mubr.msk.bf16.gmra.mxu1 %vm295_vm1, %v715_v13  ;;  %672 = vmatprep.mubr.msk.bf16.mxu0 %vm295_vm1, %v716_v14 }
  0x22   : > { %688 = vmatprep.mubr.msk.bf16.mxu1 %vm295_vm1, %v717_v15 }
  0x28   : > { %673 = vmatmul.mubr.msk.bf16.gmra.mxu0 %vm295_vm1, %v718_v16 }
  0x29   : > { %689 = vmatmul.mubr.msk.bf16.gmra.mxu1 %vm295_vm1, %v719_v17 }
  0xd0   : > { %v662_v19 = vpop.f32.mrf.mxu0 }
  0xd1   : > { %v391_v20 = vadd.f32 %v662_v19, %v803_v18  ;;  %v678_v21 = vpop.f32.mrf.mxu1 }
  0xd2   : > { %v455_v22 = vadd.f32 %v678_v21, %v803_v18  ;;  %v382_v23 = vpop.f32.mrf.mxu0 }
  0xd3   : > { %511 = vst.msk [vmem:[%s808_s26 + $0x10] sm:$0xff] %vm295_vm1, %v391_v20  ;;  %v383_v24 = vadd.f32 %v803_v18, %v382_v23  ;;  %v446_v25 = vpop.f32.mrf.mxu1 }
  0xd4   : > { %527 = vst.msk [vmem:[%s808_s26 + $0x90] sm:$0xff] %vm295_vm1, %v455_v22  ;;  %v447_v26 = vadd.f32 %v803_v18, %v446_v25  ;;  %v663_v27 = vpop.f32.mrf.mxu0 }
  0xd5   : > { %509 = vst.msk [vmem:[%s808_s26] sm:$0xff] %vm295_vm1, %v383_v24  ;;  %v394_v28 = vadd.f32 %v663_v27, %v803_v18  ;;  %v679_v29 = vpop.f32.mrf.mxu1 }
  0xd6   : > { %525 = vst.msk [vmem:[%s808_s26 + $0x80] sm:$0xff] %vm295_vm1, %v447_v26  ;;  %v458_v30 = vadd.f32 %v679_v29, %v803_v18  ;;  %v385_v31 = vpop.f32.mrf.mxu0 }
  0xd7   : > { %512 = vst.msk [vmem:[%s808_s26 + $0x18] sm:$0xff] %vm295_vm1, %v394_v28  ;;  %v386_v32 = vadd.f32 %v803_v18, %v385_v31  ;;  %v449_v33 = vpop.f32.mrf.mxu1 }
  0xd8   : > { %528 = vst.msk [vmem:[%s808_s26 + $0x98] sm:$0xff] %vm295_vm1, %v458_v30  ;;  %v450_v34 = vadd.f32 %v803_v18, %v449_v33  ;;  %v666_v35 = vpop.f32.mrf.mxu0 }
  0xd9   : > { %510 = vst.msk [vmem:[%s808_s26 + $0x8] sm:$0xff] %vm295_vm1, %v386_v32  ;;  %v407_v36 = vadd.f32 %v666_v35, %v803_v18  ;;  %v682_v37 = vpop.f32.mrf.mxu1 }
  0xda   : > { %526 = vst.msk [vmem:[%s808_s26 + $0x88] sm:$0xff] %vm295_vm1, %v450_v34  ;;  %v471_v38 = vadd.f32 %v682_v37, %v803_v18  ;;  %v398_v39 = vpop.f32.mrf.mxu0 }
  0xdb   : > { %515 = vst.msk [vmem:[%s808_s26 + $0x30] sm:$0xff] %vm295_vm1, %v407_v36  ;;  %v399_v40 = vadd.f32 %v803_v18, %v398_v39  ;;  %v462_v41 = vpop.f32.mrf.mxu1 }
  0xdc   : > { %531 = vst.msk [vmem:[%s808_s26 + $0xb0] sm:$0xff] %vm295_vm1, %v471_v38  ;;  %v463_v42 = vadd.f32 %v803_v18, %v462_v41  ;;  %v667_v43 = vpop.f32.mrf.mxu0 }
  0xdd   : > { %513 = vst.msk [vmem:[%s808_s26 + $0x20] sm:$0xff] %vm295_vm1, %v399_v40  ;;  %v410_v44 = vadd.f32 %v667_v43, %v803_v18  ;;  %v683_v45 = vpop.f32.mrf.mxu1 }
  0xde   : > { %529 = vst.msk [vmem:[%s808_s26 + $0xa0] sm:$0xff] %vm295_vm1, %v463_v42  ;;  %v474_v46 = vadd.f32 %v683_v45, %v803_v18  ;;  %v401_v47 = vpop.f32.mrf.mxu0 }
  0xdf   : > { %516 = vst.msk [vmem:[%s808_s26 + $0x38] sm:$0xff] %vm295_vm1, %v410_v44  ;;  %v402_v48 = vadd.f32 %v803_v18, %v401_v47  ;;  %v465_v49 = vpop.f32.mrf.mxu1 }
  0xe0   : > { %532 = vst.msk [vmem:[%s808_s26 + $0xb8] sm:$0xff] %vm295_vm1, %v474_v46  ;;  %v466_v50 = vadd.f32 %v803_v18, %v465_v49  ;;  %v670_v51 = vpop.f32.mrf.mxu0 }
  0xe1   : > { %514 = vst.msk [vmem:[%s808_s26 + $0x28] sm:$0xff] %vm295_vm1, %v402_v48  ;;  %v423_v52 = vadd.f32 %v670_v51, %v803_v18  ;;  %v686_v53 = vpop.f32.mrf.mxu1 }
  0xe2   : > { %530 = vst.msk [vmem:[%s808_s26 + $0xa8] sm:$0xff] %vm295_vm1, %v466_v50  ;;  %v487_v54 = vadd.f32 %v686_v53, %v803_v18  ;;  %v414_v55 = vpop.f32.mrf.mxu0 }
  0xe3   : > { %519 = vst.msk [vmem:[%s808_s26 + $0x50] sm:$0xff] %vm295_vm1, %v423_v52  ;;  %v415_v56 = vadd.f32 %v803_v18, %v414_v55  ;;  %v478_v57 = vpop.f32.mrf.mxu1 }
  0xe4   : > { %535 = vst.msk [vmem:[%s808_s26 + $0xd0] sm:$0xff] %vm295_vm1, %v487_v54  ;;  %v479_v58 = vadd.f32 %v803_v18, %v478_v57  ;;  %v671_v59 = vpop.f32.mrf.mxu0 }
  0xe5   : > { %517 = vst.msk [vmem:[%s808_s26 + $0x40] sm:$0xff] %vm295_vm1, %v415_v56  ;;  %v426_v60 = vadd.f32 %v671_v59, %v803_v18  ;;  %v687_v61 = vpop.f32.mrf.mxu1 }
  0xe6   : > { %533 = vst.msk [vmem:[%s808_s26 + $0xc0] sm:$0xff] %vm295_vm1, %v479_v58  ;;  %v490_v62 = vadd.f32 %v687_v61, %v803_v18  ;;  %v417_v63 = vpop.f32.mrf.mxu0 }
  0xe7   : > { %520 = vst.msk [vmem:[%s808_s26 + $0x58] sm:$0xff] %vm295_vm1, %v426_v60  ;;  %v418_v0 = vadd.f32 %v803_v18, %v417_v63  ;;  %v481_v1 = vpop.f32.mrf.mxu1 }
  0xe8   : > { %536 = vst.msk [vmem:[%s808_s26 + $0xd8] sm:$0xff] %vm295_vm1, %v490_v62  ;;  %v482_v2 = vadd.f32 %v803_v18, %v481_v1  ;;  %v674_v3 = vpop.f32.mrf.mxu0 }
  0xe9   : > { %518 = vst.msk [vmem:[%s808_s26 + $0x48] sm:$0xff] %vm295_vm1, %v418_v0  ;;  %v439_v4 = vadd.f32 %v674_v3, %v803_v18  ;;  %v690_v5 = vpop.f32.mrf.mxu1 }
  0xea   : > { %534 = vst.msk [vmem:[%s808_s26 + $0xc8] sm:$0xff] %vm295_vm1, %v482_v2  ;;  %v503_v6 = vadd.f32 %v690_v5, %v803_v18  ;;  %v430_v7 = vpop.f32.mrf.mxu0 }
  0xeb   : > { %523 = vst.msk [vmem:[%s808_s26 + $0x70] sm:$0xff] %vm295_vm1, %v439_v4  ;;  %v431_v8 = vadd.f32 %v803_v18, %v430_v7  ;;  %v494_v9 = vpop.f32.mrf.mxu1 }
  0xec   : > { %539 = vst.msk [vmem:[%s808_s26 + $0xf0] sm:$0xff] %vm295_vm1, %v503_v6  ;;  %v495_v10 = vadd.f32 %v803_v18, %v494_v9  ;;  %v675_v11 = vpop.f32.mrf.mxu0 }
  0xed   : > { %521 = vst.msk [vmem:[%s808_s26 + $0x60] sm:$0xff] %vm295_vm1, %v431_v8  ;;  %v442_v12 = vadd.f32 %v675_v11, %v803_v18  ;;  %v691_v13 = vpop.f32.mrf.mxu1 }
  0xee   : > { %537 = vst.msk [vmem:[%s808_s26 + $0xe0] sm:$0xff] %vm295_vm1, %v495_v10  ;;  %v506_v14 = vadd.f32 %v691_v13, %v803_v18  ;;  %v433_v15 = vpop.f32.mrf.mxu0 }
  0xef   : > { %524 = vst.msk [vmem:[%s808_s26 + $0x78] sm:$0xff] %vm295_vm1, %v442_v12  ;;  %v434_v16 = vadd.f32 %v803_v18, %v433_v15  ;;  %v497_v17 = vpop.f32.mrf.mxu1 }
  0xf0   : > { %540 = vst.msk [vmem:[%s808_s26 + $0xf8] sm:$0xff] %vm295_vm1, %v506_v14  ;;  %v498_v19 = vadd.f32 %v803_v18, %v497_v17 }
  0xf1   : > { %522 = vst.msk [vmem:[%s808_s26 + $0x68] sm:$0xff] %vm295_vm1, %v434_v16 }
  0xf2   : > { %538 = vst.msk [vmem:[%s808_s26 + $0xe8] sm:$0xff] %vm295_vm1, %v498_v19 }
  0xf3 PF: > { %s13_s12 = sadd.s32 1, %s726_s12  }
  0xf4   : > { %p10_p4 = scmp.ge.s32.totalorder %s13_s12, 4  }
  0xf6   :  { %12 = sbr.rel (!%p10_p4) target bundleno = 1 (0x1), region = 62 }

// kernel: forward.22
= control target key start
LH: loop header
LB: loop body
LE: loop exit
PB: predicated region body
PF: predicated region fallthrough
CT: control target
= control target key end

     0   :  { %s814_s12 = smov 0   ;;  %s987_s0 = inlined_call_operand.vmem [shape: bf16[512,72], index: 0, kind: input, shape index: {}]   ;;  %s988_s1 = inlined_call_operand.vmem [shape: bf16[72,8], index: 1, kind: input, shape index: {}]   ;;  %s989_s2 = inlined_call_operand.vmem [shape: f32[1,8], index: 2, kind: input, shape index: {}]   ;;  %s990_s3 = inlined_call_operand.vmem [shape: f32[512,8], index: 3, kind: output, shape index: {}]  }
   0x1 LB: > { %s633_s13 = sadd.s32 4294967295, %s792_s12   ;;  %p637_p0 = scmp.ge.s32.totalorder %s792_s12, 1  ;;  %s792_s12 = sphi %s814_s12, %s13_s12  }
   0x2   : > { %p138_p1 = scmp.lt.s32.totalorder %s792_s12, 3 }
   0x4   : > { %p139_p2 = pnand %p637_p0, %p138_p1 }
   0x5   : > { %s638_s18 = sshll.u32 (!%p139_p2), %s633_s13, 5 }
   0x6   : > { %142 = sbr.rel (%p139_p2) target bundleno = 258 (0x102), region = 32  ;;  %p163_p3 = scmp.lt.s32.totalorder (!%p139_p2), %s638_s18, 63 }
   0xb   : > { %v765_v0 = vld [vmem:[%s988_s1 + $0x20] ss:$0 sps:$4 sm:$0xff]   ;;  %vm379_vm0 = vcmask 1043456   ;;  %v766_v1 = vld [vmem:[%s988_s1 + $0x18] sm:$0xff]   ;;  %v767_v3 = vld [vmem:[%s988_s1 + $0x10] sm:$0xff]   ;;  %s992_s18 = smov (!%p163_p3, %s638_s18), 63 }
   0xc   : > { %755 = vmatprep.subr.msk.bf16.mxu0 %vm379_vm0, %v765_v0  ;;  %756 = vmatprep.subr.msk.bf16.mxu1 %vm379_vm0, %v765_v0  ;;  %v381_v2 = vsel %vm379_vm0, %v765_v0, 0  ;;  %v768_v4 = vld [vmem:[%s988_s1 + $0x8] sm:$0xff]   ;;  %s639_s23 = sshll.u32 %s992_s18, 2  ;;  %vm330_vm1 = vcmask 588800   ;;  %v769_v7 = vld [vmem:[%s988_s1] sm:$0xff]   ;;  %s641_s29 = sshll.u32 %s992_s18, 3 }
   0xd   : > { %704 = vmatpush3.bf16.msra.mxu0 %v381_v2  ;;  %750 = vmatpush3.bf16.msra.mxu1 %v381_v2  ;;  %s840_s26 = scalar_lea.vmem %s987_s0, %s639_s23  ;;  %v881_v22 = vld [vmem:[%s989_s2] ss:$0 sm:$0xff]  ;;  %s886_s7 = scalar_lea.vmem %s990_s3, %s641_s29  ;;  %vm544_vm2 = vcmask 64512  }
   0xe   : > { %705 = vmatprep.subr.bf16.mxu0 %v766_v1  ;;  %746 = vmatprep.subr.bf16.mxu1 %v766_v1  ;;  %v770_v5 = vld [vmem:[%s840_s26] sm:$0xff]   ;;  %v772_v8 = vld [vmem:[%s840_s26 + $0x8] sm:$0xff]   ;;  %v774_v10 = vld [vmem:[%s840_s26 + $0x10] sm:$0xff]  }
   0xf   : > { %v771_v6 = vld [vmem:[%s840_s26 + $0x40] sm:$0xff]   ;;  %713 = vmatprep.mubr.msk.bf16.mxu0 %vm330_vm1, %v770_v5  ;;  %v773_v9 = vld [vmem:[%s840_s26 + $0x48] sm:$0xff]   ;;  %v775_v11 = vld [vmem:[%s840_s26 + $0x50] sm:$0xff]  }
  0x10   : > { %729 = vmatprep.mubr.msk.bf16.mxu1 %vm330_vm1, %v771_v6  ;;  %v776_v12 = vld [vmem:[%s840_s26 + $0x18] sm:$0xff]   ;;  %v778_v14 = vld [vmem:[%s840_s26 + $0x20] sm:$0xff]   ;;  %v780_v16 = vld [vmem:[%s840_s26 + $0x28] sm:$0xff]  }
  0x11   : > { %706 = vmatpush3.bf16.msra.mxu0 %v766_v1  ;;  %751 = vmatpush3.bf16.msra.mxu1 %v766_v1  ;;  %v777_v13 = vld [vmem:[%s840_s26 + $0x58] sm:$0xff]   ;;  %v779_v15 = vld [vmem:[%s840_s26 + $0x60] sm:$0xff]   ;;  %v781_v17 = vld [vmem:[%s840_s26 + $0x68] sm:$0xff]  }
  0x12   : > { %707 = vmatprep.subr.bf16.mxu0 %v767_v3  ;;  %747 = vmatprep.subr.bf16.mxu1 %v767_v3  ;;  %v782_v18 = vld [vmem:[%s840_s26 + $0x30] sm:$0xff]   ;;  %v784_v20 = vld [vmem:[%s840_s26 + $0x38] sm:$0xff]  }
  0x13   : > { %v783_v19 = vld [vmem:[%s840_s26 + $0x70] sm:$0xff]   ;;  %v785_v21 = vld [vmem:[%s840_s26 + $0x78] sm:$0xff]  }
  0x15   : > { %708 = vmatpush3.bf16.msra.mxu0 %v767_v3  ;;  %752 = vmatpush3.bf16.msra.mxu1 %v767_v3 }
  0x16   : > { %709 = vmatprep.subr.bf16.mxu0 %v768_v4  ;;  %748 = vmatprep.subr.bf16.mxu1 %v768_v4 }
  0x19   : > { %710 = vmatpush3.bf16.msra.mxu0 %v768_v4  ;;  %753 = vmatpush3.bf16.msra.mxu1 %v768_v4 }
  0x1a   : > { %711 = vmatprep.subr.bf16.mxu0 %v769_v7  ;;  %749 = vmatprep.subr.bf16.mxu1 %v769_v7 }
  0x1d   : > { %712 = vmatpush3.bf16.msra.mxu0 %v769_v7  ;;  %754 = vmatpush3.bf16.msra.mxu1 %v769_v7 }
  0x20   : > { %714 = vmatmul.mubr.msk.bf16.vlgmr.msra.gmra.mxu0 %vm330_vm1, %v772_v8  ;;  %730 = vmatmul.mubr.msk.bf16.vlgmr.msra.gmra.mxu1 %vm330_vm1, %v773_v9 }
  0x21   : > { %717 = vmatprep.mubr.msk.bf16.mxu0 %vm330_vm1, %v774_v10  ;;  %733 = vmatprep.mubr.msk.bf16.mxu1 %vm330_vm1, %v775_v11 }
  0x28   : > { %718 = vmatmul.mubr.msk.bf16.gmra.mxu0 %vm330_vm1, %v776_v12  ;;  %734 = vmatmul.mubr.msk.bf16.gmra.mxu1 %vm330_vm1, %v777_v13 }
  0x29   : > { %721 = vmatprep.mubr.msk.bf16.mxu0 %vm330_vm1, %v778_v14  ;;  %737 = vmatprep.mubr.msk.bf16.mxu1 %vm330_vm1, %v779_v15 }
  0x30   : > { %722 = vmatmul.mubr.msk.bf16.gmra.mxu0 %vm330_vm1, %v780_v16  ;;  %738 = vmatmul.mubr.msk.bf16.gmra.mxu1 %vm330_vm1, %v781_v17 }
  0x31   : > { %725 = vmatprep.mubr.msk.bf16.mxu0 %vm330_vm1, %v782_v18  ;;  %741 = vmatprep.mubr.msk.bf16.mxu1 %vm330_vm1, %v783_v19 }
  0x38   : > { %726 = vmatmul.mubr.msk.bf16.gmra.mxu0 %vm330_vm1, %v784_v20  ;;  %742 = vmatmul.mubr.msk.bf16.gmra.mxu1 %vm330_vm1, %v785_v21 }
  0xe0   : > { %v715_v23 = vpop.f32.mrf.mxu0  ;;  %v731_v24 = vpop.f32.mrf.mxu1 }
  0xe1   : > { %v426_v25 = vadd.f32 %v715_v23, %v881_v22  ;;  %v490_v26 = vadd.f32 %v731_v24, %v881_v22 }
  0xe2   : > { %v417_v27 = vpop.f32.mrf.mxu0  ;;  %v481_v28 = vpop.f32.mrf.mxu1 }
  0xe3   : > { %547 = vst.msk [vmem:[%s886_s7 + $0x10] sm:$0xff] %vm544_vm2, %v426_v25  ;;  %563 = vst.msk [vmem:[%s886_s7 + $0x90] sm:$0xff] %vm544_vm2, %v490_v26  ;;  %v418_v29 = vadd.f32 %v881_v22, %v417_v27  ;;  %v482_v30 = vadd.f32 %v881_v22, %v481_v28 }
  0xe4   : > { %v716_v31 = vpop.f32.mrf.mxu0  ;;  %v732_v32 = vpop.f32.mrf.mxu1 }
  0xe5   : > { %545 = vst.msk [vmem:[%s886_s7] sm:$0xff] %vm544_vm2, %v418_v29  ;;  %561 = vst.msk [vmem:[%s886_s7 + $0x80] sm:$0xff] %vm544_vm2, %v482_v30  ;;  %v429_v33 = vadd.f32 %v716_v31, %v881_v22  ;;  %v493_v34 = vadd.f32 %v732_v32, %v881_v22 }
  0xe6   : > { %v420_v35 = vpop.f32.mrf.mxu0  ;;  %v484_v36 = vpop.f32.mrf.mxu1 }
  0xe7   : > { %548 = vst.msk [vmem:[%s886_s7 + $0x18] sm:$0xff] %vm544_vm2, %v429_v33  ;;  %564 = vst.msk [vmem:[%s886_s7 + $0x98] sm:$0xff] %vm544_vm2, %v493_v34  ;;  %v421_v37 = vadd.f32 %v881_v22, %v420_v35  ;;  %v485_v38 = vadd.f32 %v881_v22, %v484_v36 }
  0xe8   : > { %v719_v39 = vpop.f32.mrf.mxu0  ;;  %v735_v40 = vpop.f32.mrf.mxu1 }
  0xe9   : > { %546 = vst.msk [vmem:[%s886_s7 + $0x8] sm:$0xff] %vm544_vm2, %v421_v37  ;;  %562 = vst.msk [vmem:[%s886_s7 + $0x88] sm:$0xff] %vm544_vm2, %v485_v38  ;;  %v442_v41 = vadd.f32 %v719_v39, %v881_v22  ;;  %v506_v42 = vadd.f32 %v735_v40, %v881_v22 }
  0xea   : > { %v433_v43 = vpop.f32.mrf.mxu0  ;;  %v497_v44 = vpop.f32.mrf.mxu1 }
  0xeb   : > { %551 = vst.msk [vmem:[%s886_s7 + $0x30] sm:$0xff] %vm544_vm2, %v442_v41  ;;  %567 = vst.msk [vmem:[%s886_s7 + $0xb0] sm:$0xff] %vm544_vm2, %v506_v42  ;;  %v434_v45 = vadd.f32 %v881_v22, %v433_v43  ;;  %v498_v46 = vadd.f32 %v881_v22, %v497_v44 }
  0xec   : > { %v720_v47 = vpop.f32.mrf.mxu0  ;;  %v736_v48 = vpop.f32.mrf.mxu1 }
  0xed   : > { %549 = vst.msk [vmem:[%s886_s7 + $0x20] sm:$0xff] %vm544_vm2, %v434_v45  ;;  %565 = vst.msk [vmem:[%s886_s7 + $0xa0] sm:$0xff] %vm544_vm2, %v498_v46  ;;  %v445_v49 = vadd.f32 %v720_v47, %v881_v22  ;;  %v509_v50 = vadd.f32 %v736_v48, %v881_v22 }
  0xee   : > { %v436_v51 = vpop.f32.mrf.mxu0  ;;  %v500_v52 = vpop.f32.mrf.mxu1 }
  0xef   : > { %552 = vst.msk [vmem:[%s886_s7 + $0x38] sm:$0xff] %vm544_vm2, %v445_v49  ;;  %568 = vst.msk [vmem:[%s886_s7 + $0xb8] sm:$0xff] %vm544_vm2, %v509_v50  ;;  %v437_v53 = vadd.f32 %v881_v22, %v436_v51  ;;  %v501_v54 = vadd.f32 %v881_v22, %v500_v52 }
  0xf0   : > { %v723_v55 = vpop.f32.mrf.mxu0  ;;  %v739_v56 = vpop.f32.mrf.mxu1 }
  0xf1   : > { %550 = vst.msk [vmem:[%s886_s7 + $0x28] sm:$0xff] %vm544_vm2, %v437_v53  ;;  %566 = vst.msk [vmem:[%s886_s7 + $0xa8] sm:$0xff] %vm544_vm2, %v501_v54  ;;  %v458_v57 = vadd.f32 %v723_v55, %v881_v22  ;;  %v522_v58 = vadd.f32 %v739_v56, %v881_v22 }
  0xf2   : > { %v449_v59 = vpop.f32.mrf.mxu0  ;;  %v513_v60 = vpop.f32.mrf.mxu1 }
  0xf3   : > { %555 = vst.msk [vmem:[%s886_s7 + $0x50] sm:$0xff] %vm544_vm2, %v458_v57  ;;  %571 = vst.msk [vmem:[%s886_s7 + $0xd0] sm:$0xff] %vm544_vm2, %v522_v58  ;;  %v450_v61 = vadd.f32 %v881_v22, %v449_v59  ;;  %v514_v62 = vadd.f32 %v881_v22, %v513_v60 }
  0xf4   : > { %v724_v63 = vpop.f32.mrf.mxu0  ;;  %v740_v0 = vpop.f32.mrf.mxu1 }
  0xf5   : > { %553 = vst.msk [vmem:[%s886_s7 + $0x40] sm:$0xff] %vm544_vm2, %v450_v61  ;;  %569 = vst.msk [vmem:[%s886_s7 + $0xc0] sm:$0xff] %vm544_vm2, %v514_v62  ;;  %v461_v1 = vadd.f32 %v724_v63, %v881_v22  ;;  %v525_v2 = vadd.f32 %v740_v0, %v881_v22 }
  0xf6   : > { %v452_v3 = vpop.f32.mrf.mxu0  ;;  %v516_v4 = vpop.f32.mrf.mxu1 }
  0xf7   : > { %556 = vst.msk [vmem:[%s886_s7 + $0x58] sm:$0xff] %vm544_vm2, %v461_v1  ;;  %572 = vst.msk [vmem:[%s886_s7 + $0xd8] sm:$0xff] %vm544_vm2, %v525_v2  ;;  %v453_v5 = vadd.f32 %v881_v22, %v452_v3  ;;  %v517_v6 = vadd.f32 %v881_v22, %v516_v4 }
  0xf8   : > { %v727_v7 = vpop.f32.mrf.mxu0  ;;  %v743_v8 = vpop.f32.mrf.mxu1 }
  0xf9   : > { %554 = vst.msk [vmem:[%s886_s7 + $0x48] sm:$0xff] %vm544_vm2, %v453_v5  ;;  %570 = vst.msk [vmem:[%s886_s7 + $0xc8] sm:$0xff] %vm544_vm2, %v517_v6  ;;  %v474_v9 = vadd.f32 %v727_v7, %v881_v22  ;;  %v538_v10 = vadd.f32 %v743_v8, %v881_v22 }
  0xfa   : > { %v465_v11 = vpop.f32.mrf.mxu0  ;;  %v529_v12 = vpop.f32.mrf.mxu1 }
  0xfb   : > { %559 = vst.msk [vmem:[%s886_s7 + $0x70] sm:$0xff] %vm544_vm2, %v474_v9  ;;  %575 = vst.msk [vmem:[%s886_s7 + $0xf0] sm:$0xff] %vm544_vm2, %v538_v10  ;;  %v466_v13 = vadd.f32 %v881_v22, %v465_v11  ;;  %v530_v14 = vadd.f32 %v881_v22, %v529_v12 }
  0xfc   : > { %v728_v15 = vpop.f32.mrf.mxu0  ;;  %v744_v16 = vpop.f32.mrf.mxu1 }
  0xfd   : > { %557 = vst.msk [vmem:[%s886_s7 + $0x60] sm:$0xff] %vm544_vm2, %v466_v13  ;;  %573 = vst.msk [vmem:[%s886_s7 + $0xe0] sm:$0xff] %vm544_vm2, %v530_v14  ;;  %v477_v17 = vadd.f32 %v728_v15, %v881_v22  ;;  %v541_v18 = vadd.f32 %v744_v16, %v881_v22 }
  0xfe   : > { %v468_v19 = vpop.f32.mrf.mxu0  ;;  %v532_v20 = vpop.f32.mrf.mxu1 }
  0xff   : > { %560 = vst.msk [vmem:[%s886_s7 + $0x78] sm:$0xff] %vm544_vm2, %v477_v17  ;;  %576 = vst.msk [vmem:[%s886_s7 + $0xf8] sm:$0xff] %vm544_vm2, %v541_v18  ;;  %v469_v21 = vadd.f32 %v881_v22, %v468_v19  ;;  %v533_v23 = vadd.f32 %v881_v22, %v532_v20 }
 0x101   : > { %558 = vst.msk [vmem:[%s886_s7 + $0x68] sm:$0xff] %vm544_vm2, %v469_v21  ;;  %574 = vst.msk [vmem:[%s886_s7 + $0xe8] sm:$0xff] %vm544_vm2, %v533_v23 }
 0x102 PF: > { %s13_s12 = sadd.s32 1, %s792_s12  }
 0x103   : > { %p10_p4 = scmp.ge.s32.totalorder %s13_s12, 4  }
 0x105   :  { %12 = sbr.rel (!%p10_p4) target bundleno = 1 (0x1), region = 62 }

// kernel: forward.24
= control target key start
LH: loop header
LB: loop body
LE: loop exit
PB: predicated region body
PF: predicated region fallthrough
CT: control target
= control target key end

     0   :  { %vm204_vm0 = vcmask 261120   ;;  %s527_s1 = inlined_call_operand.vmem [shape: bf16[288,32], index: 1, kind: input, shape index: {}]   ;;  %s528_s0 = inlined_call_operand.vmem [shape: bf16[32,288], index: 0, kind: input, shape index: {}]   ;;  %s529_s2 = inlined_call_operand.vmem [shape: f32[1,32], index: 2, kind: input, shape index: {}]   ;;  %s530_s3 = inlined_call_operand.vmem [shape: f32[32,32], index: 3, kind: output, shape index: {}]  }
   0x1   :  { %v388_v0 = vld [vmem:[%s527_s1 + $0x78] sm:$0xff]   ;;  %v390_v2 = vld [vmem:[%s527_s1 + $0x70] sm:$0xff]   ;;  %v392_v4 = vld [vmem:[%s527_s1 + $0x68] sm:$0xff]  }
   0x2   :  { %v389_v1 = vld [vmem:[%s527_s1 + $0x38] sm:$0xff]   ;;  %348 = vmatprep.subr.bf16.mxu0 %v388_v0  ;;  %v391_v3 = vld [vmem:[%s527_s1 + $0x30] sm:$0xff]   ;;  %v393_v5 = vld [vmem:[%s527_s1 + $0x28] sm:$0xff]  }
   0x3   :  { %349 = vmatpush3.bf16.msra.mxu0 %v389_v1  ;;  %v394_v6 = vld [vmem:[%s527_s1 + $0x60] sm:$0xff]   ;;  %v396_v8 = vld [vmem:[%s527_s1 + $0x58] sm:$0xff]   ;;  %v403_v10 = vld [vmem:[%s527_s1 + $0x88] sm:$0xff]  }
   0x4   :  { %350 = vmatprep.subr.bf16.mxu0 %v390_v2  ;;  %v395_v7 = vld [vmem:[%s527_s1 + $0x20] sm:$0xff]   ;;  %v397_v9 = vld [vmem:[%s527_s1 + $0x18] sm:$0xff]   ;;  %v398_v11 = vld [vmem:[%s527_s1 + $0x50] sm:$0xff]   ;;  %380 = vmatprep.subr.bf16.mxu1 %v403_v10 }
   0x5   :  { %v399_v12 = vld [vmem:[%s527_s1 + $0x10] sm:$0xff]   ;;  %v400_v13 = vld [vmem:[%s527_s1 + $0x48] sm:$0xff]   ;;  %381 = vmatpush3.bf16.msra.mxu1 %v403_v10  ;;  %v408_v15 = vld [vmem:[%s527_s1 + $0x80] sm:$0xff]  }
   0x6   :  { %v407_v14 = vld [vmem:[%s528_s0 + $0x4] ss:$12 sps:$4 sm:$0xff]   ;;  %v409_v16 = vld [vmem:[%s528_s0 + $0x8] ss:$12 sps:$4 sm:$0xff]   ;;  %382 = vmatprep.subr.bf16.mxu1 %v408_v15  ;;  %v410_v17 = vld [vmem:[%s528_s0 + $0x20] ss:$12 sps:$4 sm:$0xff]  }
   0x7   :  { %351 = vmatpush3.bf16.msra.mxu0 %v391_v3  ;;  %243 = vmatprep.mubr.bf16.mxu0 %v407_v14  ;;  %v401_v18 = vld [vmem:[%s527_s1 + $0x8] sm:$0xff]   ;;  %v402_v19 = vld [vmem:[%s527_s1 + $0x40] sm:$0xff]  }
   0x8   :  { %352 = vmatprep.subr.bf16.mxu0 %v392_v4  ;;  %384 = vmatprep.mubr.msk.bf16.mxu1 %vm204_vm0, %v409_v16  ;;  %v404_v20 = vld [vmem:[%s527_s1] sm:$0xff]   ;;  %v411_v22 = vld [vmem:[%s528_s0 + $0x1c] ss:$12 sps:$4 sm:$0xff]  }
   0x9   :  { %383 = vmatpush3.bf16.msra.mxu1 %v408_v15  ;;  %v405_v21 = vld [vmem:[%s528_s0] ss:$12 sps:$4 sm:$0xff]   ;;  %v413_v23 = vld [vmem:[%s528_s0 + $0x18] ss:$12 sps:$4 sm:$0xff]  }
   0xa   :  { %v321_v28 = vld [vmem:[%s529_s2] ss:$0 sm:$0xff] }
   0xb   :  { %353 = vmatpush3.bf16.msra.mxu0 %v393_v5 }
   0xc   :  { %354 = vmatprep.subr.bf16.mxu0 %v394_v6  ;;  %385 = vmatmul.mubr.msk.bf16.vlgmr.msra.gmra.mxu1 %vm204_vm0, %v410_v17 }
   0xf   :  { %355 = vmatpush3.bf16.msra.mxu0 %v395_v7 }
  0x10   :  { %356 = vmatprep.subr.bf16.mxu0 %v396_v8 }
  0x13   :  { %357 = vmatpush3.bf16.msra.mxu0 %v397_v9 }
  0x14   :  { %358 = vmatprep.subr.bf16.mxu0 %v398_v11 }
  0x17   :  { %359 = vmatpush3.bf16.msra.mxu0 %v399_v12 }
  0x18   :  { %360 = vmatprep.subr.bf16.mxu0 %v400_v13 }
  0x1b   :  { %361 = vmatpush3.bf16.msra.mxu0 %v401_v18 }
  0x1c   :  { %362 = vmatprep.subr.bf16.mxu0 %v402_v19 }
  0x1f   :  { %363 = vmatpush3.bf16.msra.mxu0 %v404_v20 }
  0x22   :  { %244 = vmatmul.mubr.bf16.vlgmr.msra.gmra.mxu0 %v405_v21 }
  0x23   :  { %251 = vmatprep.mubr.bf16.mxu0 %v411_v22 }
  0x2a   :  { %252 = vmatmul.mubr.bf16.gmra.mxu0 %v413_v23 }
  0xcc   :  { %v386_v24 = vpop.f32.mrf.mxu1 }
  0xce   :  { %v294_v26 = vpop.f32.mrf.mxu1 }
  0xd0   :  { %v387_v31 = vpop.f32.mrf.mxu1 }
  0xd2   :  { %v297_v37 = vpop.f32.mrf.mxu1 }
  0xe2   :  { %v364_v25 = vpop.f32.mrf.mxu0 }
  0xe4   :  { %v365_v27 = vpop.f32.mrf.mxu0 }
  0xe5   :  { %v366_v29 = vadd.f32 %v365_v27, %v364_v25 }
  0xe6   :  { %v367_v30 = vpop.f32.mrf.mxu0 }
  0xe7   :  { %v246_v32 = vadd.f32 %v366_v29, %v321_v28 }
  0xe8   :  { %v368_v33 = vpop.f32.mrf.mxu0 }
  0xe9   :  { %v369_v34 = vadd.f32 %v368_v33, %v367_v30  ;;  %v295_v35 = vadd.f32 %v294_v26, %v246_v32 }
  0xea   :  { %v370_v36 = vpop.f32.mrf.mxu0 }
  0xeb   :  { %v309_v38 = vmax.f32 %v295_v35, 0.0  ;;  %v249_v39 = vadd.f32 %v369_v34, %v321_v28 }
  0xec   :  { %v371_v40 = vpop.f32.mrf.mxu0 }
  0xed   :  { %313 = vst.msk [vmem:[%s530_s3] sm:$0xff] %vm204_vm0, %v309_v38  ;;  %v372_v41 = vadd.f32 %v371_v40, %v370_v36  ;;  %v298_v42 = vadd.f32 %v297_v37, %v249_v39 }
  0xee   :  { %v373_v43 = vpop.f32.mrf.mxu0 }
  0xef   :  { %v254_v44 = vadd.f32 %v372_v41, %v321_v28  ;;  %v310_v45 = vmax.f32 %v298_v42, 0.0 }
  0xf0   :  { %v374_v46 = vpop.f32.mrf.mxu0 }
  0xf1   :  { %v303_v47 = vadd.f32 %v386_v24, %v254_v44  ;;  %314 = vst.msk [vmem:[%s530_s3 + $0x8] sm:$0xff] %vm204_vm0, %v310_v45  ;;  %v375_v48 = vadd.f32 %v374_v46, %v373_v43 }
  0xf3   :  { %v311_v49 = vmax.f32 %v303_v47, 0.0  ;;  %v257_v50 = vadd.f32 %v375_v48, %v321_v28 }
  0xf5   :  { %315 = vst.msk [vmem:[%s530_s3 + $0x10] sm:$0xff] %vm204_vm0, %v311_v49  ;;  %v306_v51 = vadd.f32 %v387_v31, %v257_v50 }
  0xf7   :  { %v312_v52 = vmax.f32 %v306_v51, 0.0 }
  0xf9   :  { %316 = vst.msk [vmem:[%s530_s3 + $0x18] sm:$0xff] %vm204_vm0, %v312_v52 }

// kernel: forward.25
= control target key start
LH: loop header
LB: loop body
LE: loop exit
PB: predicated region body
PF: predicated region fallthrough
CT: control target
= control target key end

     0   :  { %15 = vsyncpa [#allocation3], 0  ;;  %v1038_v2 = vmov 0   ;;  %s1235_s0 = inlined_call_operand.vmem [shape: s32[16,1], index: 0, kind: input, shape index: {}]   ;;  %s1236_s1 = inlined_call_operand.vmem [shape: f32[16,1], index: 1, kind: input, shape index: {}]   ;;  %s1237_s2 = inlined_call_operand.vmem [shape: f32[32,32], index: 2, kind: input, shape index: {}]   ;;  %s1238_s3 = inlined_call_operand.vmem [shape: f32[16,32], index: 3, kind: input, shape index: {}]   ;;  %s1239_s4 = inlined_call_operand.vmem [shape: f32[32,32], index: 4, kind: input, shape index: {}]   ;;  %s1240_s5 = inlined_call_operand.vmem [shape: f32[32,64], index: 5, kind: input, shape index: {}]   ;;  %s1241_s6 = inlined_call_operand.vmem [shape: f32[32,16], index: 6, kind: input, shape index: {}]   ;;  %s1242_s7 = inlined_call_operand.vmem [shape: f32[1,16], index: 7, kind: input, shape index: {}]   ;;  %s1243_s8 = inlined_call_operand.hbm [shape: f32[16,16], index: 8, kind: output, shape index: {0}]   ;;  %s1244_s9 = inlined_call_operand.hbm [shape: f32[1,1], index: 9, kind: output, shape index: {1}]  }
   0x1   :  { %v33_v0 = vld [vmem:[%s1235_s0] sm:$0xff]  ;;  %v50_v1 = vld [vmem:[%s1238_s3 + $0x8] sm:$0xff]  ;;  %977 = vset.pattern.permute.xlu0 %v1038_v2 }
   0x2   :  { %898 = vmatprep.subr.mxu1 %v50_v1  ;;  %v49_v3 = vld [vmem:[%s1238_s3] sm:$0xff] }
   0x3   :  { %16 = vsyncpa [#allocation5], 0  ;;  %38 = vperm.xlu0 %977, %v33_v0   ;;  %899 = vmatpush3.msra.mxu1 %v50_v1  ;;  %v34_v4 = vld [vmem:[%s1235_s0 + $0x8] sm:$0xff]  ;;  %v226_v5 = vld [vmem:[%s1240_s5 + $0x18] sm:$0xff]  ;;  %vm137_vm0 = vcmask 261120   ;;  %v1039_v12 = vmov 0.0   ;;  %v35_v13 = vlaneseq }
   0x4   :  { %900 = vmatprep.subr.mxu1 %v49_v3  ;;  %v225_v6 = vld [vmem:[%s1240_s5 + $0x10] sm:$0xff]  ;;  %916 = vmatprep.subr.mxu0 %v226_v5  ;;  %v219_v7 = vld [vmem:[%s1237_s2] sm:$0xff]  ;;  %v224_v8 = vld [vmem:[%s1240_s5 + $0x8] sm:$0xff]  ;;  %vm51_vm1 = vcmask 130048   ;;  %vm1040_vm4 = vmmov 0  }
   0x5   :  { %901 = vmatpush3.msra.mxu1 %v49_v3  ;;  %917 = vmatpush3.msra.mxu0 %v226_v5  ;;  %v136_v9 = vld [vmem:[%s1239_s4 + $0x18] sm:$0xff]  ;;  %v223_v10 = vld [vmem:[%s1240_s5] sm:$0xff]  ;;  %v220_v11 = vld [vmem:[%s1237_s2 + $0x8] sm:$0xff]  ;;  %v36_v14 = vand.u32 127, %v35_v13 }
   0x6   :  { %918 = vmatprep.subr.mxu0 %v225_v6  ;;  %924 = vmatprep.mubr.msk.f32.mxu0 %vm137_vm0, %v219_v7  ;;  %v135_v19 = vld [vmem:[%s1239_s4 + $0x10] sm:$0xff]  ;;  %v134_v20 = vld [vmem:[%s1239_s4 + $0x8] sm:$0xff]  ;;  %v133_v21 = vld [vmem:[%s1239_s4] sm:$0xff] }
   0x7   :  { %41 = vperm.xlu0 %977, %v34_v4   ;;  %919 = vmatpush3.msra.mxu0 %v225_v6  ;;  %v221_v22 = vld [vmem:[%s1237_s2 + $0x10] sm:$0xff]  ;;  %v222_v23 = vld [vmem:[%s1237_s2 + $0x18] sm:$0xff]  ;;  %s1041_s2 = smov 96   ;;  %v667_v62 = vld [vmem:[%s1241_s6 + $0x8] sm:$0xff] }
   0x8   :  { %905 = vmatprep.subr.mxu1 %v136_v9  ;;  %920 = vmatprep.subr.mxu0 %v224_v8  ;;  %v669_v60 = vld [vmem:[%s1241_s6 + $0x18] sm:$0xff]  ;;  %v668_v61 = vld [vmem:[%s1241_s6 + $0x10] sm:$0xff]  ;;  %v666_v63 = vld [vmem:[%s1241_s6] sm:$0xff]  ;;  %s1042_s6 = smov [#allocation2]  }
   0x9   :  { %921 = vmatpush3.msra.mxu0 %v224_v8  ;;  %v859_v8 = vld [vmem:[%s1242_s7] ss:$0 sm:$0xff]  ;;  %s816_s7 = sshll.u32 %s1042_s6, 4  ;;  %s817_s7 = int_to_ptr.vmem [resolvable:$true] %s816_s7 }
   0xa   :  { %922 = vmatprep.subr.mxu0 %v223_v10  ;;  %s994_s24 = scalar_lea.vmem %s817_s7, 256  ;;  %p999_p1 = scmp.lt.s32.totalorder %s817_s7, %s817_s7 }
   0xb   :  { %923 = vmatpush3.msra.mxu0 %v223_v10  ;;  %p995_p0 = scmp.ne.s32.totalorder %s817_s7, %s994_s24  ;;  %p1000_p2 = scmp.lt.s32.totalorder %s994_s24, %s994_s24 }
   0xc   :  { %925 = vmatmul.mubr.msk.f32.vlgmr.msra.gmra.mxu0 %vm137_vm0, %v220_v11  ;;  %937 = vmatprep.subr.mxu0 %v1039_v12 }
   0xd   :  { %927 = vmatprep.mubr.msk.f32.mxu0 %vm137_vm0, %v221_v22  ;;  %p1001_p3 = por %p1000_p2, %p999_p1 }
   0xf   :  { %p1002_p4 = pnand %p1001_p3, %p995_p0 }
  0x10   :  { %928 = vmatmul.mubr.msk.f32.gmra.mxu0 %vm137_vm0, %v222_v23 }
  0x11   :  { %941 = vmatprep.mubr.msk.f32.mxu0 %vm1040_vm4, %v1039_v12 }
  0x7e   :  { %v39_v15 = vpop.permute.xlu0 %38 }
  0x7f   :  { %vm43_vm2 = vcmp.eq.s32.totalorder %v36_v14, %v39_v15 }
  0x80   :  { %v1133_v16 = vsel %vm43_vm2, 1.0, %v1039_v12 }
  0x81   :  { %902 = vmatprep.mubr.msk.f32.mxu1 %vm51_vm1, %v1133_v16 }
  0x82   :  { %v42_v17 = vpop.permute.xlu0 %41 }
  0x83   :  { %vm44_vm3 = vcmp.eq.s32.totalorder %v36_v14, %v42_v17 }
  0x84   :  { %v1138_v18 = vsel %vm44_vm3, 1.0, %v1039_v12 }
  0x85   :  { %903 = vmatmul.mubr.msk.f32.vlgmr.msra.gmra.mxu1 %vm51_vm1, %v1138_v18 }
  0x86   :  { %906 = vmatpush3.msra.mxu1 %v136_v9 }
  0x87   :  { %907 = vmatprep.subr.mxu1 %v135_v19 }
  0x88   :  { %908 = vmatpush3.msra.mxu1 %v135_v19 }
  0x89   :  { %909 = vmatprep.subr.mxu1 %v134_v20 }
  0x8a   :  { %910 = vmatpush3.msra.mxu1 %v134_v20 }
  0x8b   :  { %911 = vmatprep.subr.mxu1 %v133_v21 }
  0x8c   :  { %912 = vmatpush3.msra.mxu1 %v133_v21 }
  0x8d   :  { %930 = vmatprep.subr.mxu1 %v1039_v12 }
  0xcc   :  { %v926_v26 = vpop.f32.mrf.mxu0 }
  0xce   :  { %v305_v27 = vpop.f32.mrf.mxu0 }
  0xd0   :  { %v929_v30 = vpop.f32.mrf.mxu0 }
  0xd2   :  { %v315_v31 = vpop.f32.mrf.mxu0 }
 0x145   :  { %v904_v24 = vpop.f32.mrf.mxu1 }
 0x147   :  { %v124_v25 = vpop.f32.mrf.mxu1 }
 0x148   :  { %913 = vmatprep.mubr.msk.f32.mxu1 %vm137_vm0, %v124_v25 }
 0x149   :  { %914 = vmatmul.mubr.msk.f32.vlgmr.msra.gmra.mxu1 %vm137_vm0, %v904_v24 }
 0x14a   :  { %931 = vmatpush3.xpose.msk.msra.mxu1 %vm137_vm0, %v926_v26  ;;  %934 = vmatprep.mubr.msk.f32.mxu1 %vm1040_vm4, %v1039_v12 }
 0x14b   :  { %932 = vmatprep.subr.mxu1 %v1039_v12 }
 0x14e   :  { %933 = vmatpush3.xpose.msk.msra.mxu1 %vm137_vm0, %v305_v27 }
 0x14f   :  { %944 = vmatprep.subr.mxu1 %v1039_v12 }
 0x209   :  { %v1170_v28 = vpop.f32.mrf.mxu1 }
 0x20b   :  { %v1172_v29 = vpop.f32.mrf.mxu1 }
 0x20c   :  { %935 = vmatmul.mubr.msk.f32.vlgmr.msra.gmra.mxu1 %vm137_vm0, %v1172_v29 }
 0x20d   :  { %945 = vmatpush3.xpose.msk.msra.mxu1 %vm137_vm0, %v929_v30  ;;  %948 = vmatprep.mubr.msk.f32.mxu1 %vm1040_vm4, %v1039_v12 }
 0x20e   :  { %946 = vmatprep.subr.mxu1 %v1039_v12 }
 0x211   :  { %947 = vmatpush3.xpose.msk.msra.mxu1 %vm137_vm0, %v315_v31 }
 0x214   :  { %949 = vmatmul.mubr.msk.f32.vlgmr.msra.gmra.mxu1 %vm137_vm0, %v1170_v28 }
 0x2cc   :  { %v399_v32 = vpop.f32.mrf.mxu1 }
 0x2cd   :  { %v403_v33 = vmul.f32 0.17677669, %v399_v32 }
 0x2ce   :  { %v936_v34 = vpop.f32.mrf.mxu1 }
 0x2cf   :  { %v404_v35 = vsel %vm51_vm1, %v403_v33, -inf }
 0x2d0   :  { %405 = vmax.xlane.f32.xlu1 %v404_v35 }
 0x2d4   :  { %v570_v36 = vpop.f32.mrf.mxu1 }
 0x2d5   :  { %v574_v37 = vmul.f32 0.17677669, %v570_v36 }
 0x2d6   :  { %v950_v38 = vpop.f32.mrf.mxu1 }
 0x2d7   :  { %v575_v39 = vsel %vm51_vm1, %v574_v37, -inf }
 0x2d8   :  { %576 = vmax.xlane.f32.xlu1 %v575_v39 }
 0x2e9   :  { %417 = vrot.lane.b32.xlu1 %v926_v26, %s1041_s2 }
 0x2ed   :  { %415 = vrot.lane.b32.xlu1 %v305_v27, %s1041_s2 }
 0x2f1   :  { %588 = vrot.lane.b32.xlu1 %v929_v30, %s1041_s2 }
 0x359   :  { %v406_v40 = vpop.xlane.xlu1 %405 }
 0x35a   :  { %v407_v41 = vsub.f32 %v403_v33, %v406_v40 }
 0x35c   :  { %v408_v42 = vmul.f32 1.442695, %v407_v41 }
 0x35e   :  { %978 = vpow2.f32 %v408_v42 }
 0x361   :  { %v577_v43 = vpop.xlane.xlu1 %576 }
 0x362   :  { %v578_v44 = vsub.f32 %v574_v37, %v577_v43 }
 0x364   :  { %v579_v45 = vmul.f32 1.442695, %v578_v44 }
 0x365   :  { %v418_v46 = vpop.permute.xlu1 %417 }
 0x366   :  { %980 = vpow2.f32 %v579_v45  ;;  %938 = vmatpush3.msra.mxu0 %v418_v46 }
 0x367   :  { %939 = vmatprep.subr.mxu0 %v1039_v12 }
 0x369   :  { %v416_v47 = vpop.permute.xlu1 %415 }
 0x36a   :  { %940 = vmatpush3.msra.mxu0 %v416_v47 }
 0x36b   :  { %v979_v48 = vpop.eup %978  ;;  %951 = vmatprep.subr.mxu0 %v1039_v12 }
 0x36c   :  { %v410_v49 = vsel %vm51_vm1, %v979_v48, 0.0 }
 0x36d   :  { %411 = vadd.xlane.f32.xlu0 %v410_v49  ;;  %v589_v53 = vpop.permute.xlu1 %588 }
 0x373   :  { %v981_v50 = vpop.eup %980 }
 0x374   :  { %v581_v51 = vsel %vm51_vm1, %v981_v50, 0.0 }
 0x375   :  { %582 = vadd.xlane.f32.xlu1 %v581_v51 }
 0x386   :  { %586 = vrot.lane.b32.xlu1 %v315_v31, %s1041_s2 }
 0x3f6   :  { %v412_v52 = vpop.xlane.xlu0 %411 }
 0x3f7   :  { %982 = vrcp.f32 %v412_v52 }
 0x3fe   :  { %v583_v54 = vpop.xlane.xlu1 %582 }
 0x3ff   :  { %984 = vrcp.f32 %v583_v54 }
 0x402   :  { %v587_v57 = vpop.permute.xlu1 %586 }
 0x404   :  { %v983_v55 = vpop.eup %982 }
 0x405   :  { %v414_v56 = vmul.f32 %v983_v55, %v979_v48 }
 0x407   :  { %942 = vmatmul.mubr.msk.f32.vlgmr.msra.gmra.mxu0 %vm51_vm1, %v414_v56 }
 0x408   :  { %952 = vmatpush3.msra.mxu0 %v589_v53  ;;  %955 = vmatprep.mubr.msk.f32.mxu0 %vm1040_vm4, %v1039_v12 }
 0x409   :  { %953 = vmatprep.subr.mxu0 %v1039_v12 }
 0x40a   :  { %954 = vmatpush3.msra.mxu0 %v587_v57 }
 0x40b   :  { %958 = vmatprep.subr.mxu0 %v669_v60 }
 0x40c   :  { %v985_v58 = vpop.eup %984 }
 0x40d   :  { %v585_v59 = vmul.f32 %v985_v58, %v981_v50 }
 0x40f   :  { %956 = vmatmul.mubr.msk.f32.vlgmr.msra.gmra.mxu0 %vm51_vm1, %v585_v59 }
 0x410   :  { %959 = vmatpush3.msra.mxu0 %v669_v60 }
 0x411   :  { %960 = vmatprep.subr.mxu0 %v668_v61 }
 0x412   :  { %961 = vmatpush3.msra.mxu0 %v668_v61 }
 0x413   :  { %962 = vmatprep.subr.mxu0 %v667_v62 }
 0x414   :  { %963 = vmatpush3.msra.mxu0 %v667_v62 }
 0x415   :  { %964 = vmatprep.subr.mxu0 %v666_v63 }
 0x416   :  { %965 = vmatpush3.msra.mxu0 %v666_v63 }
 0x4c7   :  { %v490_v0 = vpop.f32.mrf.mxu0 }
 0x4c8   :  { %v491_v1 = vadd.f32 %v490_v0, %v1172_v29 }
 0x4c9   :  { %v943_v2 = vpop.f32.mrf.mxu0 }
 0x4ca   :  { %v494_v3 = vmax.f32 %v491_v1, 0.0 }
 0x4cc   :  { %966 = vmatprep.mubr.msk.f32.mxu0 %vm137_vm0, %v494_v3 }
 0x4cf   :  { %v661_v4 = vpop.f32.mrf.mxu0 }
 0x4d0   :  { %v662_v5 = vadd.f32 %v1170_v28, %v661_v4 }
 0x4d1   :  { %v957_v6 = vpop.f32.mrf.mxu0 }
 0x4d2   :  { %v665_v7 = vmax.f32 %v662_v5, 0.0 }
 0x4d4   :  { %967 = vmatmul.mubr.msk.f32.vlgmr.msra.gmra.mxu0 %vm137_vm0, %v665_v7 }
 0x594   :  { %v968_v9 = vpop.f32.mrf.mxu0 }
 0x595   :  { %v755_v10 = vadd.f32 %v968_v9, %v859_v8 }
 0x596   :  { %v749_v11 = vpop.f32.mrf.mxu0 }
 0x597   :  { %759 = vst.msk [vmem:[#allocation2 + $0x8] sm:$0xff] %vm51_vm1, %v755_v10  ;;  %v750_v12 = vadd.f32 %v859_v8, %v749_v11  ;;  %v763_v13 = vsel %vm51_vm1, %v755_v10, -inf  ;;  %v785_v29 = vmul.f32 %v1138_v18, %v755_v10 }
 0x598   :  { %764 = vmax.xlane.f32.xlu1 %v763_v13 }
 0x599   :  { %758 = vst.msk [vmem:[#allocation2] sm:$0xff] %vm51_vm1, %v750_v12  ;;  %v760_v14 = vsel %vm51_vm1, %v750_v12, -inf  ;;  %v784_v27 = vmul.f32 %v1133_v16, %v750_v12  ;;  %v789_v30 = vsel %vm51_vm1, %v785_v29, 0.0 }
 0x59a   :  { %761 = vmax.xlane.f32.xlu0 %v760_v14 }
 0x59b   :  { %v786_v28 = vsel %vm51_vm1, %v784_v27, 0.0 }
 0x621   :  { %v765_v15 = vpop.xlane.xlu1 %764 }
 0x622   :  { %v767_v17 = vsub.f32 %v755_v10, %v765_v15 }
 0x623   :  { %v762_v19 = vpop.xlane.xlu0 %761 }
 0x624   :  { %v766_v20 = vsub.f32 %v750_v12, %v762_v19  ;;  %v770_v21 = vmul.f32 1.442695, %v767_v17 }
 0x626   :  { %v768_v22 = vmul.f32 1.442695, %v766_v20 }
 0x628   :  { %986 = vpow2.f32 %v768_v22 }
 0x629   :  { %988 = vpow2.f32 %v770_v21 }
 0x635   :  { %v987_v23 = vpop.eup %986 }
 0x636   :  { %v772_v24 = vsel %vm51_vm1, %v987_v23, 0.0  ;;  %v989_v25 = vpop.eup %988 }
 0x637   :  { %773 = vadd.xlane.f32.xlu0 %v772_v24  ;;  %v775_v26 = vsel %vm51_vm1, %v989_v25, 0.0 }
 0x63b   :  { %776 = vadd.xlane.f32.xlu0 %v775_v26 }
 0x63f   :  { %787 = vadd.xlane.f32.xlu0 %v786_v28 }
 0x643   :  { %790 = vadd.xlane.f32.xlu0 %v789_v30 }
 0x644   :  { %1005 = shalt.err (!%p1002_p4)
}
 0x645   :  { %s1043_s25 = smov 128   ;;  %s1044_s26 = smov 8   ;;  %v794_v38 = vld [vmem:[%s1236_s1] sm:$0xff]  ;;  %v795_v40 = vld [vmem:[%s1236_s1 + $0x8] sm:$0xff]  ;;  %vm798_vm5 = vcmask 7168   ;;  %vm809_vm6 = vcmask 0  }
 0x646   :  { %822 = dma.vmem_to_hbm [thread:$0]  %s817_s7, 256, %s1243_s8, [#allocation3], %s1043_s25, %s1043_s25, %s1044_s26  }
 0x647   :  { %s1045_s8 = smov [#allocation4]  }
 0x648   :  { %s829_s11 = sshll.u32 %s1045_s8, 4  ;;  %s830_s11 = int_to_ptr.vmem [resolvable:$true] %s829_s11 }
 0x649   :  { %s1014_s1 = scalar_lea.vmem %s830_s11, 16  ;;  %s1018_s12 = scalar_lea.vmem %s830_s11, 32 }
 0x64a   :  { %p1015_p5 = scmp.ne.s32.totalorder %s830_s11, %s1014_s1  ;;  %p1019_p6 = scmp.lt.s32.totalorder %s830_s11, %s830_s11 }
 0x64b   :  { %p1020_p7 = scmp.lt.s32.totalorder %s1018_s12, %s1014_s1 }
 0x64d   :  { %p1021_p8 = por %p1020_p7, %p1019_p6 }
 0x64f   :  { %p1022_p9 = pnand %p1021_p8, %p1015_p5 }
 0x6c0   :  { %v774_v16 = vpop.xlane.xlu0 %773 }
 0x6c1   :  { %990 = vlog2.f32 %v774_v16 }
 0x6c4   :  { %v777_v18 = vpop.xlane.xlu0 %776 }
 0x6c5   :  { %992 = vlog2.f32 %v777_v18 }
 0x6c8   :  { %v788_v33 = vpop.xlane.xlu0 %787 }
 0x6cc   :  { %v791_v41 = vpop.xlane.xlu0 %790 }
 0x6ce   :  { %v991_v31 = vpop.eup %990 }
 0x6cf   :  { %v779_v32 = vmul.f32 0.6931472, %v991_v31 }
 0x6d1   :  { %v782_v34 = vadd.f32 %v779_v32, %v762_v19 }
 0x6d2   :  { %v993_v35 = vpop.eup %992 }
 0x6d3   :  { %v781_v36 = vmul.f32 0.6931472, %v993_v35  ;;  %v792_v37 = vsub.f32 %v782_v34, %v788_v33 }
 0x6d5   :  { %v783_v39 = vadd.f32 %v781_v36, %v765_v15  ;;  %v796_v42 = vmul.f32 %v794_v38, %v792_v37 }
 0x6d7   :  { %v793_v43 = vsub.f32 %v783_v39, %v791_v41  ;;  %v799_v45 = vsel %vm798_vm5, %v796_v42, 0.0 }
 0x6d9   :  { %v797_v44 = vmul.f32 %v795_v40, %v793_v43 }
 0x6db   :  { %v800_v46 = vsel %vm798_vm5, %v797_v44, 0.0 }
 0x6dc   :  { %v801_v47 = vadd.f32 %v800_v46, %v799_v45 }
 0x6de   :  { %v802_v48 = vrot.slane %v801_v47, 4 }
 0x6e0   :  { %v803_v49 = vadd.f32 %v802_v48, %v801_v47 }
 0x6e2   :  { %v804_v50 = vrot.slane %v803_v49, 2 }
 0x6e4   :  { %v805_v51 = vadd.f32 %v804_v50, %v803_v49 }
 0x6e6   :  { %v806_v52 = vrot.slane %v805_v51, 1 }
 0x6e8   :  { %v807_v53 = vadd.f32 %v806_v52, %v805_v51 }
 0x6ea   :  { %v808_v54 = vmul.f32 0.5, %v807_v53 }
 0x6ec   :  { %810 = vst.msk [vmem:[#allocation4] sm:$0x1] %vm809_vm6, %v808_v54 }
 0x6ed   :  { %1025 = shalt.err (!%p1022_p9)
}
 0x6ee   :  { %832 = dma.vmem_to_hbm [thread:$0]  %s830_s11, 16, %s1244_s9, [#allocation5]  }
 0x6ef   :  { %1034 = dma.done.wait [#allocation3], 256  }
 0x6f0   :  { %1035 = vsyncadd [#allocation3], 4294967040 }
 0x6f1   :  { %1036 = dma.done.wait [#allocation5], 16  }
 0x6f2   :  { %1037 = vsyncadd [#allocation5], 4294967280 }
 0x6f3   :  { %839 = vsyncpa [#allocation3], 1 }
 0x6f4   :  { %840 = vsyncpa [#allocation5], 1 }

</bundles_post_ra>
